<compile_context>
chip_gen: v5e
topology: v5e:2x2
jax: 0.10.0
libtpu: 0.0.40
codegen_flags: <defaults>
</compile_context>

<pallas_src>
import math
import functools

import jax
import jax.numpy as jnp
from jax.experimental import pallas as pl
from jax.experimental.pallas import tpu as pltpu


def _swap01(z):
    """(a, b, d) -> (b, a, d), keeping the minor (lane) dim in place."""
    if hasattr(pltpu, "einshape"):
        return pltpu.einshape("abd->bad", z)   # lane-layout-aware relayout
    return jnp.swapaxes(z, 0, 1)


def _decoder_layer_kernel(
    x_ref, mem_ref, tgt_mask_ref, src_mask_ref,
    wq_s_ref, bq_s_ref, wkv_s_ref, bkv_s_ref, wo_s_ref, bo_s_ref,
    wq_c_ref, bq_c_ref, wkv_c_ref, bkv_c_ref, wo_c_ref, bo_c_ref,
    wff1_ref, bff1_ref, wff2_ref, bff2_ref,
    ln_a_ref, ln_b_ref,
    out_ref,
    *, n_heads, d_model, q_tile, eps):
    f32, bf16 = jnp.float32, jnp.bfloat16
    d_k = d_model // n_heads
    inv_sqrt_dk = 1.0 / math.sqrt(d_k)

    # Query-tile offset (second grid axis).
    q0 = pl.multiple_of(pl.program_id(1) * q_tile, q_tile)

    x_full = x_ref[0].astype(f32)                          # (T, D)  self-attn K/V source
    x_tile = x_ref[0, pl.ds(q0, q_tile), :].astype(f32)    # (TQ, D) residual-stream rows
    mem = mem_ref[0]                                       # (S, D)  bf16, used raw by src_attn

    # Masks -> additive bias, hoisted and computed once per attention call.
    tgt_bias = jnp.where(tgt_mask_ref[0] == 0.0, -1e9, 0.0).astype(f32)   # (TQ, T)
    src_bias = jnp.where(src_mask_ref[0] == 0.0, -1e9, 0.0).astype(f32)   # (1, S)

    def layer_norm(v, idx):
        a = ln_a_ref[idx:idx + 1, :]          # (1, D)
        b = ln_b_ref[idx:idx + 1, :]          # (1, D)
        mean = jnp.mean(v, axis=-1, keepdims=True)
        # torch .std() is unbiased (ddof=1); exact reciprocal here (only the softmax
        # denominator uses the approx/EUP reciprocal).
        var = jnp.sum((v - mean) ** 2, axis=-1, keepdims=True) * (1.0 / (d_model - 1))
        return a * (v - mean) / (jnp.sqrt(var) + eps) + b

    def split_heads(z):
        # (n, D) -> (H, n, d_k) bf16: one reshape + one head-major relayout per tensor.
        n = z.shape[0]
        return _swap01(z.astype(bf16).reshape(n, n_heads, d_k))

    def mha(q_rows, kv_rows, bias, wq_ref, bq_ref, wkv_ref, bkv_ref, wo_ref, bo_ref):
        # q_rows: (TQ, D) f32, kv_rows: (N, D) bf16, bias broadcastable to (H, TQ, N).
        # Projections: bf16 operands, f32 accumulation on the MXU; K/V fused into one
        # wide (D, 2D) matmul; 1/sqrt(d_k) folded into q.
        q = jnp.dot(q_rows.astype(bf16), wq_ref[...], preferred_element_type=f32) + bq_ref[...]
        q = q * inv_sqrt_dk
        kv = jnp.dot(kv_rows, wkv_ref[...], preferred_element_type=f32) + bkv_ref[...]
        k = kv[:, :d_model]
        v = kv[:, d_model:]

        qh, kh, vh = split_heads(q), split_heads(k), split_heads(v)   # (H, *, d_k) bf16

        # Heads batched into single contractions (no per-head loop).
        # TODO(synk): for very long S add an inner KV loop with online-softmax accumulators
        # so the (H, TQ, S) score tile stays bounded (flash-style).
        s = jnp.einsum("hqd,hkd->hqk", qh, kh, preferred_element_type=f32) + bias[None]
        s = s - jnp.max(s, axis=-1, keepdims=True)
        p = jnp.exp(s)
        p = p * pl.reciprocal(jnp.sum(p, axis=-1, keepdims=True), approx=True)

        ctx = jnp.einsum("hqk,hkd->hqd", p.astype(bf16), vh,
                         preferred_element_type=f32)                  # (H, TQ, d_k)
        # Output projection as a per-head batched matmul (MXU) + head-sum (cheap VPU adds):
        # no XLU transpose and no reshape crossing (8,128) tile boundaries.
        out_h = jnp.einsum("hqd,hdo->hqo", ctx.astype(bf16), wo_ref[...],
                           preferred_element_type=f32)                # (H, TQ, D)
        return jnp.sum(out_h, axis=0) + bo_ref[...]

    # sublayer 0: masked self-attention (+ residual); dropout == identity (eval mode)
    kv0 = layer_norm(x_full, 0).astype(bf16)          # keys/values need LN0 of the full seq
    x1 = x_tile + mha(layer_norm(x_tile, 0), kv0, tgt_bias,
                      wq_s_ref, bq_s_ref, wkv_s_ref, bkv_s_ref, wo_s_ref, bo_s_ref)

    # sublayer 1: cross-attention over encoder memory (memory is used raw, per reference)
    x2 = x1 + mha(layer_norm(x1, 1), mem, src_bias,
                  wq_c_ref, bq_c_ref, wkv_c_ref, bkv_c_ref, wo_c_ref, bo_c_ref)

    # sublayer 2: position-wise feed-forward
    # TODO(synk): fp8 FFN weights (bf16 activations, f32 accumulation) on v7x if accuracy allows.
    xn2 = layer_norm(x2, 2)
    h1 = jnp.dot(xn2.astype(bf16), wff1_ref[...], preferred_element_type=f32) + bff1_ref[...]
    h1 = jnp.maximum(h1, 0.0).astype(bf16)            # bf16 right after ReLU: halves live VMEM
    x3 = x2 + jnp.dot(h1, wff2_ref[...], preferred_element_type=f32) + bff2_ref[...]

    out_ref[0] = x3.astype(out_ref.dtype)


def _pick_q_tile(t):
    if t <= 256:
        return t
    for cand in (256, 128, 64, 32, 16, 8):
        if t % cand == 0:
            return cand
    return t


def _vmem_limit_bytes():
    cap = 64 * 1024 * 1024            # conservative fallback (v7x-sized VMEM)
    try:
        info = pltpu.get_tpu_info()
        cap = int(getattr(info, "vmem_capacity_bytes", cap))
    except Exception:
        pass
    # Leave ~25% headroom for compiler-internal scratch / double buffers:
    # 128 MiB parts (v5e/v6e) -> 96 MiB, 64 MiB parts (v7x) -> 48 MiB.
    return (cap * 3) // 4


def prepare_params(params, *, n_heads):
    """One-time parameter prep: bf16 cast, K/V fusion, W_o head-reshape.

    Done once (not per call) so the f32->bf16 convert / concat is not re-executed and
    re-written to HBM on every forward step.
    """
    f32, bf16 = jnp.float32, jnp.bfloat16
    D = params["w_ff1"].shape[0]
    d_k = D // n_heads

    def attn(w, b):
        # w: (4, D, D) = (q, k, v, o) stored (in, out); b: (4, D)
        w_q = w[0].astype(bf16)                                        # (D, D)
        w_kv = jnp.concatenate([w[1], w[2]], axis=1).astype(bf16)      # (D, 2D)
        w_o = w[3].reshape(n_heads, d_k, D).astype(bf16)               # (H, d_k, D)
        b_q = b[0:1].astype(f32)                                       # (1, D)
        b_kv = jnp.concatenate([b[1:2], b[2:3]], axis=1).astype(f32)   # (1, 2D)
        b_o = b[3:4].astype(f32)                                       # (1, D)
        return (w_q, b_q, w_kv, b_kv, w_o, b_o)

    return {
        "self_attn": attn(params["w_self"], params["b_self"]),
        "src_attn": attn(params["w_src"], params["b_src"]),
        "w_ff1": params["w_ff1"].astype(bf16), "b_ff1": params["b_ff1"].astype(f32),
        "w_ff2": params["w_ff2"].astype(bf16), "b_ff2": params["b_ff2"].astype(f32),
        "ln_a": params["ln_a"].astype(f32), "ln_b": params["ln_b"].astype(f32),
    }


def decoder_layer(x, memory, src_mask, tgt_mask, prep, *, n_heads):
    """Fused DecoderLayer forward. `prep` comes from prepare_params(params, n_heads=...)."""
    B, T, D = x.shape
    S = memory.shape[1]
    d_ff = prep["w_ff1"].shape[1]
    d_k = D // n_heads
    q_tile = _pick_q_tile(T)
    nq = T // q_tile

    kernel = functools.partial(_decoder_layer_kernel, n_heads=n_heads, d_model=D,
                               q_tile=q_tile, eps=1e-6)

    weight_args = (*prep["self_attn"], *prep["src_attn"],
                   prep["w_ff1"], prep["b_ff1"], prep["w_ff2"], prep["b_ff2"],
                   prep["ln_a"], prep["ln_b"])

    def const_spec(shape, single_buffer):
        index_map = lambda b, q: (0,) * len(shape)
        if single_buffer and hasattr(pl, "Buffered"):
            # Grid-invariant operand: fetched once, never re-DMA'd -> no 2nd buffer needed.
            return pl.BlockSpec(shape, index_map, pipeline_mode=pl.Buffered(1))
        return pl.BlockSpec(shape, index_map)

    def run(single_buffer):
        cs = lambda *shape: const_spec(shape, single_buffer)
        in_specs = [
            pl.BlockSpec((1, T, D), lambda b, q: (b, 0, 0)),        # x (full seq: self-attn K/V)
            pl.BlockSpec((1, S, D), lambda b, q: (b, 0, 0)),        # memory
            pl.BlockSpec((1, q_tile, T), lambda b, q: (b, q, 0)),   # tgt_mask rows for this tile
            pl.BlockSpec((1, 1, S), lambda b, q: (b, 0, 0)),        # src_mask
            # self-attn weights (bf16) / biases (f32)
            cs(D, D), cs(1, D), cs(D, 2 * D), cs(1, 2 * D), cs(n_heads, d_k, D), cs(1, D),
            # src-attn weights / biases
            cs(D, D), cs(1, D), cs(D, 2 * D), cs(1, 2 * D), cs(n_heads, d_k, D), cs(1, D),
            # feed-forward
            cs(D, d_ff), cs(1, d_ff), cs(d_ff, D), cs(1, D),
            # layernorm scale / bias (3 sublayers)
            cs(3, D), cs(3, D),
        ]
        out_specs = pl.BlockSpec((1, q_tile, D), lambda b, q: (b, q, 0))
        return pl.pallas_call(
            kernel,
            grid=(B, nq),
            in_specs=in_specs,
            out_specs=out_specs,
            out_shape=jax.ShapeDtypeStruct((B, T, D), jnp.float32),
            compiler_params=pltpu.CompilerParams(
                dimension_semantics=("parallel", "parallel"),
                vmem_limit_bytes=_vmem_limit_bytes()),
        )(x.astype(jnp.bfloat16), memory.astype(jnp.bfloat16),
          tgt_mask.astype(jnp.float32), src_mask.astype(jnp.float32),
          *weight_args)

    try:
        return run(single_buffer=True)
    except Exception:
        # pipeline_mode=pl.Buffered(1) unavailable on this jax version -> default buffering.
        return run(single_buffer=False)


# ----------------------------- pure-JAX reference -----------------------------
def _ln_ref(v, a, b, eps=1e-6):
    mean = v.mean(-1, keepdims=True)
    std = jnp.sqrt(((v - mean) ** 2).sum(-1, keepdims=True) / (v.shape[-1] - 1))
    return a * (v - mean) / (std + eps) + b


def _mha_ref(q_in, kv_in, mask, w, b, n_heads):
    T, D = q_in.shape
    S = kv_in.shape[0]
    d_k = D // n_heads
    q = (q_in @ w[0] + b[0]).reshape(T, n_heads, d_k).transpose(1, 0, 2)
    k = (kv_in @ w[1] + b[1]).reshape(S, n_heads, d_k).transpose(1, 0, 2)
    v = (kv_in @ w[2] + b[2]).reshape(S, n_heads, d_k).transpose(1, 0, 2)
    s = jnp.einsum("htd,hsd->hts", q, k) / math.sqrt(d_k)
    s = jnp.where(mask[None] == 0.0, -1e9, s)
    p = jax.nn.softmax(s, axis=-1)
    ctx = jnp.einsum("hts,hsd->htd", p, v).transpose(1, 0, 2).reshape(T, D)
    return ctx @ w[3] + b[3]


def _decoder_layer_ref(x, memory, src_mask, tgt_mask, params, n_heads):
    outs = []
    for bi in range(x.shape[0]):
        xb, mb = x[bi], memory[bi]
        xb = xb + _mha_ref(_ln_ref(xb, params["ln_a"][0], params["ln_b"][0]),
                           _ln_ref(xb, params["ln_a"][0], params["ln_b"][0]),
                           tgt_mask[bi], params["w_self"], params["b_self"], n_heads)
        xb = xb + _mha_ref(_ln_ref(xb, params["ln_a"][1], params["ln_b"][1]),
                           mb, src_mask[bi], params["w_src"], params["b_src"], n_heads)
        xn = _ln_ref(xb, params["ln_a"][2], params["ln_b"][2])
        xb = xb + (jnp.maximum(xn @ params["w_ff1"] + params["b_ff1"][0], 0.0)
                   @ params["w_ff2"] + params["b_ff2"][0])
        outs.append(xb)
    return jnp.stack(outs, axis=0)


# ----------------------------------- main --------------------------------------
if __name__ == "__main__":
    B, T, S = 2, 8, 10          # batch, tgt seq, src (memory) seq
    D, H, DFF = 32, 4, 64       # d_model, heads, d_ff

    key = jax.random.PRNGKey(0)
    ks = jax.random.split(key, 12)
    sc = 0.1
    params = {
        "w_self": jax.random.normal(ks[0], (4, D, D), jnp.float32) * sc,
        "b_self": jax.random.normal(ks[1], (4, D), jnp.float32) * sc,
        "w_src":  jax.random.normal(ks[2], (4, D, D), jnp.float32) * sc,
        "b_src":  jax.random.normal(ks[3], (4, D), jnp.float32) * sc,
        "w_ff1":  jax.random.normal(ks[4], (D, DFF), jnp.float32) * sc,
        "b_ff1":  jax.random.normal(ks[5], (1, DFF), jnp.float32) * sc,
        "w_ff2":  jax.random.normal(ks[6], (DFF, D), jnp.float32) * sc,
        "b_ff2":  jax.random.normal(ks[7], (1, D), jnp.float32) * sc,
        "ln_a":   jnp.ones((3, D), jnp.float32),
        "ln_b":   jnp.zeros((3, D), jnp.float32),
    }

    x = jax.random.normal(ks[8], (B, T, D), jnp.float32)
    memory = jax.random.normal(ks[9], (B, S, D), jnp.float32)
    # tgt_mask: causal (0.0 means masked, matching torch `mask == 0`)
    tgt_mask = jnp.broadcast_to(jnp.tril(jnp.ones((T, T), jnp.float32)), (B, T, T))
    # src_mask: ragged source lengths so the masking path is actually exercised
    src_len = jnp.array([S, S - 3])
    src_mask = (jnp.arange(S)[None, None, :] < src_len[:, None, None]).astype(jnp.float32)

    prep = prepare_params(params, n_heads=H)
    out = decoder_layer(x, memory, src_mask, tgt_mask, prep, n_heads=H)
    out = jax.block_until_ready(out)

    ref = _decoder_layer_ref(x, memory, src_mask, tgt_mask, params, H)
    assert out.shape == (B, T, D)
    # bf16 activations/weights on the MXU + approx (EUP) softmax reciprocal in the kernel
    # -> compare against the f32 reference with a correspondingly relaxed tolerance.
    assert jnp.allclose(out, ref, rtol=4e-2, atol=4e-2), "mismatch vs pure-JAX reference"

    print("KERNEL_OK")
</pallas_src>

<mosaic_0001>
module attributes {stable_mosaic.version = 11 : i64} {
  func.func @_decoder_layer_kernel(%arg0: i32, %arg1: i32, %arg2: memref<1x8x32xbf16, #tpu.memory_space<vmem>>, %arg3: memref<1x10x32xbf16, #tpu.memory_space<vmem>>, %arg4: memref<1x8x8xf32, #tpu.memory_space<vmem>>, %arg5: memref<1x1x10xf32, #tpu.memory_space<vmem>>, %arg6: memref<32x32xbf16, #tpu.memory_space<vmem>>, %arg7: memref<1x32xf32, #tpu.memory_space<vmem>>, %arg8: memref<32x64xbf16, #tpu.memory_space<vmem>>, %arg9: memref<1x64xf32, #tpu.memory_space<vmem>>, %arg10: memref<4x8x32xbf16, #tpu.memory_space<vmem>>, %arg11: memref<1x32xf32, #tpu.memory_space<vmem>>, %arg12: memref<32x32xbf16, #tpu.memory_space<vmem>>, %arg13: memref<1x32xf32, #tpu.memory_space<vmem>>, %arg14: memref<32x64xbf16, #tpu.memory_space<vmem>>, %arg15: memref<1x64xf32, #tpu.memory_space<vmem>>, %arg16: memref<4x8x32xbf16, #tpu.memory_space<vmem>>, %arg17: memref<1x32xf32, #tpu.memory_space<vmem>>, %arg18: memref<32x64xbf16, #tpu.memory_space<vmem>>, %arg19: memref<1x64xf32, #tpu.memory_space<vmem>>, %arg20: memref<64x32xbf16, #tpu.memory_space<vmem>>, %arg21: memref<1x32xf32, #tpu.memory_space<vmem>>, %arg22: memref<3x32xf32, #tpu.memory_space<vmem>>, %arg23: memref<3x32xf32, #tpu.memory_space<vmem>>, %arg24: memref<1x8x32xf32, #tpu.memory_space<vmem>>) attributes {dimension_semantics = [#tpu.dimension_semantics<parallel>, #tpu.dimension_semantics<parallel>], iteration_bounds = array<i64: 2, 1>, scalar_prefetch = 0 : i64, scratch_operands = 0 : i64, tpu.core_type = #tpu.core_type<tc>, window_params = [{transform_indices = @transform_0, window_bounds = array<i64: 1, 8, 32>}, {transform_indices = @transform_1, window_bounds = array<i64: 1, 10, 32>}, {transform_indices = @transform_2, window_bounds = array<i64: 1, 8, 8>}, {transform_indices = @transform_3, window_bounds = array<i64: 1, 1, 10>}, {pipeline_mode = #tpu.pipeline_mode<synchronous>, transform_indices = @transform_4, window_bounds = array<i64: 32, 32>}, {pipeline_mode = #tpu.pipeline_mode<synchronous>, transform_indices = @transform_5, window_bounds = array<i64: 1, 32>}, {pipeline_mode = #tpu.pipeline_mode<synchronous>, transform_indices = @transform_6, window_bounds = array<i64: 32, 64>}, {pipeline_mode = #tpu.pipeline_mode<synchronous>, transform_indices = @transform_7, window_bounds = array<i64: 1, 64>}, {pipeline_mode = #tpu.pipeline_mode<synchronous>, transform_indices = @transform_8, window_bounds = array<i64: 4, 8, 32>}, {pipeline_mode = #tpu.pipeline_mode<synchronous>, transform_indices = @transform_9, window_bounds = array<i64: 1, 32>}, {pipeline_mode = #tpu.pipeline_mode<synchronous>, transform_indices = @transform_10, window_bounds = array<i64: 32, 32>}, {pipeline_mode = #tpu.pipeline_mode<synchronous>, transform_indices = @transform_11, window_bounds = array<i64: 1, 32>}, {pipeline_mode = #tpu.pipeline_mode<synchronous>, transform_indices = @transform_12, window_bounds = array<i64: 32, 64>}, {pipeline_mode = #tpu.pipeline_mode<synchronous>, transform_indices = @transform_13, window_bounds = array<i64: 1, 64>}, {pipeline_mode = #tpu.pipeline_mode<synchronous>, transform_indices = @transform_14, window_bounds = array<i64: 4, 8, 32>}, {pipeline_mode = #tpu.pipeline_mode<synchronous>, transform_indices = @transform_15, window_bounds = array<i64: 1, 32>}, {pipeline_mode = #tpu.pipeline_mode<synchronous>, transform_indices = @transform_16, window_bounds = array<i64: 32, 64>}, {pipeline_mode = #tpu.pipeline_mode<synchronous>, transform_indices = @transform_17, window_bounds = array<i64: 1, 64>}, {pipeline_mode = #tpu.pipeline_mode<synchronous>, transform_indices = @transform_18, window_bounds = array<i64: 64, 32>}, {pipeline_mode = #tpu.pipeline_mode<synchronous>, transform_indices = @transform_19, window_bounds = array<i64: 1, 32>}, {pipeline_mode = #tpu.pipeline_mode<synchronous>, transform_indices = @transform_20, window_bounds = array<i64: 3, 32>}, {pipeline_mode = #tpu.pipeline_mode<synchronous>, transform_indices = @transform_21, window_bounds = array<i64: 3, 32>}, {transform_indices = @transform_22, window_bounds = array<i64: 1, 8, 32>}]} {
    %c8_i32 = arith.constant 8 : i32
    %0 = arith.muli %arg1, %c8_i32 : i32
    %1 = tpu.assume_multiple %0, 8 : i32
    %c0 = arith.constant 0 : index
    %c0_0 = arith.constant 0 : index
    %c0_1 = arith.constant 0 : index
    %2 = vector.load %arg2[%c0, %c0_0, %c0_1] : memref<1x8x32xbf16, #tpu.memory_space<vmem>>, vector<1x8x32xbf16>
    %3 = vector.shape_cast %2 : vector<1x8x32xbf16> to vector<8x32xbf16>
    %4 = arith.extf %3 : vector<8x32xbf16> to vector<8x32xf32>
    %c0_2 = arith.constant 0 : index
    %5 = arith.index_cast %1 : i32 to index
    %c0_3 = arith.constant 0 : index
    %6 = vector.load %arg2[%c0_2, %5, %c0_3] : memref<1x8x32xbf16, #tpu.memory_space<vmem>>, vector<1x8x32xbf16>
    %7 = vector.shape_cast %6 : vector<1x8x32xbf16> to vector<8x32xbf16>
    %8 = arith.extf %7 : vector<8x32xbf16> to vector<8x32xf32>
    %c0_4 = arith.constant 0 : index
    %c0_5 = arith.constant 0 : index
    %c0_6 = arith.constant 0 : index
    %9 = vector.load %arg3[%c0_4, %c0_5, %c0_6] : memref<1x10x32xbf16, #tpu.memory_space<vmem>>, vector<1x10x32xbf16>
    %10 = vector.shape_cast %9 : vector<1x10x32xbf16> to vector<10x32xbf16>
    %c0_7 = arith.constant 0 : index
    %c0_8 = arith.constant 0 : index
    %c0_9 = arith.constant 0 : index
    %11 = vector.load %arg4[%c0_7, %c0_8, %c0_9] : memref<1x8x8xf32, #tpu.memory_space<vmem>>, vector<1x8x8xf32>
    %12 = vector.shape_cast %11 : vector<1x8x8xf32> to vector<8x8xf32>
    %cst = arith.constant 0.000000e+00 : f32
    %13 = vector.broadcast %cst : f32 to vector<8x8xf32>
    %14 = arith.cmpf oeq, %12, %13 : vector<8x8xf32>
    %cst_10 = arith.constant -1.000000e+09 : f32
    %cst_11 = arith.constant 0.000000e+00 : f32
    %15 = vector.broadcast %cst_10 : f32 to vector<8x8xf32>
    %16 = vector.broadcast %cst_11 : f32 to vector<8x8xf32>
    %17 = arith.select %14, %15, %16 : vector<8x8xi1>, vector<8x8xf32>
    %c0_12 = arith.constant 0 : index
    %c0_13 = arith.constant 0 : index
    %c0_14 = arith.constant 0 : index
    %18 = vector.load %arg5[%c0_12, %c0_13, %c0_14] : memref<1x1x10xf32, #tpu.memory_space<vmem>>, vector<1x1x10xf32>
    %19 = vector.shape_cast %18 : vector<1x1x10xf32> to vector<1x10xf32>
    %cst_15 = arith.constant 0.000000e+00 : f32
    %20 = vector.broadcast %cst_15 : f32 to vector<1x10xf32>
    %21 = arith.cmpf oeq, %19, %20 : vector<1x10xf32>
    %cst_16 = arith.constant -1.000000e+09 : f32
    %cst_17 = arith.constant 0.000000e+00 : f32
    %22 = vector.broadcast %cst_16 : f32 to vector<1x10xf32>
    %23 = vector.broadcast %cst_17 : f32 to vector<1x10xf32>
    %24 = arith.select %21, %22, %23 : vector<1x10xi1>, vector<1x10xf32>
    %c0_18 = arith.constant 0 : index
    %c0_19 = arith.constant 0 : index
    %25 = vector.load %arg22[%c0_18, %c0_19] : memref<3x32xf32, #tpu.memory_space<vmem>>, vector<1x32xf32>
    %c0_20 = arith.constant 0 : index
    %c0_21 = arith.constant 0 : index
    %26 = vector.load %arg23[%c0_20, %c0_21] : memref<3x32xf32, #tpu.memory_space<vmem>>, vector<1x32xf32>
    %cst_22 = arith.constant dense<0.000000e+00> : vector<8xf32>
    %27 = vector.multi_reduction <add>, %4, %cst_22 [1] : vector<8x32xf32> to vector<8xf32>
    %28 = vector.shape_cast %27 : vector<8xf32> to vector<8x1xf32>
    %cst_23 = arith.constant 3.200000e+01 : f32
    %29 = vector.broadcast %cst_23 : f32 to vector<8x1xf32>
    %30 = arith.divf %28, %29 : vector<8x1xf32>
    %31 = vector.broadcast %30 : vector<8x1xf32> to vector<8x32xf32>
    %32 = arith.subf %4, %31 : vector<8x32xf32>
    %33 = arith.mulf %32, %32 : vector<8x32xf32>
    %cst_24 = arith.constant dense<0.000000e+00> : vector<8xf32>
    %34 = vector.multi_reduction <add>, %33, %cst_24 [1] : vector<8x32xf32> to vector<8xf32>
    %35 = vector.shape_cast %34 : vector<8xf32> to vector<8x1xf32>
    %cst_25 = arith.constant 0.0322580636 : f32
    %36 = vector.broadcast %cst_25 : f32 to vector<8x1xf32>
    %37 = arith.mulf %35, %36 : vector<8x1xf32>
    %38 = vector.broadcast %30 : vector<8x1xf32> to vector<8x32xf32>
    %39 = arith.subf %4, %38 : vector<8x32xf32>
    %40 = vector.broadcast %25 : vector<1x32xf32> to vector<8x32xf32>
    %41 = arith.mulf %40, %39 : vector<8x32xf32>
    %42 = math.sqrt %37 : vector<8x1xf32>
    %cst_26 = arith.constant 9.99999997E-7 : f32
    %43 = vector.broadcast %cst_26 : f32 to vector<8x1xf32>
    %44 = arith.addf %42, %43 : vector<8x1xf32>
    %45 = vector.broadcast %44 : vector<8x1xf32> to vector<8x32xf32>
    %46 = arith.divf %41, %45 : vector<8x32xf32>
    %47 = vector.broadcast %26 : vector<1x32xf32> to vector<8x32xf32>
    %48 = arith.addf %46, %47 : vector<8x32xf32>
    %49 = arith.truncf %48 : vector<8x32xf32> to vector<8x32xbf16>
    %c0_27 = arith.constant 0 : index
    %c0_28 = arith.constant 0 : index
    %50 = vector.load %arg22[%c0_27, %c0_28] : memref<3x32xf32, #tpu.memory_space<vmem>>, vector<1x32xf32>
    %c0_29 = arith.constant 0 : index
    %c0_30 = arith.constant 0 : index
    %51 = vector.load %arg23[%c0_29, %c0_30] : memref<3x32xf32, #tpu.memory_space<vmem>>, vector<1x32xf32>
    %cst_31 = arith.constant dense<0.000000e+00> : vector<8xf32>
    %52 = vector.multi_reduction <add>, %8, %cst_31 [1] : vector<8x32xf32> to vector<8xf32>
    %53 = vector.shape_cast %52 : vector<8xf32> to vector<8x1xf32>
    %cst_32 = arith.constant 3.200000e+01 : f32
    %54 = vector.broadcast %cst_32 : f32 to vector<8x1xf32>
    %55 = arith.divf %53, %54 : vector<8x1xf32>
    %56 = vector.broadcast %55 : vector<8x1xf32> to vector<8x32xf32>
    %57 = arith.subf %8, %56 : vector<8x32xf32>
    %58 = arith.mulf %57, %57 : vector<8x32xf32>
    %cst_33 = arith.constant dense<0.000000e+00> : vector<8xf32>
    %59 = vector.multi_reduction <add>, %58, %cst_33 [1] : vector<8x32xf32> to vector<8xf32>
    %60 = vector.shape_cast %59 : vector<8xf32> to vector<8x1xf32>
    %cst_34 = arith.constant 0.0322580636 : f32
    %61 = vector.broadcast %cst_34 : f32 to vector<8x1xf32>
    %62 = arith.mulf %60, %61 : vector<8x1xf32>
    %63 = vector.broadcast %55 : vector<8x1xf32> to vector<8x32xf32>
    %64 = arith.subf %8, %63 : vector<8x32xf32>
    %65 = vector.broadcast %50 : vector<1x32xf32> to vector<8x32xf32>
    %66 = arith.mulf %65, %64 : vector<8x32xf32>
    %67 = math.sqrt %62 : vector<8x1xf32>
    %cst_35 = arith.constant 9.99999997E-7 : f32
    %68 = vector.broadcast %cst_35 : f32 to vector<8x1xf32>
    %69 = arith.addf %67, %68 : vector<8x1xf32>
    %70 = vector.broadcast %69 : vector<8x1xf32> to vector<8x32xf32>
    %71 = arith.divf %66, %70 : vector<8x32xf32>
    %72 = vector.broadcast %51 : vector<1x32xf32> to vector<8x32xf32>
    %73 = arith.addf %71, %72 : vector<8x32xf32>
    %74 = arith.truncf %73 : vector<8x32xf32> to vector<8x32xbf16>
    %c0_36 = arith.constant 0 : index
    %c0_37 = arith.constant 0 : index
    %75 = vector.load %arg6[%c0_36, %c0_37] : memref<32x32xbf16, #tpu.memory_space<vmem>>, vector<32x32xbf16>
    %cst_38 = arith.constant dense<0.000000e+00> : vector<8x32xf32>
    %76 = tpu.matmul %74, %75, %cst_38 {dimension_numbers = #tpu.dot_dimension_numbers<[1], [0], [0], [1], [0, 0, 1, 1], [], []>} : vector<8x32xbf16>, vector<32x32xbf16>, vector<8x32xf32> -> vector<8x32xf32>
    %c0_39 = arith.constant 0 : index
    %c0_40 = arith.constant 0 : index
    %77 = vector.load %arg7[%c0_39, %c0_40] : memref<1x32xf32, #tpu.memory_space<vmem>>, vector<1x32xf32>
    %78 = vector.broadcast %77 : vector<1x32xf32> to vector<8x32xf32>
    %79 = arith.addf %76, %78 : vector<8x32xf32>
    %cst_41 = arith.constant 0.353553385 : f32
    %80 = vector.broadcast %cst_41 : f32 to vector<8x32xf32>
    %81 = arith.mulf %79, %80 : vector<8x32xf32>
    %c0_42 = arith.constant 0 : index
    %c0_43 = arith.constant 0 : index
    %82 = vector.load %arg8[%c0_42, %c0_43] : memref<32x64xbf16, #tpu.memory_space<vmem>>, vector<32x64xbf16>
    %cst_44 = arith.constant dense<0.000000e+00> : vector<8x64xf32>
    %83 = tpu.matmul %49, %82, %cst_44 {dimension_numbers = #tpu.dot_dimension_numbers<[1], [0], [0], [1], [0, 0, 1, 1], [], []>} : vector<8x32xbf16>, vector<32x64xbf16>, vector<8x64xf32> -> vector<8x64xf32>
    %c0_45 = arith.constant 0 : index
    %c0_46 = arith.constant 0 : index
    %84 = vector.load %arg9[%c0_45, %c0_46] : memref<1x64xf32, #tpu.memory_space<vmem>>, vector<1x64xf32>
    %85 = vector.broadcast %84 : vector<1x64xf32> to vector<8x64xf32>
    %86 = arith.addf %83, %85 : vector<8x64xf32>
    %87 = vector.extract_strided_slice %86 {offsets = [0, 0], sizes = [8, 32], strides = [1, 1]} : vector<8x64xf32> to vector<8x32xf32>
    %88 = vector.extract_strided_slice %86 {offsets = [0, 32], sizes = [8, 32], strides = [1, 1]} : vector<8x64xf32> to vector<8x32xf32>
    %89 = arith.truncf %81 : vector<8x32xf32> to vector<8x32xbf16>
    %90 = vector.shape_cast %89 : vector<8x32xbf16> to vector<8x4x8xbf16>
    %91 = tpu.transpose %90, [1, 0, 2] : vector<8x4x8xbf16> -> vector<4x8x8xbf16>
    %92 = arith.truncf %87 : vector<8x32xf32> to vector<8x32xbf16>
    %93 = vector.shape_cast %92 : vector<8x32xbf16> to vector<8x4x8xbf16>
    %94 = tpu.transpose %93, [1, 0, 2] : vector<8x4x8xbf16> -> vector<4x8x8xbf16>
    %95 = arith.truncf %88 : vector<8x32xf32> to vector<8x32xbf16>
    %96 = vector.shape_cast %95 : vector<8x32xbf16> to vector<8x4x8xbf16>
    %97 = tpu.transpose %96, [1, 0, 2] : vector<8x4x8xbf16> -> vector<4x8x8xbf16>
    "tpu.trace_start"() <{level = 10 : i32, message = "hqd,hkd->hqk"}> : () -> ()
    %cst_47 = arith.constant dense<0.000000e+00> : vector<4x8x8xf32>
    %98 = tpu.matmul %91, %94, %cst_47 {dimension_numbers = #tpu.dot_dimension_numbers<[2], [2], [1], [1], [0, 0, 0, 1, 1, 1], [0], [0]>} : vector<4x8x8xbf16>, vector<4x8x8xbf16>, vector<4x8x8xf32> -> vector<4x8x8xf32>
    "tpu.trace_stop"() : () -> ()
    %99 = vector.shape_cast %17 : vector<8x8xf32> to vector<1x8x8xf32>
    %100 = vector.broadcast %99 : vector<1x8x8xf32> to vector<4x8x8xf32>
    %101 = arith.addf %98, %100 : vector<4x8x8xf32>
    %cst_48 = arith.constant dense<0xFF800000> : vector<4x8xf32>
    %102 = vector.multi_reduction <maximumf>, %101, %cst_48 [2] : vector<4x8x8xf32> to vector<4x8xf32>
    %103 = vector.shape_cast %102 : vector<4x8xf32> to vector<4x8x1xf32>
    %104 = vector.broadcast %103 : vector<4x8x1xf32> to vector<4x8x8xf32>
    %105 = arith.subf %101, %104 : vector<4x8x8xf32>
    %106 = math.exp %105 : vector<4x8x8xf32>
    %cst_49 = arith.constant dense<0.000000e+00> : vector<4x8xf32>
    %107 = vector.multi_reduction <add>, %106, %cst_49 [2] : vector<4x8x8xf32> to vector<4x8xf32>
    %108 = vector.shape_cast %107 : vector<4x8xf32> to vector<4x8x1xf32>
    %109 = tpu.reciprocal %108 {approx = true} : vector<4x8x1xf32> -> vector<4x8x1xf32>
    %110 = vector.broadcast %109 : vector<4x8x1xf32> to vector<4x8x8xf32>
    %111 = arith.mulf %106, %110 : vector<4x8x8xf32>
    %112 = arith.truncf %111 : vector<4x8x8xf32> to vector<4x8x8xbf16>
    "tpu.trace_start"() <{level = 10 : i32, message = "hqk,hkd->hqd"}> : () -> ()
    %cst_50 = arith.constant dense<0.000000e+00> : vector<4x8x8xf32>
    %113 = tpu.matmul %112, %97, %cst_50 {dimension_numbers = #tpu.dot_dimension_numbers<[2], [1], [1], [2], [0, 0, 0, 1, 1, 2], [0], [0]>} : vector<4x8x8xbf16>, vector<4x8x8xbf16>, vector<4x8x8xf32> -> vector<4x8x8xf32>
    "tpu.trace_stop"() : () -> ()
    %114 = arith.truncf %113 : vector<4x8x8xf32> to vector<4x8x8xbf16>
    %c0_51 = arith.constant 0 : index
    %c0_52 = arith.constant 0 : index
    %c0_53 = arith.constant 0 : index
    %115 = vector.load %arg10[%c0_51, %c0_52, %c0_53] : memref<4x8x32xbf16, #tpu.memory_space<vmem>>, vector<4x8x32xbf16>
    "tpu.trace_start"() <{level = 10 : i32, message = "hqd,hdo->hqo"}> : () -> ()
    %cst_54 = arith.constant dense<0.000000e+00> : vector<4x8x32xf32>
    %116 = tpu.matmul %114, %115, %cst_54 {dimension_numbers = #tpu.dot_dimension_numbers<[2], [1], [1], [2], [0, 0, 0, 1, 1, 2], [0], [0]>} : vector<4x8x8xbf16>, vector<4x8x32xbf16>, vector<4x8x32xf32> -> vector<4x8x32xf32>
    "tpu.trace_stop"() : () -> ()
    %cst_55 = arith.constant dense<0.000000e+00> : vector<8x32xf32>
    %117 = vector.multi_reduction <add>, %116, %cst_55 [0] : vector<4x8x32xf32> to vector<8x32xf32>
    %c0_56 = arith.constant 0 : index
    %c0_57 = arith.constant 0 : index
    %118 = vector.load %arg11[%c0_56, %c0_57] : memref<1x32xf32, #tpu.memory_space<vmem>>, vector<1x32xf32>
    %119 = vector.broadcast %118 : vector<1x32xf32> to vector<8x32xf32>
    %120 = arith.addf %117, %119 : vector<8x32xf32>
    %121 = arith.addf %8, %120 : vector<8x32xf32>
    %c1 = arith.constant 1 : index
    %c0_58 = arith.constant 0 : index
    %122 = vector.load %arg22[%c1, %c0_58] : memref<3x32xf32, #tpu.memory_space<vmem>>, vector<1x32xf32>
    %c1_59 = arith.constant 1 : index
    %c0_60 = arith.constant 0 : index
    %123 = vector.load %arg23[%c1_59, %c0_60] : memref<3x32xf32, #tpu.memory_space<vmem>>, vector<1x32xf32>
    %cst_61 = arith.constant dense<0.000000e+00> : vector<8xf32>
    %124 = vector.multi_reduction <add>, %121, %cst_61 [1] : vector<8x32xf32> to vector<8xf32>
    %125 = vector.shape_cast %124 : vector<8xf32> to vector<8x1xf32>
    %cst_62 = arith.constant 3.200000e+01 : f32
    %126 = vector.broadcast %cst_62 : f32 to vector<8x1xf32>
    %127 = arith.divf %125, %126 : vector<8x1xf32>
    %128 = vector.broadcast %127 : vector<8x1xf32> to vector<8x32xf32>
    %129 = arith.subf %121, %128 : vector<8x32xf32>
    %130 = arith.mulf %129, %129 : vector<8x32xf32>
    %cst_63 = arith.constant dense<0.000000e+00> : vector<8xf32>
    %131 = vector.multi_reduction <add>, %130, %cst_63 [1] : vector<8x32xf32> to vector<8xf32>
    %132 = vector.shape_cast %131 : vector<8xf32> to vector<8x1xf32>
    %cst_64 = arith.constant 0.0322580636 : f32
    %133 = vector.broadcast %cst_64 : f32 to vector<8x1xf32>
    %134 = arith.mulf %132, %133 : vector<8x1xf32>
    %135 = vector.broadcast %127 : vector<8x1xf32> to vector<8x32xf32>
    %136 = arith.subf %121, %135 : vector<8x32xf32>
    %137 = vector.broadcast %122 : vector<1x32xf32> to vector<8x32xf32>
    %138 = arith.mulf %137, %136 : vector<8x32xf32>
    %139 = math.sqrt %134 : vector<8x1xf32>
    %cst_65 = arith.constant 9.99999997E-7 : f32
    %140 = vector.broadcast %cst_65 : f32 to vector<8x1xf32>
    %141 = arith.addf %139, %140 : vector<8x1xf32>
    %142 = vector.broadcast %141 : vector<8x1xf32> to vector<8x32xf32>
    %143 = arith.divf %138, %142 : vector<8x32xf32>
    %144 = vector.broadcast %123 : vector<1x32xf32> to vector<8x32xf32>
    %145 = arith.addf %143, %144 : vector<8x32xf32>
    %146 = arith.truncf %145 : vector<8x32xf32> to vector<8x32xbf16>
    %c0_66 = arith.constant 0 : index
    %c0_67 = arith.constant 0 : index
    %147 = vector.load %arg12[%c0_66, %c0_67] : memref<32x32xbf16, #tpu.memory_space<vmem>>, vector<32x32xbf16>
    %cst_68 = arith.constant dense<0.000000e+00> : vector<8x32xf32>
    %148 = tpu.matmul %146, %147, %cst_68 {dimension_numbers = #tpu.dot_dimension_numbers<[1], [0], [0], [1], [0, 0, 1, 1], [], []>} : vector<8x32xbf16>, vector<32x32xbf16>, vector<8x32xf32> -> vector<8x32xf32>
    %c0_69 = arith.constant 0 : index
    %c0_70 = arith.constant 0 : index
    %149 = vector.load %arg13[%c0_69, %c0_70] : memref<1x32xf32, #tpu.memory_space<vmem>>, vector<1x32xf32>
    %150 = vector.broadcast %149 : vector<1x32xf32> to vector<8x32xf32>
    %151 = arith.addf %148, %150 : vector<8x32xf32>
    %cst_71 = arith.constant 0.353553385 : f32
    %152 = vector.broadcast %cst_71 : f32 to vector<8x32xf32>
    %153 = arith.mulf %151, %152 : vector<8x32xf32>
    %c0_72 = arith.constant 0 : index
    %c0_73 = arith.constant 0 : index
    %154 = vector.load %arg14[%c0_72, %c0_73] : memref<32x64xbf16, #tpu.memory_space<vmem>>, vector<32x64xbf16>
    %cst_74 = arith.constant dense<0.000000e+00> : vector<10x64xf32>
    %155 = tpu.matmul %10, %154, %cst_74 {dimension_numbers = #tpu.dot_dimension_numbers<[1], [0], [0], [1], [0, 0, 1, 1], [], []>} : vector<10x32xbf16>, vector<32x64xbf16>, vector<10x64xf32> -> vector<10x64xf32>
    %c0_75 = arith.constant 0 : index
    %c0_76 = arith.constant 0 : index
    %156 = vector.load %arg15[%c0_75, %c0_76] : memref<1x64xf32, #tpu.memory_space<vmem>>, vector<1x64xf32>
    %157 = vector.broadcast %156 : vector<1x64xf32> to vector<10x64xf32>
    %158 = arith.addf %155, %157 : vector<10x64xf32>
    %159 = vector.extract_strided_slice %158 {offsets = [0, 0], sizes = [10, 32], strides = [1, 1]} : vector<10x64xf32> to vector<10x32xf32>
    %160 = vector.extract_strided_slice %158 {offsets = [0, 32], sizes = [10, 32], strides = [1, 1]} : vector<10x64xf32> to vector<10x32xf32>
    %161 = arith.truncf %153 : vector<8x32xf32> to vector<8x32xbf16>
    %162 = vector.shape_cast %161 : vector<8x32xbf16> to vector<8x4x8xbf16>
    %163 = tpu.transpose %162, [1, 0, 2] : vector<8x4x8xbf16> -> vector<4x8x8xbf16>
    %164 = arith.truncf %159 : vector<10x32xf32> to vector<10x32xbf16>
    %165 = vector.shape_cast %164 : vector<10x32xbf16> to vector<10x4x8xbf16>
    %166 = tpu.transpose %165, [1, 0, 2] : vector<10x4x8xbf16> -> vector<4x10x8xbf16>
    %167 = arith.truncf %160 : vector<10x32xf32> to vector<10x32xbf16>
    %168 = vector.shape_cast %167 : vector<10x32xbf16> to vector<10x4x8xbf16>
    %169 = tpu.transpose %168, [1, 0, 2] : vector<10x4x8xbf16> -> vector<4x10x8xbf16>
    "tpu.trace_start"() <{level = 10 : i32, message = "hqd,hkd->hqk"}> : () -> ()
    %cst_77 = arith.constant dense<0.000000e+00> : vector<4x8x10xf32>
    %170 = tpu.matmul %163, %166, %cst_77 {dimension_numbers = #tpu.dot_dimension_numbers<[2], [2], [1], [1], [0, 0, 0, 1, 1, 1], [0], [0]>} : vector<4x8x8xbf16>, vector<4x10x8xbf16>, vector<4x8x10xf32> -> vector<4x8x10xf32>
    "tpu.trace_stop"() : () -> ()
    %171 = vector.shape_cast %24 : vector<1x10xf32> to vector<1x1x10xf32>
    %172 = vector.broadcast %171 : vector<1x1x10xf32> to vector<4x8x10xf32>
    %173 = arith.addf %170, %172 : vector<4x8x10xf32>
    %cst_78 = arith.constant dense<0xFF800000> : vector<4x8xf32>
    %174 = vector.multi_reduction <maximumf>, %173, %cst_78 [2] : vector<4x8x10xf32> to vector<4x8xf32>
    %175 = vector.shape_cast %174 : vector<4x8xf32> to vector<4x8x1xf32>
    %176 = vector.broadcast %175 : vector<4x8x1xf32> to vector<4x8x10xf32>
    %177 = arith.subf %173, %176 : vector<4x8x10xf32>
    %178 = math.exp %177 : vector<4x8x10xf32>
    %cst_79 = arith.constant dense<0.000000e+00> : vector<4x8xf32>
    %179 = vector.multi_reduction <add>, %178, %cst_79 [2] : vector<4x8x10xf32> to vector<4x8xf32>
    %180 = vector.shape_cast %179 : vector<4x8xf32> to vector<4x8x1xf32>
    %181 = tpu.reciprocal %180 {approx = true} : vector<4x8x1xf32> -> vector<4x8x1xf32>
    %182 = vector.broadcast %181 : vector<4x8x1xf32> to vector<4x8x10xf32>
    %183 = arith.mulf %178, %182 : vector<4x8x10xf32>
    %184 = arith.truncf %183 : vector<4x8x10xf32> to vector<4x8x10xbf16>
    "tpu.trace_start"() <{level = 10 : i32, message = "hqk,hkd->hqd"}> : () -> ()
    %cst_80 = arith.constant dense<0.000000e+00> : vector<4x8x8xf32>
    %185 = tpu.matmul %184, %169, %cst_80 {dimension_numbers = #tpu.dot_dimension_numbers<[2], [1], [1], [2], [0, 0, 0, 1, 1, 2], [0], [0]>} : vector<4x8x10xbf16>, vector<4x10x8xbf16>, vector<4x8x8xf32> -> vector<4x8x8xf32>
    "tpu.trace_stop"() : () -> ()
    %186 = arith.truncf %185 : vector<4x8x8xf32> to vector<4x8x8xbf16>
    %c0_81 = arith.constant 0 : index
    %c0_82 = arith.constant 0 : index
    %c0_83 = arith.constant 0 : index
    %187 = vector.load %arg16[%c0_81, %c0_82, %c0_83] : memref<4x8x32xbf16, #tpu.memory_space<vmem>>, vector<4x8x32xbf16>
    "tpu.trace_start"() <{level = 10 : i32, message = "hqd,hdo->hqo"}> : () -> ()
    %cst_84 = arith.constant dense<0.000000e+00> : vector<4x8x32xf32>
    %188 = tpu.matmul %186, %187, %cst_84 {dimension_numbers = #tpu.dot_dimension_numbers<[2], [1], [1], [2], [0, 0, 0, 1, 1, 2], [0], [0]>} : vector<4x8x8xbf16>, vector<4x8x32xbf16>, vector<4x8x32xf32> -> vector<4x8x32xf32>
    "tpu.trace_stop"() : () -> ()
    %cst_85 = arith.constant dense<0.000000e+00> : vector<8x32xf32>
    %189 = vector.multi_reduction <add>, %188, %cst_85 [0] : vector<4x8x32xf32> to vector<8x32xf32>
    %c0_86 = arith.constant 0 : index
    %c0_87 = arith.constant 0 : index
    %190 = vector.load %arg17[%c0_86, %c0_87] : memref<1x32xf32, #tpu.memory_space<vmem>>, vector<1x32xf32>
    %191 = vector.broadcast %190 : vector<1x32xf32> to vector<8x32xf32>
    %192 = arith.addf %189, %191 : vector<8x32xf32>
    %193 = arith.addf %121, %192 : vector<8x32xf32>
    %c2 = arith.constant 2 : index
    %c0_88 = arith.constant 0 : index
    %194 = vector.load %arg22[%c2, %c0_88] : memref<3x32xf32, #tpu.memory_space<vmem>>, vector<1x32xf32>
    %c2_89 = arith.constant 2 : index
    %c0_90 = arith.constant 0 : index
    %195 = vector.load %arg23[%c2_89, %c0_90] : memref<3x32xf32, #tpu.memory_space<vmem>>, vector<1x32xf32>
    %cst_91 = arith.constant dense<0.000000e+00> : vector<8xf32>
    %196 = vector.multi_reduction <add>, %193, %cst_91 [1] : vector<8x32xf32> to vector<8xf32>
    %197 = vector.shape_cast %196 : vector<8xf32> to vector<8x1xf32>
    %cst_92 = arith.constant 3.200000e+01 : f32
    %198 = vector.broadcast %cst_92 : f32 to vector<8x1xf32>
    %199 = arith.divf %197, %198 : vector<8x1xf32>
    %200 = vector.broadcast %199 : vector<8x1xf32> to vector<8x32xf32>
    %201 = arith.subf %193, %200 : vector<8x32xf32>
    %202 = arith.mulf %201, %201 : vector<8x32xf32>
    %cst_93 = arith.constant dense<0.000000e+00> : vector<8xf32>
    %203 = vector.multi_reduction <add>, %202, %cst_93 [1] : vector<8x32xf32> to vector<8xf32>
    %204 = vector.shape_cast %203 : vector<8xf32> to vector<8x1xf32>
    %cst_94 = arith.constant 0.0322580636 : f32
    %205 = vector.broadcast %cst_94 : f32 to vector<8x1xf32>
    %206 = arith.mulf %204, %205 : vector<8x1xf32>
    %207 = vector.broadcast %199 : vector<8x1xf32> to vector<8x32xf32>
    %208 = arith.subf %193, %207 : vector<8x32xf32>
    %209 = vector.broadcast %194 : vector<1x32xf32> to vector<8x32xf32>
    %210 = arith.mulf %209, %208 : vector<8x32xf32>
    %211 = math.sqrt %206 : vector<8x1xf32>
    %cst_95 = arith.constant 9.99999997E-7 : f32
    %212 = vector.broadcast %cst_95 : f32 to vector<8x1xf32>
    %213 = arith.addf %211, %212 : vector<8x1xf32>
    %214 = vector.broadcast %213 : vector<8x1xf32> to vector<8x32xf32>
    %215 = arith.divf %210, %214 : vector<8x32xf32>
    %216 = vector.broadcast %195 : vector<1x32xf32> to vector<8x32xf32>
    %217 = arith.addf %215, %216 : vector<8x32xf32>
    %218 = arith.truncf %217 : vector<8x32xf32> to vector<8x32xbf16>
    %c0_96 = arith.constant 0 : index
    %c0_97 = arith.constant 0 : index
    %219 = vector.load %arg18[%c0_96, %c0_97] : memref<32x64xbf16, #tpu.memory_space<vmem>>, vector<32x64xbf16>
    %cst_98 = arith.constant dense<0.000000e+00> : vector<8x64xf32>
    %220 = tpu.matmul %218, %219, %cst_98 {dimension_numbers = #tpu.dot_dimension_numbers<[1], [0], [0], [1], [0, 0, 1, 1], [], []>} : vector<8x32xbf16>, vector<32x64xbf16>, vector<8x64xf32> -> vector<8x64xf32>
    %c0_99 = arith.constant 0 : index
    %c0_100 = arith.constant 0 : index
    %221 = vector.load %arg19[%c0_99, %c0_100] : memref<1x64xf32, #tpu.memory_space<vmem>>, vector<1x64xf32>
    %222 = vector.broadcast %221 : vector<1x64xf32> to vector<8x64xf32>
    %223 = arith.addf %220, %222 : vector<8x64xf32>
    %cst_101 = arith.constant 0.000000e+00 : f32
    %224 = vector.broadcast %cst_101 : f32 to vector<8x64xf32>
    %225 = arith.maximumf %223, %224 : vector<8x64xf32>
    %226 = arith.truncf %225 : vector<8x64xf32> to vector<8x64xbf16>
    %c0_102 = arith.constant 0 : index
    %c0_103 = arith.constant 0 : index
    %227 = vector.load %arg20[%c0_102, %c0_103] : memref<64x32xbf16, #tpu.memory_space<vmem>>, vector<64x32xbf16>
    %cst_104 = arith.constant dense<0.000000e+00> : vector<8x32xf32>
    %228 = tpu.matmul %226, %227, %cst_104 {dimension_numbers = #tpu.dot_dimension_numbers<[1], [0], [0], [1], [0, 0, 1, 1], [], []>} : vector<8x64xbf16>, vector<64x32xbf16>, vector<8x32xf32> -> vector<8x32xf32>
    %229 = arith.addf %193, %228 : vector<8x32xf32>
    %c0_105 = arith.constant 0 : index
    %c0_106 = arith.constant 0 : index
    %230 = vector.load %arg21[%c0_105, %c0_106] : memref<1x32xf32, #tpu.memory_space<vmem>>, vector<1x32xf32>
    %231 = vector.broadcast %230 : vector<1x32xf32> to vector<8x32xf32>
    %232 = arith.addf %229, %231 : vector<8x32xf32>
    %c0_107 = arith.constant 0 : index
    %c0_108 = arith.constant 0 : index
    %c0_109 = arith.constant 0 : index
    %233 = vector.load %arg24[%c0_107, %c0_108, %c0_109] : memref<1x8x32xf32, #tpu.memory_space<vmem>>, vector<1x8x32xf32>
    %234 = vector.shape_cast %233 : vector<1x8x32xf32> to vector<8x32xf32>
    %235 = vector.shape_cast %232 : vector<8x32xf32> to vector<1x8x32xf32>
    tpu.vector_store %arg24[%c0_107, %c0_108, %c0_109], %235 {strides = array<i32>} : memref<1x8x32xf32, #tpu.memory_space<vmem>>, vector<1x8x32xf32>,
    return
  }
  func.func @transform_0(%arg0: i32, %arg1: i32) -> (i32, i32, i32) {
    %c0_i32 = arith.constant 0 : i32
    %c0_i32_0 = arith.constant 0 : i32
    %c0_i32_1 = arith.constant 0 : i32
    return %arg0, %c0_i32, %c0_i32_0 : i32, i32, i32
  }
  func.func @transform_1(%arg0: i32, %arg1: i32) -> (i32, i32, i32) {
    %c0_i32 = arith.constant 0 : i32
    %c0_i32_0 = arith.constant 0 : i32
    %c0_i32_1 = arith.constant 0 : i32
    return %arg0, %c0_i32, %c0_i32_0 : i32, i32, i32
  }
  func.func @transform_2(%arg0: i32, %arg1: i32) -> (i32, i32, i32) {
    %c0_i32 = arith.constant 0 : i32
    %c0_i32_0 = arith.constant 0 : i32
    return %arg0, %arg1, %c0_i32 : i32, i32, i32
  }
  func.func @transform_3(%arg0: i32, %arg1: i32) -> (i32, i32, i32) {
    %c0_i32 = arith.constant 0 : i32
    %c0_i32_0 = arith.constant 0 : i32
    %c0_i32_1 = arith.constant 0 : i32
    return %arg0, %c0_i32, %c0_i32_0 : i32, i32, i32
  }
  func.func @transform_4(%arg0: i32, %arg1: i32) -> (i32, i32) {
    %c0_i32 = arith.constant 0 : i32
    %c0_i32_0 = arith.constant 0 : i32
    %c0_i32_1 = arith.constant 0 : i32
    return %c0_i32, %c0_i32_0 : i32, i32
  }
  func.func @transform_5(%arg0: i32, %arg1: i32) -> (i32, i32) {
    %c0_i32 = arith.constant 0 : i32
    %c0_i32_0 = arith.constant 0 : i32
    %c0_i32_1 = arith.constant 0 : i32
    return %c0_i32, %c0_i32_0 : i32, i32
  }
  func.func @transform_6(%arg0: i32, %arg1: i32) -> (i32, i32) {
    %c0_i32 = arith.constant 0 : i32
    %c0_i32_0 = arith.constant 0 : i32
    %c0_i32_1 = arith.constant 0 : i32
    return %c0_i32, %c0_i32_0 : i32, i32
  }
  func.func @transform_7(%arg0: i32, %arg1: i32) -> (i32, i32) {
    %c0_i32 = arith.constant 0 : i32
    %c0_i32_0 = arith.constant 0 : i32
    %c0_i32_1 = arith.constant 0 : i32
    return %c0_i32, %c0_i32_0 : i32, i32
  }
  func.func @transform_8(%arg0: i32, %arg1: i32) -> (i32, i32, i32) {
    %c0_i32 = arith.constant 0 : i32
    %c0_i32_0 = arith.constant 0 : i32
    %c0_i32_1 = arith.constant 0 : i32
    %c0_i32_2 = arith.constant 0 : i32
    return %c0_i32, %c0_i32_0, %c0_i32_1 : i32, i32, i32
  }
  func.func @transform_9(%arg0: i32, %arg1: i32) -> (i32, i32) {
    %c0_i32 = arith.constant 0 : i32
    %c0_i32_0 = arith.constant 0 : i32
    %c0_i32_1 = arith.constant 0 : i32
    return %c0_i32, %c0_i32_0 : i32, i32
  }
  func.func @transform_10(%arg0: i32, %arg1: i32) -> (i32, i32) {
    %c0_i32 = arith.constant 0 : i32
    %c0_i32_0 = arith.constant 0 : i32
    %c0_i32_1 = arith.constant 0 : i32
    return %c0_i32, %c0_i32_0 : i32, i32
  }
  func.func @transform_11(%arg0: i32, %arg1: i32) -> (i32, i32) {
    %c0_i32 = arith.constant 0 : i32
    %c0_i32_0 = arith.constant 0 : i32
    %c0_i32_1 = arith.constant 0 : i32
    return %c0_i32, %c0_i32_0 : i32, i32
  }
  func.func @transform_12(%arg0: i32, %arg1: i32) -> (i32, i32) {
    %c0_i32 = arith.constant 0 : i32
    %c0_i32_0 = arith.constant 0 : i32
    %c0_i32_1 = arith.constant 0 : i32
    return %c0_i32, %c0_i32_0 : i32, i32
  }
  func.func @transform_13(%arg0: i32, %arg1: i32) -> (i32, i32) {
    %c0_i32 = arith.constant 0 : i32
    %c0_i32_0 = arith.constant 0 : i32
    %c0_i32_1 = arith.constant 0 : i32
    return %c0_i32, %c0_i32_0 : i32, i32
  }
  func.func @transform_14(%arg0: i32, %arg1: i32) -> (i32, i32, i32) {
    %c0_i32 = arith.constant 0 : i32
    %c0_i32_0 = arith.constant 0 : i32
    %c0_i32_1 = arith.constant 0 : i32
    %c0_i32_2 = arith.constant 0 : i32
    return %c0_i32, %c0_i32_0, %c0_i32_1 : i32, i32, i32
  }
  func.func @transform_15(%arg0: i32, %arg1: i32) -> (i32, i32) {
    %c0_i32 = arith.constant 0 : i32
    %c0_i32_0 = arith.constant 0 : i32
    %c0_i32_1 = arith.constant 0 : i32
    return %c0_i32, %c0_i32_0 : i32, i32
  }
  func.func @transform_16(%arg0: i32, %arg1: i32) -> (i32, i32) {
    %c0_i32 = arith.constant 0 : i32
    %c0_i32_0 = arith.constant 0 : i32
    %c0_i32_1 = arith.constant 0 : i32
    return %c0_i32, %c0_i32_0 : i32, i32
  }
  func.func @transform_17(%arg0: i32, %arg1: i32) -> (i32, i32) {
    %c0_i32 = arith.constant 0 : i32
    %c0_i32_0 = arith.constant 0 : i32
    %c0_i32_1 = arith.constant 0 : i32
    return %c0_i32, %c0_i32_0 : i32, i32
  }
  func.func @transform_18(%arg0: i32, %arg1: i32) -> (i32, i32) {
    %c0_i32 = arith.constant 0 : i32
    %c0_i32_0 = arith.constant 0 : i32
    %c0_i32_1 = arith.constant 0 : i32
    return %c0_i32, %c0_i32_0 : i32, i32
  }
  func.func @transform_19(%arg0: i32, %arg1: i32) -> (i32, i32) {
    %c0_i32 = arith.constant 0 : i32
    %c0_i32_0 = arith.constant 0 : i32
    %c0_i32_1 = arith.constant 0 : i32
    return %c0_i32, %c0_i32_0 : i32, i32
  }
  func.func @transform_20(%arg0: i32, %arg1: i32) -> (i32, i32) {
    %c0_i32 = arith.constant 0 : i32
    %c0_i32_0 = arith.constant 0 : i32
    %c0_i32_1 = arith.constant 0 : i32
    return %c0_i32, %c0_i32_0 : i32, i32
  }
  func.func @transform_21(%arg0: i32, %arg1: i32) -> (i32, i32) {
    %c0_i32 = arith.constant 0 : i32
    %c0_i32_0 = arith.constant 0 : i32
    %c0_i32_1 = arith.constant 0 : i32
    return %c0_i32, %c0_i32_0 : i32, i32
  }
  func.func @transform_22(%arg0: i32, %arg1: i32) -> (i32, i32, i32) {
    %c0_i32 = arith.constant 0 : i32
    %c0_i32_0 = arith.constant 0 : i32
    return %arg0, %arg1, %c0_i32 : i32, i32, i32
  }
}

module attributes {stable_mosaic.version = 11 : i64} {
  func.func @_decoder_layer_kernel(%arg0: i32, %arg1: i32, %arg2: memref<1x8x32xbf16, #tpu.memory_space<vmem>>, %arg3: memref<1x10x32xbf16, #tpu.memory_space<vmem>>, %arg4: memref<1x8x8xf32, #tpu.memory_space<vmem>>, %arg5: memref<1x1x10xf32, #tpu.memory_space<vmem>>, %arg6: memref<32x32xbf16, #tpu.memory_space<vmem>>, %arg7: memref<1x32xf32, #tpu.memory_space<vmem>>, %arg8: memref<32x64xbf16, #tpu.memory_space<vmem>>, %arg9: memref<1x64xf32, #tpu.memory_space<vmem>>, %arg10: memref<4x8x32xbf16, #tpu.memory_space<vmem>>, %arg11: memref<1x32xf32, #tpu.memory_space<vmem>>, %arg12: memref<32x32xbf16, #tpu.memory_space<vmem>>, %arg13: memref<1x32xf32, #tpu.memory_space<vmem>>, %arg14: memref<32x64xbf16, #tpu.memory_space<vmem>>, %arg15: memref<1x64xf32, #tpu.memory_space<vmem>>, %arg16: memref<4x8x32xbf16, #tpu.memory_space<vmem>>, %arg17: memref<1x32xf32, #tpu.memory_space<vmem>>, %arg18: memref<32x64xbf16, #tpu.memory_space<vmem>>, %arg19: memref<1x64xf32, #tpu.memory_space<vmem>>, %arg20: memref<64x32xbf16, #tpu.memory_space<vmem>>, %arg21: memref<1x32xf32, #tpu.memory_space<vmem>>, %arg22: memref<3x32xf32, #tpu.memory_space<vmem>>, %arg23: memref<3x32xf32, #tpu.memory_space<vmem>>, %arg24: memref<1x8x32xf32, #tpu.memory_space<vmem>>) attributes {dimension_semantics = [#tpu.dimension_semantics<parallel>, #tpu.dimension_semantics<parallel>], iteration_bounds = array<i64: 2, 1>, scalar_prefetch = 0 : i64, scratch_operands = 0 : i64, tpu.core_type = #tpu.core_type<tc>, window_params = [{transform_indices = @transform_0, window_bounds = array<i64: 1, 8, 32>}, {transform_indices = @transform_1, window_bounds = array<i64: 1, 10, 32>}, {transform_indices = @transform_2, window_bounds = array<i64: 1, 8, 8>}, {transform_indices = @transform_3, window_bounds = array<i64: 1, 1, 10>}, {pipeline_mode = #tpu.pipeline_mode<synchronous>, transform_indices = @transform_4, window_bounds = array<i64: 32, 32>}, {pipeline_mode = #tpu.pipeline_mode<synchronous>, transform_indices = @transform_5, window_bounds = array<i64: 1, 32>}, {pipeline_mode = #tpu.pipeline_mode<synchronous>, transform_indices = @transform_6, window_bounds = array<i64: 32, 64>}, {pipeline_mode = #tpu.pipeline_mode<synchronous>, transform_indices = @transform_7, window_bounds = array<i64: 1, 64>}, {pipeline_mode = #tpu.pipeline_mode<synchronous>, transform_indices = @transform_8, window_bounds = array<i64: 4, 8, 32>}, {pipeline_mode = #tpu.pipeline_mode<synchronous>, transform_indices = @transform_9, window_bounds = array<i64: 1, 32>}, {pipeline_mode = #tpu.pipeline_mode<synchronous>, transform_indices = @transform_10, window_bounds = array<i64: 32, 32>}, {pipeline_mode = #tpu.pipeline_mode<synchronous>, transform_indices = @transform_11, window_bounds = array<i64: 1, 32>}, {pipeline_mode = #tpu.pipeline_mode<synchronous>, transform_indices = @transform_12, window_bounds = array<i64: 32, 64>}, {pipeline_mode = #tpu.pipeline_mode<synchronous>, transform_indices = @transform_13, window_bounds = array<i64: 1, 64>}, {pipeline_mode = #tpu.pipeline_mode<synchronous>, transform_indices = @transform_14, window_bounds = array<i64: 4, 8, 32>}, {pipeline_mode = #tpu.pipeline_mode<synchronous>, transform_indices = @transform_15, window_bounds = array<i64: 1, 32>}, {pipeline_mode = #tpu.pipeline_mode<synchronous>, transform_indices = @transform_16, window_bounds = array<i64: 32, 64>}, {pipeline_mode = #tpu.pipeline_mode<synchronous>, transform_indices = @transform_17, window_bounds = array<i64: 1, 64>}, {pipeline_mode = #tpu.pipeline_mode<synchronous>, transform_indices = @transform_18, window_bounds = array<i64: 64, 32>}, {pipeline_mode = #tpu.pipeline_mode<synchronous>, transform_indices = @transform_19, window_bounds = array<i64: 1, 32>}, {pipeline_mode = #tpu.pipeline_mode<synchronous>, transform_indices = @transform_20, window_bounds = array<i64: 3, 32>}, {pipeline_mode = #tpu.pipeline_mode<synchronous>, transform_indices = @transform_21, window_bounds = array<i64: 3, 32>}, {transform_indices = @transform_22, window_bounds = array<i64: 1, 8, 32>}]} {
    %c8_i32 = arith.constant 8 : i32
    %0 = arith.muli %arg1, %c8_i32 : i32
    %1 = tpu.assume_multiple %0, 8 : i32
    %c0 = arith.constant 0 : index
    %c0_0 = arith.constant 0 : index
    %c0_1 = arith.constant 0 : index
    %2 = vector.load %arg2[%c0, %c0_0, %c0_1] : memref<1x8x32xbf16, #tpu.memory_space<vmem>>, vector<1x8x32xbf16>
    %3 = vector.shape_cast %2 : vector<1x8x32xbf16> to vector<8x32xbf16>
    %4 = arith.extf %3 : vector<8x32xbf16> to vector<8x32xf32>
    %c0_2 = arith.constant 0 : index
    %5 = arith.index_cast %1 : i32 to index
    %c0_3 = arith.constant 0 : index
    %6 = vector.load %arg2[%c0_2, %5, %c0_3] : memref<1x8x32xbf16, #tpu.memory_space<vmem>>, vector<1x8x32xbf16>
    %7 = vector.shape_cast %6 : vector<1x8x32xbf16> to vector<8x32xbf16>
    %8 = arith.extf %7 : vector<8x32xbf16> to vector<8x32xf32>
    %c0_4 = arith.constant 0 : index
    %c0_5 = arith.constant 0 : index
    %c0_6 = arith.constant 0 : index
    %9 = vector.load %arg3[%c0_4, %c0_5, %c0_6] : memref<1x10x32xbf16, #tpu.memory_space<vmem>>, vector<1x10x32xbf16>
    %10 = vector.shape_cast %9 : vector<1x10x32xbf16> to vector<10x32xbf16>
    %c0_7 = arith.constant 0 : index
    %c0_8 = arith.constant 0 : index
    %c0_9 = arith.constant 0 : index
    %11 = vector.load %arg4[%c0_7, %c0_8, %c0_9] : memref<1x8x8xf32, #tpu.memory_space<vmem>>, vector<1x8x8xf32>
    %12 = vector.shape_cast %11 : vector<1x8x8xf32> to vector<8x8xf32>
    %cst = arith.constant 0.000000e+00 : f32
    %13 = vector.broadcast %cst : f32 to vector<8x8xf32>
    %14 = arith.cmpf oeq, %12, %13 : vector<8x8xf32>
    %cst_10 = arith.constant -1.000000e+09 : f32
    %cst_11 = arith.constant 0.000000e+00 : f32
    %15 = vector.broadcast %cst_10 : f32 to vector<8x8xf32>
    %16 = vector.broadcast %cst_11 : f32 to vector<8x8xf32>
    %17 = arith.select %14, %15, %16 : vector<8x8xi1>, vector<8x8xf32>
    %c0_12 = arith.constant 0 : index
    %c0_13 = arith.constant 0 : index
    %c0_14 = arith.constant 0 : index
    %18 = vector.load %arg5[%c0_12, %c0_13, %c0_14] : memref<1x1x10xf32, #tpu.memory_space<vmem>>, vector<1x1x10xf32>
    %19 = vector.shape_cast %18 : vector<1x1x10xf32> to vector<1x10xf32>
    %cst_15 = arith.constant 0.000000e+00 : f32
    %20 = vector.broadcast %cst_15 : f32 to vector<1x10xf32>
    %21 = arith.cmpf oeq, %19, %20 : vector<1x10xf32>
    %cst_16 = arith.constant -1.000000e+09 : f32
    %cst_17 = arith.constant 0.000000e+00 : f32
    %22 = vector.broadcast %cst_16 : f32 to vector<1x10xf32>
    %23 = vector.broadcast %cst_17 : f32 to vector<1x10xf32>
    %24 = arith.select %21, %22, %23 : vector<1x10xi1>, vector<1x10xf32>
    %c0_18 = arith.constant 0 : index
    %c0_19 = arith.constant 0 : index
    %25 = vector.load %arg22[%c0_18, %c0_19] : memref<3x32xf32, #tpu.memory_space<vmem>>, vector<1x32xf32>
    %c0_20 = arith.constant 0 : index
    %c0_21 = arith.constant 0 : index
    %26 = vector.load %arg23[%c0_20, %c0_21] : memref<3x32xf32, #tpu.memory_space<vmem>>, vector<1x32xf32>
    %cst_22 = arith.constant dense<0.000000e+00> : vector<8xf32>
    %27 = vector.multi_reduction <add>, %4, %cst_22 [1] : vector<8x32xf32> to vector<8xf32>
    %28 = vector.shape_cast %27 : vector<8xf32> to vector<8x1xf32>
    %cst_23 = arith.constant 3.200000e+01 : f32
    %29 = vector.broadcast %cst_23 : f32 to vector<8x1xf32>
    %30 = arith.divf %28, %29 : vector<8x1xf32>
    %31 = vector.broadcast %30 : vector<8x1xf32> to vector<8x32xf32>
    %32 = arith.subf %4, %31 : vector<8x32xf32>
    %33 = arith.mulf %32, %32 : vector<8x32xf32>
    %cst_24 = arith.constant dense<0.000000e+00> : vector<8xf32>
    %34 = vector.multi_reduction <add>, %33, %cst_24 [1] : vector<8x32xf32> to vector<8xf32>
    %35 = vector.shape_cast %34 : vector<8xf32> to vector<8x1xf32>
    %cst_25 = arith.constant 0.0322580636 : f32
    %36 = vector.broadcast %cst_25 : f32 to vector<8x1xf32>
    %37 = arith.mulf %35, %36 : vector<8x1xf32>
    %38 = vector.broadcast %30 : vector<8x1xf32> to vector<8x32xf32>
    %39 = arith.subf %4, %38 : vector<8x32xf32>
    %40 = vector.broadcast %25 : vector<1x32xf32> to vector<8x32xf32>
    %41 = arith.mulf %40, %39 : vector<8x32xf32>
    %42 = math.sqrt %37 : vector<8x1xf32>
    %cst_26 = arith.constant 9.99999997E-7 : f32
    %43 = vector.broadcast %cst_26 : f32 to vector<8x1xf32>
    %44 = arith.addf %42, %43 : vector<8x1xf32>
    %45 = vector.broadcast %44 : vector<8x1xf32> to vector<8x32xf32>
    %46 = arith.divf %41, %45 : vector<8x32xf32>
    %47 = vector.broadcast %26 : vector<1x32xf32> to vector<8x32xf32>
    %48 = arith.addf %46, %47 : vector<8x32xf32>
    %49 = arith.truncf %48 : vector<8x32xf32> to vector<8x32xbf16>
    %c0_27 = arith.constant 0 : index
    %c0_28 = arith.constant 0 : index
    %50 = vector.load %arg22[%c0_27, %c0_28] : memref<3x32xf32, #tpu.memory_space<vmem>>, vector<1x32xf32>
    %c0_29 = arith.constant 0 : index
    %c0_30 = arith.constant 0 : index
    %51 = vector.load %arg23[%c0_29, %c0_30] : memref<3x32xf32, #tpu.memory_space<vmem>>, vector<1x32xf32>
    %cst_31 = arith.constant dense<0.000000e+00> : vector<8xf32>
    %52 = vector.multi_reduction <add>, %8, %cst_31 [1] : vector<8x32xf32> to vector<8xf32>
    %53 = vector.shape_cast %52 : vector<8xf32> to vector<8x1xf32>
    %cst_32 = arith.constant 3.200000e+01 : f32
    %54 = vector.broadcast %cst_32 : f32 to vector<8x1xf32>
    %55 = arith.divf %53, %54 : vector<8x1xf32>
    %56 = vector.broadcast %55 : vector<8x1xf32> to vector<8x32xf32>
    %57 = arith.subf %8, %56 : vector<8x32xf32>
    %58 = arith.mulf %57, %57 : vector<8x32xf32>
    %cst_33 = arith.constant dense<0.000000e+00> : vector<8xf32>
    %59 = vector.multi_reduction <add>, %58, %cst_33 [1] : vector<8x32xf32> to vector<8xf32>
    %60 = vector.shape_cast %59 : vector<8xf32> to vector<8x1xf32>
    %cst_34 = arith.constant 0.0322580636 : f32
    %61 = vector.broadcast %cst_34 : f32 to vector<8x1xf32>
    %62 = arith.mulf %60, %61 : vector<8x1xf32>
    %63 = vector.broadcast %55 : vector<8x1xf32> to vector<8x32xf32>
    %64 = arith.subf %8, %63 : vector<8x32xf32>
    %65 = vector.broadcast %50 : vector<1x32xf32> to vector<8x32xf32>
    %66 = arith.mulf %65, %64 : vector<8x32xf32>
    %67 = math.sqrt %62 : vector<8x1xf32>
    %cst_35 = arith.constant 9.99999997E-7 : f32
    %68 = vector.broadcast %cst_35 : f32 to vector<8x1xf32>
    %69 = arith.addf %67, %68 : vector<8x1xf32>
    %70 = vector.broadcast %69 : vector<8x1xf32> to vector<8x32xf32>
    %71 = arith.divf %66, %70 : vector<8x32xf32>
    %72 = vector.broadcast %51 : vector<1x32xf32> to vector<8x32xf32>
    %73 = arith.addf %71, %72 : vector<8x32xf32>
    %74 = arith.truncf %73 : vector<8x32xf32> to vector<8x32xbf16>
    %c0_36 = arith.constant 0 : index
    %c0_37 = arith.constant 0 : index
    %75 = vector.load %arg6[%c0_36, %c0_37] : memref<32x32xbf16, #tpu.memory_space<vmem>>, vector<32x32xbf16>
    %cst_38 = arith.constant dense<0.000000e+00> : vector<8x32xf32>
    %76 = tpu.matmul %74, %75, %cst_38 {dimension_numbers = #tpu.dot_dimension_numbers<[1], [0], [0], [1], [0, 0, 1, 1], [], []>} : vector<8x32xbf16>, vector<32x32xbf16>, vector<8x32xf32> -> vector<8x32xf32>
    %c0_39 = arith.constant 0 : index
    %c0_40 = arith.constant 0 : index
    %77 = vector.load %arg7[%c0_39, %c0_40] : memref<1x32xf32, #tpu.memory_space<vmem>>, vector<1x32xf32>
    %78 = vector.broadcast %77 : vector<1x32xf32> to vector<8x32xf32>
    %79 = arith.addf %76, %78 : vector<8x32xf32>
    %cst_41 = arith.constant 0.353553385 : f32
    %80 = vector.broadcast %cst_41 : f32 to vector<8x32xf32>
    %81 = arith.mulf %79, %80 : vector<8x32xf32>
    %c0_42 = arith.constant 0 : index
    %c0_43 = arith.constant 0 : index
    %82 = vector.load %arg8[%c0_42, %c0_43] : memref<32x64xbf16, #tpu.memory_space<vmem>>, vector<32x64xbf16>
    %cst_44 = arith.constant dense<0.000000e+00> : vector<8x64xf32>
    %83 = tpu.matmul %49, %82, %cst_44 {dimension_numbers = #tpu.dot_dimension_numbers<[1], [0], [0], [1], [0, 0, 1, 1], [], []>} : vector<8x32xbf16>, vector<32x64xbf16>, vector<8x64xf32> -> vector<8x64xf32>
    %c0_45 = arith.constant 0 : index
    %c0_46 = arith.constant 0 : index
    %84 = vector.load %arg9[%c0_45, %c0_46] : memref<1x64xf32, #tpu.memory_space<vmem>>, vector<1x64xf32>
    %85 = vector.broadcast %84 : vector<1x64xf32> to vector<8x64xf32>
    %86 = arith.addf %83, %85 : vector<8x64xf32>
    %87 = vector.extract_strided_slice %86 {offsets = [0, 0], sizes = [8, 32], strides = [1, 1]} : vector<8x64xf32> to vector<8x32xf32>
    %88 = vector.extract_strided_slice %86 {offsets = [0, 32], sizes = [8, 32], strides = [1, 1]} : vector<8x64xf32> to vector<8x32xf32>
    %89 = arith.truncf %81 : vector<8x32xf32> to vector<8x32xbf16>
    %90 = vector.shape_cast %89 : vector<8x32xbf16> to vector<8x4x8xbf16>
    %91 = tpu.transpose %90, [1, 0, 2] : vector<8x4x8xbf16> -> vector<4x8x8xbf16>
    %92 = arith.truncf %87 : vector<8x32xf32> to vector<8x32xbf16>
    %93 = vector.shape_cast %92 : vector<8x32xbf16> to vector<8x4x8xbf16>
    %94 = tpu.transpose %93, [1, 0, 2] : vector<8x4x8xbf16> -> vector<4x8x8xbf16>
    %95 = arith.truncf %88 : vector<8x32xf32> to vector<8x32xbf16>
    %96 = vector.shape_cast %95 : vector<8x32xbf16> to vector<8x4x8xbf16>
    %97 = tpu.transpose %96, [1, 0, 2] : vector<8x4x8xbf16> -> vector<4x8x8xbf16>
    "tpu.trace_start"() <{level = 10 : i32, message = "hqd,hkd->hqk"}> : () -> ()
    %cst_47 = arith.constant dense<0.000000e+00> : vector<4x8x8xf32>
    %98 = tpu.matmul %91, %94, %cst_47 {dimension_numbers = #tpu.dot_dimension_numbers<[2], [2], [1], [1], [0, 0, 0, 1, 1, 1], [0], [0]>} : vector<4x8x8xbf16>, vector<4x8x8xbf16>, vector<4x8x8xf32> -> vector<4x8x8xf32>
    "tpu.trace_stop"() : () -> ()
    %99 = vector.shape_cast %17 : vector<8x8xf32> to vector<1x8x8xf32>
    %100 = vector.broadcast %99 : vector<1x8x8xf32> to vector<4x8x8xf32>
    %101 = arith.addf %98, %100 : vector<4x8x8xf32>
    %cst_48 = arith.constant dense<0xFF800000> : vector<4x8xf32>
    %102 = vector.multi_reduction <maximumf>, %101, %cst_48 [2] : vector<4x8x8xf32> to vector<4x8xf32>
    %103 = vector.shape_cast %102 : vector<4x8xf32> to vector<4x8x1xf32>
    %104 = vector.broadcast %103 : vector<4x8x1xf32> to vector<4x8x8xf32>
    %105 = arith.subf %101, %104 : vector<4x8x8xf32>
    %106 = math.exp %105 : vector<4x8x8xf32>
    %cst_49 = arith.constant dense<0.000000e+00> : vector<4x8xf32>
    %107 = vector.multi_reduction <add>, %106, %cst_49 [2] : vector<4x8x8xf32> to vector<4x8xf32>
    %108 = vector.shape_cast %107 : vector<4x8xf32> to vector<4x8x1xf32>
    %109 = tpu.reciprocal %108 {approx = true} : vector<4x8x1xf32> -> vector<4x8x1xf32>
    %110 = vector.broadcast %109 : vector<4x8x1xf32> to vector<4x8x8xf32>
    %111 = arith.mulf %106, %110 : vector<4x8x8xf32>
    %112 = arith.truncf %111 : vector<4x8x8xf32> to vector<4x8x8xbf16>
    "tpu.trace_start"() <{level = 10 : i32, message = "hqk,hkd->hqd"}> : () -> ()
    %cst_50 = arith.constant dense<0.000000e+00> : vector<4x8x8xf32>
    %113 = tpu.matmul %112, %97, %cst_50 {dimension_numbers = #tpu.dot_dimension_numbers<[2], [1], [1], [2], [0, 0, 0, 1, 1, 2], [0], [0]>} : vector<4x8x8xbf16>, vector<4x8x8xbf16>, vector<4x8x8xf32> -> vector<4x8x8xf32>
    "tpu.trace_stop"() : () -> ()
    %114 = arith.truncf %113 : vector<4x8x8xf32> to vector<4x8x8xbf16>
    %c0_51 = arith.constant 0 : index
    %c0_52 = arith.constant 0 : index
    %c0_53 = arith.constant 0 : index
    %115 = vector.load %arg10[%c0_51, %c0_52, %c0_53] : memref<4x8x32xbf16, #tpu.memory_space<vmem>>, vector<4x8x32xbf16>
    "tpu.trace_start"() <{level = 10 : i32, message = "hqd,hdo->hqo"}> : () -> ()
    %cst_54 = arith.constant dense<0.000000e+00> : vector<4x8x32xf32>
    %116 = tpu.matmul %114, %115, %cst_54 {dimension_numbers = #tpu.dot_dimension_numbers<[2], [1], [1], [2], [0, 0, 0, 1, 1, 2], [0], [0]>} : vector<4x8x8xbf16>, vector<4x8x32xbf16>, vector<4x8x32xf32> -> vector<4x8x32xf32>
    "tpu.trace_stop"() : () -> ()
    %cst_55 = arith.constant dense<0.000000e+00> : vector<8x32xf32>
    %117 = vector.multi_reduction <add>, %116, %cst_55 [0] : vector<4x8x32xf32> to vector<8x32xf32>
    %c0_56 = arith.constant 0 : index
    %c0_57 = arith.constant 0 : index
    %118 = vector.load %arg11[%c0_56, %c0_57] : memref<1x32xf32, #tpu.memory_space<vmem>>, vector<1x32xf32>
    %119 = vector.broadcast %118 : vector<1x32xf32> to vector<8x32xf32>
    %120 = arith.addf %117, %119 : vector<8x32xf32>
    %121 = arith.addf %8, %120 : vector<8x32xf32>
    %c1 = arith.constant 1 : index
    %c0_58 = arith.constant 0 : index
    %122 = vector.load %arg22[%c1, %c0_58] : memref<3x32xf32, #tpu.memory_space<vmem>>, vector<1x32xf32>
    %c1_59 = arith.constant 1 : index
    %c0_60 = arith.constant 0 : index
    %123 = vector.load %arg23[%c1_59, %c0_60] : memref<3x32xf32, #tpu.memory_space<vmem>>, vector<1x32xf32>
    %cst_61 = arith.constant dense<0.000000e+00> : vector<8xf32>
    %124 = vector.multi_reduction <add>, %121, %cst_61 [1] : vector<8x32xf32> to vector<8xf32>
    %125 = vector.shape_cast %124 : vector<8xf32> to vector<8x1xf32>
    %cst_62 = arith.constant 3.200000e+01 : f32
    %126 = vector.broadcast %cst_62 : f32 to vector<8x1xf32>
    %127 = arith.divf %125, %126 : vector<8x1xf32>
    %128 = vector.broadcast %127 : vector<8x1xf32> to vector<8x32xf32>
    %129 = arith.subf %121, %128 : vector<8x32xf32>
    %130 = arith.mulf %129, %129 : vector<8x32xf32>
    %cst_63 = arith.constant dense<0.000000e+00> : vector<8xf32>
    %131 = vector.multi_reduction <add>, %130, %cst_63 [1] : vector<8x32xf32> to vector<8xf32>
    %132 = vector.shape_cast %131 : vector<8xf32> to vector<8x1xf32>
    %cst_64 = arith.constant 0.0322580636 : f32
    %133 = vector.broadcast %cst_64 : f32 to vector<8x1xf32>
    %134 = arith.mulf %132, %133 : vector<8x1xf32>
    %135 = vector.broadcast %127 : vector<8x1xf32> to vector<8x32xf32>
    %136 = arith.subf %121, %135 : vector<8x32xf32>
    %137 = vector.broadcast %122 : vector<1x32xf32> to vector<8x32xf32>
    %138 = arith.mulf %137, %136 : vector<8x32xf32>
    %139 = math.sqrt %134 : vector<8x1xf32>
    %cst_65 = arith.constant 9.99999997E-7 : f32
    %140 = vector.broadcast %cst_65 : f32 to vector<8x1xf32>
    %141 = arith.addf %139, %140 : vector<8x1xf32>
    %142 = vector.broadcast %141 : vector<8x1xf32> to vector<8x32xf32>
    %143 = arith.divf %138, %142 : vector<8x32xf32>
    %144 = vector.broadcast %123 : vector<1x32xf32> to vector<8x32xf32>
    %145 = arith.addf %143, %144 : vector<8x32xf32>
    %146 = arith.truncf %145 : vector<8x32xf32> to vector<8x32xbf16>
    %c0_66 = arith.constant 0 : index
    %c0_67 = arith.constant 0 : index
    %147 = vector.load %arg12[%c0_66, %c0_67] : memref<32x32xbf16, #tpu.memory_space<vmem>>, vector<32x32xbf16>
    %cst_68 = arith.constant dense<0.000000e+00> : vector<8x32xf32>
    %148 = tpu.matmul %146, %147, %cst_68 {dimension_numbers = #tpu.dot_dimension_numbers<[1], [0], [0], [1], [0, 0, 1, 1], [], []>} : vector<8x32xbf16>, vector<32x32xbf16>, vector<8x32xf32> -> vector<8x32xf32>
    %c0_69 = arith.constant 0 : index
    %c0_70 = arith.constant 0 : index
    %149 = vector.load %arg13[%c0_69, %c0_70] : memref<1x32xf32, #tpu.memory_space<vmem>>, vector<1x32xf32>
    %150 = vector.broadcast %149 : vector<1x32xf32> to vector<8x32xf32>
    %151 = arith.addf %148, %150 : vector<8x32xf32>
    %cst_71 = arith.constant 0.353553385 : f32
    %152 = vector.broadcast %cst_71 : f32 to vector<8x32xf32>
    %153 = arith.mulf %151, %152 : vector<8x32xf32>
    %c0_72 = arith.constant 0 : index
    %c0_73 = arith.constant 0 : index
    %154 = vector.load %arg14[%c0_72, %c0_73] : memref<32x64xbf16, #tpu.memory_space<vmem>>, vector<32x64xbf16>
    %cst_74 = arith.constant dense<0.000000e+00> : vector<10x64xf32>
    %155 = tpu.matmul %10, %154, %cst_74 {dimension_numbers = #tpu.dot_dimension_numbers<[1], [0], [0], [1], [0, 0, 1, 1], [], []>} : vector<10x32xbf16>, vector<32x64xbf16>, vector<10x64xf32> -> vector<10x64xf32>
    %c0_75 = arith.constant 0 : index
    %c0_76 = arith.constant 0 : index
    %156 = vector.load %arg15[%c0_75, %c0_76] : memref<1x64xf32, #tpu.memory_space<vmem>>, vector<1x64xf32>
    %157 = vector.broadcast %156 : vector<1x64xf32> to vector<10x64xf32>
    %158 = arith.addf %155, %157 : vector<10x64xf32>
    %159 = vector.extract_strided_slice %158 {offsets = [0, 0], sizes = [10, 32], strides = [1, 1]} : vector<10x64xf32> to vector<10x32xf32>
    %160 = vector.extract_strided_slice %158 {offsets = [0, 32], sizes = [10, 32], strides = [1, 1]} : vector<10x64xf32> to vector<10x32xf32>
    %161 = arith.truncf %153 : vector<8x32xf32> to vector<8x32xbf16>
    %162 = vector.shape_cast %161 : vector<8x32xbf16> to vector<8x4x8xbf16>
    %163 = tpu.transpose %162, [1, 0, 2] : vector<8x4x8xbf16> -> vector<4x8x8xbf16>
    %164 = arith.truncf %159 : vector<10x32xf32> to vector<10x32xbf16>
    %165 = vector.shape_cast %164 : vector<10x32xbf16> to vector<10x4x8xbf16>
    %166 = tpu.transpose %165, [1, 0, 2] : vector<10x4x8xbf16> -> vector<4x10x8xbf16>
    %167 = arith.truncf %160 : vector<10x32xf32> to vector<10x32xbf16>
    %168 = vector.shape_cast %167 : vector<10x32xbf16> to vector<10x4x8xbf16>
    %169 = tpu.transpose %168, [1, 0, 2] : vector<10x4x8xbf16> -> vector<4x10x8xbf16>
    "tpu.trace_start"() <{level = 10 : i32, message = "hqd,hkd->hqk"}> : () -> ()
    %cst_77 = arith.constant dense<0.000000e+00> : vector<4x8x10xf32>
    %170 = tpu.matmul %163, %166, %cst_77 {dimension_numbers = #tpu.dot_dimension_numbers<[2], [2], [1], [1], [0, 0, 0, 1, 1, 1], [0], [0]>} : vector<4x8x8xbf16>, vector<4x10x8xbf16>, vector<4x8x10xf32> -> vector<4x8x10xf32>
    "tpu.trace_stop"() : () -> ()
    %171 = vector.shape_cast %24 : vector<1x10xf32> to vector<1x1x10xf32>
    %172 = vector.broadcast %171 : vector<1x1x10xf32> to vector<4x8x10xf32>
    %173 = arith.addf %170, %172 : vector<4x8x10xf32>
    %cst_78 = arith.constant dense<0xFF800000> : vector<4x8xf32>
    %174 = vector.multi_reduction <maximumf>, %173, %cst_78 [2] : vector<4x8x10xf32> to vector<4x8xf32>
    %175 = vector.shape_cast %174 : vector<4x8xf32> to vector<4x8x1xf32>
    %176 = vector.broadcast %175 : vector<4x8x1xf32> to vector<4x8x10xf32>
    %177 = arith.subf %173, %176 : vector<4x8x10xf32>
    %178 = math.exp %177 : vector<4x8x10xf32>
    %cst_79 = arith.constant dense<0.000000e+00> : vector<4x8xf32>
    %179 = vector.multi_reduction <add>, %178, %cst_79 [2] : vector<4x8x10xf32> to vector<4x8xf32>
    %180 = vector.shape_cast %179 : vector<4x8xf32> to vector<4x8x1xf32>
    %181 = tpu.reciprocal %180 {approx = true} : vector<4x8x1xf32> -> vector<4x8x1xf32>
    %182 = vector.broadcast %181 : vector<4x8x1xf32> to vector<4x8x10xf32>
    %183 = arith.mulf %178, %182 : vector<4x8x10xf32>
    %184 = arith.truncf %183 : vector<4x8x10xf32> to vector<4x8x10xbf16>
    "tpu.trace_start"() <{level = 10 : i32, message = "hqk,hkd->hqd"}> : () -> ()
    %cst_80 = arith.constant dense<0.000000e+00> : vector<4x8x8xf32>
    %185 = tpu.matmul %184, %169, %cst_80 {dimension_numbers = #tpu.dot_dimension_numbers<[2], [1], [1], [2], [0, 0, 0, 1, 1, 2], [0], [0]>} : vector<4x8x10xbf16>, vector<4x10x8xbf16>, vector<4x8x8xf32> -> vector<4x8x8xf32>
    "tpu.trace_stop"() : () -> ()
    %186 = arith.truncf %185 : vector<4x8x8xf32> to vector<4x8x8xbf16>
    %c0_81 = arith.constant 0 : index
    %c0_82 = arith.constant 0 : index
    %c0_83 = arith.constant 0 : index
    %187 = vector.load %arg16[%c0_81, %c0_82, %c0_83] : memref<4x8x32xbf16, #tpu.memory_space<vmem>>, vector<4x8x32xbf16>
    "tpu.trace_start"() <{level = 10 : i32, message = "hqd,hdo->hqo"}> : () -> ()
    %cst_84 = arith.constant dense<0.000000e+00> : vector<4x8x32xf32>
    %188 = tpu.matmul %186, %187, %cst_84 {dimension_numbers = #tpu.dot_dimension_numbers<[2], [1], [1], [2], [0, 0, 0, 1, 1, 2], [0], [0]>} : vector<4x8x8xbf16>, vector<4x8x32xbf16>, vector<4x8x32xf32> -> vector<4x8x32xf32>
    "tpu.trace_stop"() : () -> ()
    %cst_85 = arith.constant dense<0.000000e+00> : vector<8x32xf32>
    %189 = vector.multi_reduction <add>, %188, %cst_85 [0] : vector<4x8x32xf32> to vector<8x32xf32>
    %c0_86 = arith.constant 0 : index
    %c0_87 = arith.constant 0 : index
    %190 = vector.load %arg17[%c0_86, %c0_87] : memref<1x32xf32, #tpu.memory_space<vmem>>, vector<1x32xf32>
    %191 = vector.broadcast %190 : vector<1x32xf32> to vector<8x32xf32>
    %192 = arith.addf %189, %191 : vector<8x32xf32>
    %193 = arith.addf %121, %192 : vector<8x32xf32>
    %c2 = arith.constant 2 : index
    %c0_88 = arith.constant 0 : index
    %194 = vector.load %arg22[%c2, %c0_88] : memref<3x32xf32, #tpu.memory_space<vmem>>, vector<1x32xf32>
    %c2_89 = arith.constant 2 : index
    %c0_90 = arith.constant 0 : index
    %195 = vector.load %arg23[%c2_89, %c0_90] : memref<3x32xf32, #tpu.memory_space<vmem>>, vector<1x32xf32>
    %cst_91 = arith.constant dense<0.000000e+00> : vector<8xf32>
    %196 = vector.multi_reduction <add>, %193, %cst_91 [1] : vector<8x32xf32> to vector<8xf32>
    %197 = vector.shape_cast %196 : vector<8xf32> to vector<8x1xf32>
    %cst_92 = arith.constant 3.200000e+01 : f32
    %198 = vector.broadcast %cst_92 : f32 to vector<8x1xf32>
    %199 = arith.divf %197, %198 : vector<8x1xf32>
    %200 = vector.broadcast %199 : vector<8x1xf32> to vector<8x32xf32>
    %201 = arith.subf %193, %200 : vector<8x32xf32>
    %202 = arith.mulf %201, %201 : vector<8x32xf32>
    %cst_93 = arith.constant dense<0.000000e+00> : vector<8xf32>
    %203 = vector.multi_reduction <add>, %202, %cst_93 [1] : vector<8x32xf32> to vector<8xf32>
    %204 = vector.shape_cast %203 : vector<8xf32> to vector<8x1xf32>
    %cst_94 = arith.constant 0.0322580636 : f32
    %205 = vector.broadcast %cst_94 : f32 to vector<8x1xf32>
    %206 = arith.mulf %204, %205 : vector<8x1xf32>
    %207 = vector.broadcast %199 : vector<8x1xf32> to vector<8x32xf32>
    %208 = arith.subf %193, %207 : vector<8x32xf32>
    %209 = vector.broadcast %194 : vector<1x32xf32> to vector<8x32xf32>
    %210 = arith.mulf %209, %208 : vector<8x32xf32>
    %211 = math.sqrt %206 : vector<8x1xf32>
    %cst_95 = arith.constant 9.99999997E-7 : f32
    %212 = vector.broadcast %cst_95 : f32 to vector<8x1xf32>
    %213 = arith.addf %211, %212 : vector<8x1xf32>
    %214 = vector.broadcast %213 : vector<8x1xf32> to vector<8x32xf32>
    %215 = arith.divf %210, %214 : vector<8x32xf32>
    %216 = vector.broadcast %195 : vector<1x32xf32> to vector<8x32xf32>
    %217 = arith.addf %215, %216 : vector<8x32xf32>
    %218 = arith.truncf %217 : vector<8x32xf32> to vector<8x32xbf16>
    %c0_96 = arith.constant 0 : index
    %c0_97 = arith.constant 0 : index
    %219 = vector.load %arg18[%c0_96, %c0_97] : memref<32x64xbf16, #tpu.memory_space<vmem>>, vector<32x64xbf16>
    %cst_98 = arith.constant dense<0.000000e+00> : vector<8x64xf32>
    %220 = tpu.matmul %218, %219, %cst_98 {dimension_numbers = #tpu.dot_dimension_numbers<[1], [0], [0], [1], [0, 0, 1, 1], [], []>} : vector<8x32xbf16>, vector<32x64xbf16>, vector<8x64xf32> -> vector<8x64xf32>
    %c0_99 = arith.constant 0 : index
    %c0_100 = arith.constant 0 : index
    %221 = vector.load %arg19[%c0_99, %c0_100] : memref<1x64xf32, #tpu.memory_space<vmem>>, vector<1x64xf32>
    %222 = vector.broadcast %221 : vector<1x64xf32> to vector<8x64xf32>
    %223 = arith.addf %220, %222 : vector<8x64xf32>
    %cst_101 = arith.constant 0.000000e+00 : f32
    %224 = vector.broadcast %cst_101 : f32 to vector<8x64xf32>
    %225 = arith.maximumf %223, %224 : vector<8x64xf32>
    %226 = arith.truncf %225 : vector<8x64xf32> to vector<8x64xbf16>
    %c0_102 = arith.constant 0 : index
    %c0_103 = arith.constant 0 : index
    %227 = vector.load %arg20[%c0_102, %c0_103] : memref<64x32xbf16, #tpu.memory_space<vmem>>, vector<64x32xbf16>
    %cst_104 = arith.constant dense<0.000000e+00> : vector<8x32xf32>
    %228 = tpu.matmul %226, %227, %cst_104 {dimension_numbers = #tpu.dot_dimension_numbers<[1], [0], [0], [1], [0, 0, 1, 1], [], []>} : vector<8x64xbf16>, vector<64x32xbf16>, vector<8x32xf32> -> vector<8x32xf32>
    %229 = arith.addf %193, %228 : vector<8x32xf32>
    %c0_105 = arith.constant 0 : index
    %c0_106 = arith.constant 0 : index
    %230 = vector.load %arg21[%c0_105, %c0_106] : memref<1x32xf32, #tpu.memory_space<vmem>>, vector<1x32xf32>
    %231 = vector.broadcast %230 : vector<1x32xf32> to vector<8x32xf32>
    %232 = arith.addf %229, %231 : vector<8x32xf32>
    %c0_107 = arith.constant 0 : index
    %c0_108 = arith.constant 0 : index
    %c0_109 = arith.constant 0 : index
    %233 = vector.load %arg24[%c0_107, %c0_108, %c0_109] : memref<1x8x32xf32, #tpu.memory_space<vmem>>, vector<1x8x32xf32>
    %234 = vector.shape_cast %233 : vector<1x8x32xf32> to vector<8x32xf32>
    %235 = vector.shape_cast %232 : vector<8x32xf32> to vector<1x8x32xf32>
    tpu.vector_store %arg24[%c0_107, %c0_108, %c0_109], %235 {strides = array<i32>} : memref<1x8x32xf32, #tpu.memory_space<vmem>>, vector<1x8x32xf32>,
    return
  }
  func.func @transform_0(%arg0: i32, %arg1: i32) -> (i32, i32, i32) {
    %c0_i32 = arith.constant 0 : i32
    %c0_i32_0 = arith.constant 0 : i32
    %c0_i32_1 = arith.constant 0 : i32
    return %arg0, %c0_i32, %c0_i32_0 : i32, i32, i32
  }
  func.func @transform_1(%arg0: i32, %arg1: i32) -> (i32, i32, i32) {
    %c0_i32 = arith.constant 0 : i32
    %c0_i32_0 = arith.constant 0 : i32
    %c0_i32_1 = arith.constant 0 : i32
    return %arg0, %c0_i32, %c0_i32_0 : i32, i32, i32
  }
  func.func @transform_2(%arg0: i32, %arg1: i32) -> (i32, i32, i32) {
    %c0_i32 = arith.constant 0 : i32
    %c0_i32_0 = arith.constant 0 : i32
    return %arg0, %arg1, %c0_i32 : i32, i32, i32
  }
  func.func @transform_3(%arg0: i32, %arg1: i32) -> (i32, i32, i32) {
    %c0_i32 = arith.constant 0 : i32
    %c0_i32_0 = arith.constant 0 : i32
    %c0_i32_1 = arith.constant 0 : i32
    return %arg0, %c0_i32, %c0_i32_0 : i32, i32, i32
  }
  func.func @transform_4(%arg0: i32, %arg1: i32) -> (i32, i32) {
    %c0_i32 = arith.constant 0 : i32
    %c0_i32_0 = arith.constant 0 : i32
    %c0_i32_1 = arith.constant 0 : i32
    return %c0_i32, %c0_i32_0 : i32, i32
  }
  func.func @transform_5(%arg0: i32, %arg1: i32) -> (i32, i32) {
    %c0_i32 = arith.constant 0 : i32
    %c0_i32_0 = arith.constant 0 : i32
    %c0_i32_1 = arith.constant 0 : i32
    return %c0_i32, %c0_i32_0 : i32, i32
  }
  func.func @transform_6(%arg0: i32, %arg1: i32) -> (i32, i32) {
    %c0_i32 = arith.constant 0 : i32
    %c0_i32_0 = arith.constant 0 : i32
    %c0_i32_1 = arith.constant 0 : i32
    return %c0_i32, %c0_i32_0 : i32, i32
  }
  func.func @transform_7(%arg0: i32, %arg1: i32) -> (i32, i32) {
    %c0_i32 = arith.constant 0 : i32
    %c0_i32_0 = arith.constant 0 : i32
    %c0_i32_1 = arith.constant 0 : i32
    return %c0_i32, %c0_i32_0 : i32, i32
  }
  func.func @transform_8(%arg0: i32, %arg1: i32) -> (i32, i32, i32) {
    %c0_i32 = arith.constant 0 : i32
    %c0_i32_0 = arith.constant 0 : i32
    %c0_i32_1 = arith.constant 0 : i32
    %c0_i32_2 = arith.constant 0 : i32
    return %c0_i32, %c0_i32_0, %c0_i32_1 : i32, i32, i32
  }
  func.func @transform_9(%arg0: i32, %arg1: i32) -> (i32, i32) {
    %c0_i32 = arith.constant 0 : i32
    %c0_i32_0 = arith.constant 0 : i32
    %c0_i32_1 = arith.constant 0 : i32
    return %c0_i32, %c0_i32_0 : i32, i32
  }
  func.func @transform_10(%arg0: i32, %arg1: i32) -> (i32, i32) {
    %c0_i32 = arith.constant 0 : i32
    %c0_i32_0 = arith.constant 0 : i32
    %c0_i32_1 = arith.constant 0 : i32
    return %c0_i32, %c0_i32_0 : i32, i32
  }
  func.func @transform_11(%arg0: i32, %arg1: i32) -> (i32, i32) {
    %c0_i32 = arith.constant 0 : i32
    %c0_i32_0 = arith.constant 0 : i32
    %c0_i32_1 = arith.constant 0 : i32
    return %c0_i32, %c0_i32_0 : i32, i32
  }
  func.func @transform_12(%arg0: i32, %arg1: i32) -> (i32, i32) {
    %c0_i32 = arith.constant 0 : i32
    %c0_i32_0 = arith.constant 0 : i32
    %c0_i32_1 = arith.constant 0 : i32
    return %c0_i32, %c0_i32_0 : i32, i32
  }
  func.func @transform_13(%arg0: i32, %arg1: i32) -> (i32, i32) {
    %c0_i32 = arith.constant 0 : i32
    %c0_i32_0 = arith.constant 0 : i32
    %c0_i32_1 = arith.constant 0 : i32
    return %c0_i32, %c0_i32_0 : i32, i32
  }
  func.func @transform_14(%arg0: i32, %arg1: i32) -> (i32, i32, i32) {
    %c0_i32 = arith.constant 0 : i32
    %c0_i32_0 = arith.constant 0 : i32
    %c0_i32_1 = arith.constant 0 : i32
    %c0_i32_2 = arith.constant 0 : i32
    return %c0_i32, %c0_i32_0, %c0_i32_1 : i32, i32, i32
  }
  func.func @transform_15(%arg0: i32, %arg1: i32) -> (i32, i32) {
    %c0_i32 = arith.constant 0 : i32
    %c0_i32_0 = arith.constant 0 : i32
    %c0_i32_1 = arith.constant 0 : i32
    return %c0_i32, %c0_i32_0 : i32, i32
  }
  func.func @transform_16(%arg0: i32, %arg1: i32) -> (i32, i32) {
    %c0_i32 = arith.constant 0 : i32
    %c0_i32_0 = arith.constant 0 : i32
    %c0_i32_1 = arith.constant 0 : i32
    return %c0_i32, %c0_i32_0 : i32, i32
  }
  func.func @transform_17(%arg0: i32, %arg1: i32) -> (i32, i32) {
    %c0_i32 = arith.constant 0 : i32
    %c0_i32_0 = arith.constant 0 : i32
    %c0_i32_1 = arith.constant 0 : i32
    return %c0_i32, %c0_i32_0 : i32, i32
  }
  func.func @transform_18(%arg0: i32, %arg1: i32) -> (i32, i32) {
    %c0_i32 = arith.constant 0 : i32
    %c0_i32_0 = arith.constant 0 : i32
    %c0_i32_1 = arith.constant 0 : i32
    return %c0_i32, %c0_i32_0 : i32, i32
  }
  func.func @transform_19(%arg0: i32, %arg1: i32) -> (i32, i32) {
    %c0_i32 = arith.constant 0 : i32
    %c0_i32_0 = arith.constant 0 : i32
    %c0_i32_1 = arith.constant 0 : i32
    return %c0_i32, %c0_i32_0 : i32, i32
  }
  func.func @transform_20(%arg0: i32, %arg1: i32) -> (i32, i32) {
    %c0_i32 = arith.constant 0 : i32
    %c0_i32_0 = arith.constant 0 : i32
    %c0_i32_1 = arith.constant 0 : i32
    return %c0_i32, %c0_i32_0 : i32, i32
  }
  func.func @transform_21(%arg0: i32, %arg1: i32) -> (i32, i32) {
    %c0_i32 = arith.constant 0 : i32
    %c0_i32_0 = arith.constant 0 : i32
    %c0_i32_1 = arith.constant 0 : i32
    return %c0_i32, %c0_i32_0 : i32, i32
  }
  func.func @transform_22(%arg0: i32, %arg1: i32) -> (i32, i32, i32) {
    %c0_i32 = arith.constant 0 : i32
    %c0_i32_0 = arith.constant 0 : i32
    return %arg0, %arg1, %c0_i32 : i32, i32, i32
  }
}

</mosaic_0001>

<bundles_post_ra>
// kernel: tpu_custom_call.1
= control target key start
LH: loop header
LB: loop body
LE: loop exit
PB: predicated region body
PF: predicated region fallthrough
CT: control target
= control target key end

     0   :  { %s4905_s0 = inlined_call_operand.hbm [shape: bf16[2,8,32], index: 0, kind: input, shape index: {}]   ;;  %s4906_s1 = inlined_call_operand.vmem [shape: bf16[2,10,32], index: 1, kind: input, shape index: {}]   ;;  %s4907_s2 = inlined_call_operand.vmem [shape: f32[2,8,8], index: 2, kind: input, shape index: {}]   ;;  %s4908_s3 = inlined_call_operand.hbm [shape: f32[2,1,10], index: 3, kind: input, shape index: {}]   ;;  %s4909_s4 = inlined_call_operand.vmem [shape: bf16[32,32], index: 4, kind: input, shape index: {}]   ;;  %s4910_s5 = inlined_call_operand.hbm [shape: f32[1,32], index: 5, kind: input, shape index: {}]   ;;  %s4911_s6 = inlined_call_operand.vmem [shape: bf16[32,64], index: 6, kind: input, shape index: {}]   ;;  %s4912_s7 = inlined_call_operand.hbm [shape: f32[1,64], index: 7, kind: input, shape index: {}]   ;;  %s4913_s8 = inlined_call_operand.vmem [shape: bf16[4,8,32], index: 8, kind: input, shape index: {}]   ;;  %s4914_s9 = inlined_call_operand.hbm [shape: f32[1,32], index: 9, kind: input, shape index: {}]   ;;  %s4915_s10 = inlined_call_operand.hbm [shape: bf16[32,32], index: 10, kind: input, shape index: {}]   ;;  %s4916_s11 = inlined_call_operand.hbm [shape: f32[1,32], index: 11, kind: input, shape index: {}]   ;;  %s4917_s12 = inlined_call_operand.hbm [shape: bf16[32,64], index: 12, kind: input, shape index: {}]   ;;  %s4918_s13 = inlined_call_operand.hbm [shape: f32[1,64], index: 13, kind: input, shape index: {}]   ;;  %s4919_s14 = inlined_call_operand.hbm [shape: bf16[4,8,32], index: 14, kind: input, shape index: {}]   ;;  %s4920_s15 = inlined_call_operand.hbm [shape: f32[1,32], index: 15, kind: input, shape index: {}]   ;;  %s4921_s16 = inlined_call_operand.hbm [shape: bf16[32,64], index: 16, kind: input, shape index: {}]   ;;  %s4922_s17 = inlined_call_operand.vmem [shape: f32[1,64], index: 17, kind: input, shape index: {}]   ;;  %s4923_s18 = inlined_call_operand.vmem [shape: bf16[64,32], index: 18, kind: input, shape index: {}]   ;;  %s4924_s19 = inlined_call_operand.vmem [shape: f32[1,32], index: 19, kind: input, shape index: {}]   ;;  %s4925_s20 = inlined_call_operand.vmem [shape: f32[3,32], index: 20, kind: input, shape index: {}]   ;;  %s4926_s21 = inlined_call_operand.vmem [shape: f32[3,32], index: 21, kind: input, shape index: {}]   ;;  %s4927_s22 = inlined_call_operand.hbm [shape: f32[2,8,32], index: 22, kind: output, shape index: {}]  }
   0x1   :  { %4936 = sst [smem:[#allocation35_spill]] %s4905_s0 }
   0x2   :  { %4937 = sst [smem:[#allocation36_spill]] %s4906_s1 }
   0x3   :  { %4938 = sst [smem:[#allocation37_spill]] %s4907_s2 }
   0x4   :  { %4939 = sst [smem:[#allocation38_spill]] %s4908_s3 }
   0x5   :  { %4940 = sst [smem:[#allocation39_spill]] %s4909_s4 }
   0x6   :  { %4941 = sst [smem:[#allocation40_spill]] %s4910_s5 }
   0x7   :  { %4942 = sst [smem:[#allocation41_spill]] %s4911_s6 }
   0x8   :  { %4943 = sst [smem:[#allocation42_spill]] %s4912_s7 }
   0x9   :  { %4944 = sst [smem:[#allocation43_spill]] %s4913_s8 }
   0xa   :  { %4945 = sst [smem:[#allocation44_spill]] %s4914_s9 }
   0xb   :  { %4946 = sst [smem:[#allocation45_spill]] %s4915_s10 }
   0xc   :  { %4947 = sst [smem:[#allocation46_spill]] %s4916_s11 }
   0xd   :  { %4948 = sst [smem:[#allocation47_spill]] %s4917_s12 }
   0xe   :  { %4949 = sst [smem:[#allocation48_spill]] %s4918_s13 }
   0xf   :  { %4950 = sst [smem:[#allocation49_spill]] %s4919_s14 }
  0x10   :  { %4951 = sst [smem:[#allocation50_spill]] %s4920_s15 }
  0x11   :  { %4952 = sst [smem:[#allocation51_spill]] %s4921_s16 }
  0x12   :  { %4953 = sst [smem:[#allocation52_spill]] %s4922_s17 }
  0x13   :  { %4954 = sst [smem:[#allocation53_spill]] %s4923_s18 }
  0x14   :  { %4955 = sst [smem:[#allocation54_spill]] %s4924_s19 }
  0x15   :  { %4956 = sst [smem:[#allocation55_spill]] %s4926_s21 }
  0x16   :  { %4957 = sst [smem:[#allocation56_spill]] %s4927_s22 }
  0x17   :  { %27 = vsyncpa [#allocation3], 0 }
  0x18   :  { %29 = vsyncpa [#allocation3 + $0x1], 0 }
  0x19   :  { %30 = vsyncpa [#allocation6], 0 }
  0x1a   :  { %32 = vsyncpa [#allocation6 + $0x1], 0 }
  0x1b   :  { %33 = vsyncpa [#allocation9], 0 }
  0x1c   :  { %34 = vsyncpa [#allocation12], 0 }
  0x1d   :  { %35 = vsyncpa [#allocation15], 0 }
  0x1e   :  { %36 = vsyncpa [#allocation18], 0 }
  0x1f   :  { %37 = vsyncpa [#allocation21], 0 }
  0x20   :  { %38 = vsyncpa [#allocation4], 0 }
  0x21   :  { %40 = vsyncpa [#allocation4 + $0x1], 0  ;;  %s4141_s3 = smov 0   ;;  %s4143_s28 = smov 0  }
  0x22   :  { %s4145_s29 = smov 0   ;;  %s4147_s30 = smov 0  }
  0x23   :  { %s4149_s4 = smov 0   ;;  %s4151_s0 = smov 0  }
  0x24 LB: > { %4958 = sst [smem:[#allocation32_spill]] %s3996_s30  ;;  %s4172_s23 = sadd.s32 4294967295, %s4004_s0   ;;  %s4004_s0 = sphi %s4151_s0, %s46_s0   ;;  %s4000_s4 = sphi %s4149_s4, %s4996_s4   ;;  %s3996_s30 = sphi %s4147_s30, %s4995_s30   ;;  %s3992_s29 = sphi %s4145_s29, %s4994_s29   ;;  %s3988_s28 = sphi %s4143_s28, %s4993_s28   ;;  %s3984_s3 = sphi %s4141_s3, %s4992_s3  }
  0x25   : > { %p3152_p0 = scmp.ge.s32.totalorder %s4004_s0, 1  ;;  %p79_p1 = scmp.eq.s32.totalorder %s4172_s23, 0 }
  0x26   : > { %p575_p2 = scmp.lt.s32.totalorder %s4004_s0, 3  ;;  %s4959_s24 = sld [smem:[#allocation40_spill]] }
  0x27   : > { %p3163_p4 = scmp.ge.s32.totalorder %s4004_s0, 2  ;;  %s4006_s26 = smov [#allocation7]  }
  0x28   : > { %p4180_p3 = pnand %p3152_p0, %p575_p2  ;;  %s592_s2 = sshll.u32 %s4006_s26, 4  ;;  %s593_s2 = int_to_ptr.vmem [resolvable:$true] %s592_s2 }
  0x29   : > { %s4961_s7 = sld [smem:[#allocation42_spill]]  ;;  %s4007_s18 = smov [#allocation8]  }
  0x2a   : > { %p3338_p5 = pneg %p4180_p3  ;;  %s4963_s10 = sld [smem:[#allocation45_spill]] }
  0x2b   : > { %s607_s26 = sshll.u32 %s4007_s18, 4  ;;  %s4008_s19 = smov [#allocation11]   ;;  %s608_s26 = int_to_ptr.vmem [resolvable:$true] %s607_s26 }
  0x2c   : > { %s590_s6 = sshll.u32 %s4959_s24, 4  ;;  %p4192_p6 = pnand %p3338_p5, %p79_p1  ;;  %s591_s6 = int_to_ptr.hbm [resolvable:$true] %s590_s6 }
  0x2d   : > { %s633_s27 = sshll.u32 %s4008_s19, 4  ;;  %s4964_s12 = sld [smem:[#allocation47_spill]]  ;;  %s634_s27 = int_to_ptr.vmem [resolvable:$true] %s633_s27 }
  0x2e   : > { %3341 = dma.hbm_to_vmem [thread:$0]  (!%p4192_p6), %s591_s6, 16, %s593_s2, [#allocation6]  }
  0x2f   : > { %s605_s22 = sshll.u32 %s4961_s7, 4  ;;  %s4009_s21 = smov 64   ;;  %s606_s22 = int_to_ptr.hbm [resolvable:$true] %s605_s22 }
  0x30   : > { %s631_s17 = sshll.u32 %s4963_s10, 4  ;;  %s4010_s5 = smov 4   ;;  %s632_s17 = int_to_ptr.hbm [resolvable:$true] %s631_s17 }
  0x31   : > { %3344 = dma.hbm_to_vmem [thread:$0]  (!%p4192_p6), %s606_s22, 16, %s608_s26, [#allocation9]  }
  0x32   : > { %3350 = dma.hbm_to_vmem [thread:$0]  (!%p4192_p6), %s632_s17, 256, %s634_s27, [#allocation12], %s4009_s21, %s4009_s21, %s4010_s5  }
  0x33   : > { %s657_s30 = sshll.u32 %s4964_s12, 4  ;;  %s4011_s18 = smov [#allocation14]   ;;  %s658_s30 = int_to_ptr.hbm [resolvable:$true] %s657_s30 }
  0x34   : > { %s659_s6 = sshll.u32 %s4011_s18, 4  ;;  %s4965_s14 = sld [smem:[#allocation49_spill]]  ;;  %s660_s6 = int_to_ptr.vmem [resolvable:$true] %s659_s6 }
  0x35   : > { %3356 = dma.hbm_to_vmem [thread:$0]  (!%p4192_p6), %s658_s30, 256, %s660_s6, [#allocation15], %s4009_s21, %s4009_s21, %s4010_s5  }
  0x36   : > { %s4966_s9 = sld [smem:[#allocation44_spill]]  ;;  %s4012_s17 = smov [#allocation17]  }
  0x37   : > { %s685_s19 = sshll.u32 %s4012_s17, 4  ;;  %s4013_s27 = smov [#allocation10]   ;;  %s686_s19 = int_to_ptr.vmem [resolvable:$true] %s685_s19 }
  0x38   : > { %s622_s18 = sshll.u32 %s4013_s27, 4  ;;  %s4967_s11 = sld [smem:[#allocation46_spill]]  ;;  %s623_s18 = int_to_ptr.vmem [resolvable:$true] %s622_s18 }
  0x39   : > { %s4968_s13 = sld [smem:[#allocation48_spill]]  ;;  %s4014_s17 = smov [#allocation13]  }
  0x3a   : > { %s683_s24 = sshll.u32 %s4965_s14, 4  ;;  %s4969_s15 = sld [smem:[#allocation50_spill]]  ;;  %s684_s24 = int_to_ptr.hbm [resolvable:$true] %s683_s24 }
  0x3b   : > { %3362 = dma.hbm_to_vmem [thread:$0]  (!%p4192_p6), %s684_s24, 256, %s686_s19, [#allocation18], %s4009_s21, %s4009_s21, %s4010_s5  }
  0x3c   : > { %s620_s26 = sshll.u32 %s4966_s9, 4  ;;  %s648_s9 = sshll.u32 %s4014_s17, 4  ;;  %s621_s26 = int_to_ptr.hbm [resolvable:$true] %s620_s26  ;;  %s649_s9 = int_to_ptr.vmem [resolvable:$true] %s648_s9 }
  0x3d   : > { %3347 = dma.hbm_to_vmem [thread:$0]  (!%p4192_p6), %s621_s26, 16, %s623_s18, [#allocation9]  }
  0x3e   : > { %s646_s30 = sshll.u32 %s4967_s11, 4  ;;  %s4015_s24 = smov [#allocation16]   ;;  %s647_s30 = int_to_ptr.hbm [resolvable:$true] %s646_s30 }
  0x3f   : > { %s672_s8 = sshll.u32 %s4968_s13, 4  ;;  %s674_s19 = sshll.u32 %s4015_s24, 4  ;;  %s673_s8 = int_to_ptr.hbm [resolvable:$true] %s672_s8  ;;  %s675_s19 = int_to_ptr.vmem [resolvable:$true] %s674_s19 }
  0x40   : > { %3353 = dma.hbm_to_vmem [thread:$0]  (!%p4192_p6), %s647_s30, 16, %s649_s9, [#allocation12]  }
  0x41   : > { %s698_s26 = sshll.u32 %s4969_s15, 4  ;;  %s4970_s16 = sld [smem:[#allocation51_spill]]  ;;  %s699_s26 = int_to_ptr.hbm [resolvable:$true] %s698_s26 }
  0x42   : > { %3359 = dma.hbm_to_vmem [thread:$0]  (!%p4192_p6), %s673_s8, 16, %s675_s19, [#allocation15]  }
  0x43   : > { %s4016_s30 = smov [#allocation19]   ;;  %s4017_s7 = smov [#allocation20]  }
  0x44   : > { %s700_s6 = sshll.u32 %s4016_s30, 4  ;;  %s711_s17 = sshll.u32 %s4017_s7, 4  ;;  %s701_s6 = int_to_ptr.vmem [resolvable:$true] %s700_s6  ;;  %s712_s17 = int_to_ptr.vmem [resolvable:$true] %s711_s17 }
  0x45   : > { %3365 = dma.hbm_to_vmem [thread:$0]  (!%p4192_p6), %s699_s26, 16, %s701_s6, [#allocation18]  }
  0x46   : > { %s3151_s8 = sadd.s32 4294967294, %s4004_s0   ;;  %s58_s24 = sadd.s32 1, %s4000_s4 }
  0x47   : > { %s709_s9 = sshll.u32 %s4970_s16, 4  ;;  %p60_p7 = scmp.ge.s32.totalorder %s58_s24, 2  ;;  %s710_s9 = int_to_ptr.hbm [resolvable:$true] %s709_s9 }
  0x48   : > { %3368 = dma.hbm_to_vmem [thread:$0]  (!%p4192_p6), %s710_s9, 256, %s712_s17, [#allocation21], %s4009_s21, %s4009_s21, %s4010_s5  }
  0x49   : > { %s65_s19 = sadd.s32 1, %s3992_s29  ;;  %p72_p8 = scmp.ne.s32.totalorder %s3992_s29, %s3988_s28 }
  0x4a   : > { %p73_p9 = scmp.eq.s32.totalorder %s4004_s0, 0  ;;  %s4998_s24 = smov (%p60_p7, %s58_s24), 0 }
  0x4b   : > { %4971 = sst [smem:[#allocation33_spill]] %s4998_s24  ;;  %p78_p11 = scmp.ne.s32.totalorder %s3988_s28, %s3984_s3 }
  0x4c   : > { %p4260_p10 = por %p73_p9, %p72_p8  ;;  %s62_s1 = ssub.s32 %s4000_s4, %s4998_s24 }
  0x4d   : > { %p562_p12 = scmp.eq.s32.totalorder %s4172_s23, 1  ;;  %p63_p13 = scmp.eq.s32.totalorder %s62_s1, 0 }
  0x4e   : > { %p4271_p0 = por %p79_p1, %p78_p11  ;;  %p568_p5 = scmp.eq.s32.totalorder %s3151_s8, 1 }
  0x4f   : > { %p4275_p2 = por %p562_p12, %p72_p8  ;;  %p3390_p7 = scmp.lt.s32.totalorder %s4004_s0, 2 }
  0x50   : > { %s4280_s2 = scalar_select %p63_p13, %s3992_s29, %s65_s19  }
  0x51   : > { %p4282_p6 = por %p568_p5, %p78_p11  ;;  %s740_s18 = sand.u32 1, %s3992_s29  }
  0x52   : > { %4975 = sst [smem:[#allocation34_spill]] %s4280_s2  ;;  %s3165_s22 = sshll.u32 %s4000_s4, 2 }
  0x53   : > { %s3164_s9 = sshll.u32 %s740_s18, 2  ;;  %s4977_s7 = sld [smem:[#allocation35_spill]] }
  0x54   : > { %s744_s10 = scalar_lea.vmem [#allocation2], %s3164_s9  ;;  %p3370_p8 = pnand %p3390_p7, %p4260_p10 }
  0x55   : > { %s752_s11 = sshll.u32 %s744_s10, 4  ;;  %s777_s8 = sand.u32 1, %s4004_s0   ;;  %s753_s11 = int_to_ptr.vmem [resolvable:$true] %s752_s11 }
  0x56   : > { %s4978_s13 = sld [smem:[#allocation38_spill]]  ;;  %s741_s15 = scalar_lea.sflag [#allocation3], %s740_s18 }
  0x57   : > { %s780_s24 = scalar_lea.vmem [#allocation5], %s740_s18  ;;  %s4302_s10 = sand.u32 (!%p4180_p3), 1, %s3988_s28  }
  0x58   : > { %s787_s2 = sshll.u32 %s780_s24, 4  ;;  %s3167_s12 = sshll.u32 (!%p4180_p3), %s4302_s10, 2  ;;  %s788_s2 = int_to_ptr.vmem [resolvable:$true] %s787_s2 }
  0x59   : > { %s748_s17 = scalar_lea.hbm %s4977_s7, %s3165_s22  ;;  %s778_s22 = scalar_lea.sflag [#allocation6], %s777_s8 }
  0x5a   : > { %s750_s1 = sshll.u32 %s748_s17, 4  ;;  %796 = sbr.rel (%p4180_p3) target bundleno = 3153 (0xc51), region = 108  ;;  %s751_s1 = int_to_ptr.hbm [resolvable:$true] %s750_s1 }
  0x5b   : > { %3372 = dma.hbm_to_vmem [thread:$0]  (!%p3370_p8), %s751_s1, 64, %s753_s11, %s741_s15  }
  0x5c   : > { %s783_s14 = scalar_lea.hbm %s4978_s13, %s4000_s4  ;;  %s799_s13 = scalar_lea.sflag (!%p4180_p3), [#allocation3], %s4302_s10 }
  0x5d   : > { %s785_s16 = sshll.u32 %s783_s14, 4  ;;  %s802_s27 = scalar_lea.vmem (!%p4180_p3), [#allocation2], %s3167_s12  ;;  %s786_s16 = int_to_ptr.hbm [resolvable:$true] %s785_s16 }
  0x5e   : > { %3375 = dma.hbm_to_vmem [thread:$0]  (!%p3370_p8), %s786_s16, 16, %s788_s2, %s778_s22  }
  0x5f   : > { %3947 = dma.done.wait (%p4271_p0), %s799_s13, 64  }
  0x60   : > { %3949 = vsyncadd (%p4271_p0), %s799_s13, 4294967232  ;;  %s808_s11 = sand.u32 1, %s4172_s23   ;;  %s811_s15 = scalar_lea.vmem [#allocation5], %s4302_s10 }
  0x61   : > { %s809_s14 = scalar_lea.sflag [#allocation6], %s808_s11 }
  0x62   : > { %3951 = dma.done.wait (%p4271_p0), %s809_s14, 16  }
  0x63   : > { %3953 = vsyncadd (%p4271_p0), %s809_s14, 4294967280 }
  0x64   : > { %3955 = dma.done.wait (%p79_p1), [#allocation6], 16  }
  0x65   : > { %3957 = vsyncadd (%p79_p1), [#allocation6], 4294967280 }
  0x66   : > { %3959 = dma.done.wait (%p79_p1), [#allocation9], 32  }
  0x67   : > { %3961 = vsyncadd (%p79_p1), [#allocation9], 4294967264 }
  0x68   : > { %3963 = dma.done.wait (%p79_p1), [#allocation12], 272  }
  0x69   : > { %3965 = vsyncadd (%p79_p1), [#allocation12], 4294967024 }
  0x6a   : > { %3967 = dma.done.wait (%p79_p1), [#allocation15], 272  }
  0x6b   : > { %3969 = vsyncadd (%p79_p1), [#allocation15], 4294967024 }
  0x6c   : > { %3971 = dma.done.wait (%p79_p1), [#allocation18], 272  }
  0x6d   : > { %3973 = vsyncadd (%p79_p1), [#allocation18], 4294967024 }
  0x6e   : > { %3975 = dma.done.wait (%p79_p1), [#allocation21], 256  }
  0x6f   : > { %3977 = vsyncadd (%p79_p1), [#allocation21], 4294967040  ;;  %v953_v0 = vld [vmem:[%s802_s27] sm:$0xf]  ;;  %vm971_vm0 = vcmask 261120   ;;  %v4018_v6 = vmov 32.0  }
  0x70   : > { %v954_v1 = vunpack.c.l.bf16 %v953_v0  ;;  %v959_v2 = vld [vmem:[%s802_s27] sm:$0xf]  ;;  %3484 = vrcp.f32 %v4018_v6  ;;  %s4979_s25 = sld [smem:[#allocation41_spill]]  ;;  %s4019_s22 = smov 104   ;;  %vm1167_vm14 = vcmask 1047556   ;;  %vm1503_vm15 = vcmask 64512  }
  0x71   : > { %v4341_v4 = vunpack.c.l.bf16 %v959_v2  ;;  %s4980_s9 = sld [smem:[#allocation39_spill]]  ;;  %v3470_v57 = vld [vmem:[%s4925_s20] ss:$0 sm:$0xff]  ;;  %s4020_s12 = smov 120  }
  0x72   : > { %v972_v3 = vsel %vm971_vm0, %v954_v1, 0.0  ;;  %s4981_s19 = sld [smem:[#allocation55_spill]]  ;;  %s4021_s13 = smov 96  }
  0x73   : > { %973 = vadd.xlane.f32.xlu0 %v972_v3  ;;  %v1022_v5 = vsel %vm971_vm0, %v4341_v4, 0.0  ;;  %s4022_s27 = smov 112   ;;  %s4982_s11 = sld [smem:[#allocation32_spill]] }
  0x74   : > { %s4983_s21 = sld [smem:[#allocation37_spill]]  ;;  %s3178_s17 = sshll.u32 %s4302_s10, 3 }
  0x75   : > { %s4984_s6 = sld [smem:[#allocation43_spill]] }
  0x76   : > { %v3485_v7 = vpop.eup %3484  ;;  %v3281_v23 = vld [vmem:[%s4979_s25 + $0x8] sm:$0xff]  ;;  %v3280_v25 = vld [vmem:[%s4979_s25] sm:$0xff]  ;;  %s4985_s18 = sld [smem:[#allocation36_spill]] }
  0x77   : > { %v976_v8 = vmul.f32 32.0, %v3485_v7  ;;  %vm980_vm1 = vweird.f32 %v3485_v7  ;;  %1129 = vmatpush.bf16.msra.mxu1 %v3281_v23  ;;  %v3279_v35 = vld [vmem:[%s4980_s9 + $0x8] sm:$0xff]  ;;  %v3278_v38 = vld [vmem:[%s4980_s9] sm:$0xff]  ;;  %s4987_s7 = sld [smem:[#allocation52_spill]] }
  0x78   : > { %1092 = vmatpush.bf16.msra.mxu0 %v3279_v35  ;;  %s4989_s24 = sld [smem:[#allocation54_spill]] }
  0x79   : > { %v977_v9 = vsub.f32 1.0, %v976_v8  ;;  %p939_p1 = scmp.lt.s32.totalorder %s4982_s11, 1 }
  0x7b   : > { %1023 = vadd.xlane.f32.xlu0 %v1022_v5  ;;  %v978_v10 = vmul.f32 %v3485_v7, %v977_v9  ;;  %1130 = vmatpush.bf16.msra.mxu1 %v3280_v25  ;;  %s4482_s14 = scalar_select %p939_p1, %s4982_s11, 1 }
  0x7c   : > { %1093 = vmatpush.bf16.msra.mxu0 %v3278_v38 }
  0x7d   : > { %v979_v11 = vadd.f32 %v3485_v7, %v978_v10  ;;  %s3276_s16 = sshll.u32 %s4482_s14, 3 }
  0x7e   : > { %s950_s2 = scalar_lea.vmem %s4983_s21, %s3276_s16  ;;  %s943_s30 = scalar_lea.vmem %s4985_s18, %s3276_s16 }
  0x7f   : > { %v4345_v12 = vsel %vm980_vm1, %v3485_v7, %v979_v11  ;;  %s938_s21 = scalar_lea.vmem [#allocation22], %s3178_s17 }
  0xe6   : > { %v974_v13 = vpop.xlane.xlu0 %973 }
  0xe7   : > { %v982_v14 = vmul.f32 %v4345_v12, %v974_v13 }
  0xe9   : > { %v4348_v15 = vsub.f32 %v954_v1, %v982_v14  ;;  %v3471_v1 = vld [vmem:[%s4981_s19] ss:$0 sm:$0xff] }
  0xeb   : > { %v984_v16 = vmul.f32 %v4348_v15, %v4348_v15  ;;  %v990_v63 = vmul.f32 %v3470_v57, %v4348_v15 }
  0xed   : > { %v985_v17 = vsel %vm971_vm0, %v984_v16, 0.0 }
  0xee   : > { %986 = vadd.xlane.f32.xlu1 %v985_v17  ;;  %v1024_v18 = vpop.xlane.xlu0 %1023 }
  0xef   : > { %v1025_v19 = vmul.f32 %v1024_v18, %v4345_v12 }
  0xf1   : > { %v4355_v20 = vsub.f32 %v4341_v4, %v1025_v19 }
  0xf3   : > { %v1027_v21 = vmul.f32 %v4355_v20, %v4355_v20  ;;  %v1032_v15 = vmul.f32 %v3470_v57, %v4355_v20  ;;  %v3473_v20 = vld [vmem:[#allocation7] ss:$0 sm:$0xff] }
  0xf5   : > { %v1028_v22 = vsel %vm971_vm0, %v1027_v21, 0.0 }
  0xf6   : > { %1029 = vadd.xlane.f32.xlu1 %v1028_v22  ;;  %v3472_v22 = vld [vmem:[#allocation8] ss:$0 sm:$0xff] }
 0x161   : > { %v987_v24 = vpop.xlane.xlu1 %986 }
 0x162   : > { %v988_v26 = vmul.f32 0.032258064, %v987_v24 }
 0x164   : > { %3486 = vrsqrt.f32 %v988_v26  ;;  %vm998_vm2 = vcmp.eq.f32.partialorder %v988_v26, inf  ;;  %v1001_v41 = vand.u32 2147483648, %v988_v26  ;;  %vm1000_vm3 = vcmp.eq.f32.partialorder %v988_v26, 0.0 }
 0x169   : > { %v1030_v27 = vpop.xlane.xlu1 %1029 }
 0x16a   : > { %v3487_v28 = vpop.eup %3486  ;;  %v1031_v29 = vmul.f32 0.032258064, %v1030_v27 }
 0x16b   : > { %v992_v30 = vmul.f32 %v3487_v28, %v988_v26 }
 0x16c   : > { %3488 = vrsqrt.f32 %v1031_v29  ;;  %vm1040_vm4 = vcmp.eq.f32.partialorder %v1031_v29, inf  ;;  %v1043_v49 = vand.u32 2147483648, %v1031_v29  ;;  %vm1042_vm5 = vcmp.eq.f32.partialorder %v1031_v29, 0.0 }
 0x16d   : > { %v993_v31 = vmul.f32 %v3487_v28, %v992_v30 }
 0x16f   : > { %v994_v32 = vmul.f32 0.5, %v993_v31 }
 0x171   : > { %v995_v33 = vsub.f32 1.5, %v994_v32 }
 0x172   : > { %v3489_v34 = vpop.eup %3488 }
 0x173   : > { %v996_v36 = vmul.f32 %v3487_v28, %v995_v33  ;;  %v1034_v37 = vmul.f32 %v3489_v34, %v1031_v29 }
 0x175   : > { %v997_v39 = vmul.f32 %v996_v36, %v988_v26  ;;  %v1035_v40 = vmul.f32 %v3489_v34, %v1034_v37 }
 0x177   : > { %v999_v42 = vsel %vm998_vm2, %v988_v26, %v997_v39  ;;  %v1036_v43 = vmul.f32 0.5, %v1035_v40  ;;  %vm1631_vm2 = vcmask 1043456  }
 0x178   : > { %v1002_v44 = vsel %vm1000_vm3, %v1001_v41, %v999_v42 }
 0x179   : > { %v1037_v45 = vsub.f32 1.5, %v1036_v43  ;;  %v1003_v46 = vadd.f32 1e-06, %v1002_v44  ;;  %v4024_v43 = vmov 1934713408  }
 0x17a   : > { %v1172_v44 = vunpack.c.l.s4 %v4024_v43 }
 0x17b   : > { %v1038_v47 = vmul.f32 %v3489_v34, %v1037_v45  ;;  %3490 = vrcp.f32 %v1003_v46  ;;  %v1015_v56 = vand.u32 2147483648, %v1003_v46  ;;  %v1013_v59 = vand.u32 2147483647, %v1003_v46 }
 0x17c   : > { %vm1009_vm7 = vweird.f32 %v1003_v46  ;;  %v4023_v34 = vmov 1983009808  }
 0x17d   : > { %v1039_v48 = vmul.f32 %v1038_v47, %v1031_v29  ;;  %v1016_v62 = vor.u32 1.1754944e-38, %v1015_v56  ;;  %vm1014_vm9 = vcmp.eq.f32.partialorder %v1013_v59, 8.507059e+37  ;;  %v1158_v35 = vunpack.c.l.s4 %v4023_v34 }
 0x17f   : > { %v1041_v50 = vsel %vm1040_vm4, %v1031_v29, %v1039_v48  ;;  %v4398_v37 = vunpack.c.0.s8 %v1158_v35 }
 0x180   : > { %v1044_v51 = vsel %vm1042_vm5, %v1043_v49, %v1041_v50 }
 0x181   : > { %v3491_v52 = vpop.eup %3490  ;;  %v1045_v53 = vadd.f32 1e-06, %v1044_v51 }
 0x182   : > { %v1005_v54 = vmul.f32 %v3491_v52, %v1003_v46  ;;  %vm1010_vm6 = vweird.f32 %v3491_v52 }
 0x183   : > { %3492 = vrcp.f32 %v1045_v53  ;;  %vm1011_vm8 = vmor %vm1009_vm7, %vm1010_vm6  ;;  %v1057_v7 = vand.u32 2147483648, %v1045_v53  ;;  %v1055_v10 = vand.u32 2147483647, %v1045_v53  ;;  %vm1051_vm11 = vweird.f32 %v1045_v53 }
 0x184   : > { %v1006_v55 = vsub.f32 1.0, %v1005_v54  ;;  %v4410_v54 = vunpack.c.0.s8 %v1172_v44 }
 0x185   : > { %v1058_v14 = vor.u32 1.1754944e-38, %v1057_v7  ;;  %vm1056_vm13 = vcmp.eq.f32.partialorder %v1055_v10, 8.507059e+37 }
 0x186   : > { %v1007_v58 = vmul.f32 %v3491_v52, %v1006_v55 }
 0x188   : > { %v1008_v60 = vadd.f32 %v3491_v52, %v1007_v58 }
 0x189   : > { %v3493_v61 = vpop.eup %3492 }
 0x18a   : > { %v1012_v0 = vsel %vm1011_vm8, %v3491_v52, %v1008_v60  ;;  %v1047_v2 = vmul.f32 %v3493_v61, %v1045_v53  ;;  %vm1052_vm10 = vweird.f32 %v3493_v61 }
 0x18b   : > { %v1017_v3 = vsel %vm1014_vm9, %v1016_v62, %v1012_v0  ;;  %vm1053_vm12 = vmor %vm1051_vm11, %vm1052_vm10  ;;  %vm2537_vm10 = vcmask 80896   ;;  %vm2592_vm11 = vcmask 1044480  }
 0x18c   : > { %v1018_v5 = vmul.f32 %v1017_v3, %v990_v63  ;;  %v1048_v6 = vsub.f32 1.0, %v1047_v2 }
 0x18e   : > { %v1020_v8 = vadd.f32 %v3471_v1, %v1018_v5  ;;  %v1049_v9 = vmul.f32 %v3493_v61, %v1048_v6 }
 0x190   : > { %v1021_v11 = vpack.c.bf16 %v1020_v8, %v1020_v8  ;;  %v1050_v13 = vadd.f32 %v3493_v61, %v1049_v9 }
 0x192   : > { %3199 = vmatmul.msk.bf16.vlgmr.msra.gmra.mxu1 %vm971_vm0, %v1021_v11  ;;  %v1054_v16 = vsel %vm1053_vm12, %v3493_v61, %v1050_v13 }
 0x193   : > { %v1059_v17 = vsel %vm1056_vm13, %v1058_v14, %v1054_v16 }
 0x194   : > { %v1060_v18 = vmul.f32 %v1059_v17, %v1032_v15 }
 0x196   : > { %v1061_v19 = vadd.f32 %v3471_v1, %v1060_v18 }
 0x198   : > { %v1062_v21 = vpack.c.bf16 %v1061_v19, %v1061_v19 }
 0x19a   : > { %3190 = vmatmul.msk.bf16.vlgmr.msra.gmra.mxu0 %vm971_vm0, %v1062_v21 }
 0x20f   : > { %v1132_v23 = vpop.f32.mrf.mxu1 }
 0x210   : > { %v1133_v24 = vadd.f32 %v3472_v22, %v1132_v23 }
 0x212   : > { %v1259_v25 = vpack.c.bf16 %v1133_v24, %v1133_v24 }
 0x214   : > { %1265 = vrot.lane.b32.xlu0 %v1259_v25, %s4019_s22  ;;  %1261 = vrot.lane.b32.xlu2 %v1259_v25, %s4020_s12  ;;  %v1270_v40 = vshrl.u32 %v1259_v25, 16 }
 0x217   : > { %v1095_v26 = vpop.f32.mrf.mxu0  ;;  %v1134_v27 = vpop.f32.mrf.mxu1 }
 0x218   : > { %v1096_v28 = vadd.f32 %v3473_v20, %v1095_v26 }
 0x21a   : > { %v1099_v29 = vmul.f32 0.35355338, %v1096_v28 }
 0x21c   : > { %v4384_v30 = vpack.c.bf16 %v1099_v29, %v1099_v29  ;;  %1381 = vrot.lane.b32.xlu0 %v1259_v25, %s4021_s13  ;;  %1263 = vrot.lane.b32.xlu2 %v1259_v25, %s4022_s27 }
 0x21e   : > { %1138 = vrot.lane.b32.xlu1 %v4384_v30, %s4020_s12  ;;  %v1147_v14 = vshrl.u32 %v4384_v30, 16 }
 0x21f   : > { %v1097_v31 = vpop.f32.mrf.mxu0 }
 0x224   : > { %1140 = vrot.lane.b32.xlu2 %v4384_v30, %s4022_s27 }
 0x22c   : > { %1142 = vrot.lane.b32.xlu2 %v4384_v30, %s4019_s22 }
 0x26e   : > { %v4394_v32 = vpop.permute.xlu2 %1261 }
 0x26f   : > { %v1269_v38 = vpack.i.b16 %v4394_v32, %v1259_v25  ;;  %v1271_v39 = vshrl.u32 %v4394_v32, 16 }
 0x271   : > { %v1272_v41 = vpack.i.b16 %v1271_v39, %v1270_v40  ;;  %v1283_v42 = vperm.slane %v1269_v38, %v4398_v37 }
 0x273   : > { %v1291_v52 = vrot.slane %v1283_v42, 4  ;;  %v1309_v53 = vperm.slane %v1272_v41, %v4398_v37 }
 0x275   : > { %v1317_v61 = vrot.slane %v1309_v53, 4 }
 0x276   : > { %v4396_v33 = vpop.permute.xlu2 %1263 }
 0x277   : > { %v1276_v45 = vshrl.u32 %v4396_v33, 16 }
 0x27e   : > { %v1141_v36 = vpop.permute.xlu2 %1140 }
 0x27f   : > { %v1153_v48 = vshrl.u32 %v1141_v36, 16 }
 0x286   : > { %v1143_v46 = vpop.permute.xlu2 %1142  ;;  %v4404_v47 = vpop.permute.xlu0 %1265 }
 0x287   : > { %v1154_v49 = vshrl.u32 %v1143_v46, 16  ;;  %v1275_v50 = vpack.i.b16 %v4404_v47, %v4396_v33  ;;  %v1277_v51 = vshrl.u32 %v4404_v47, 16  ;;  %v1152_v55 = vpack.i.b16 %v1143_v46, %v1141_v36 }
 0x289   : > { %v1155_v56 = vpack.i.b16 %v1154_v49, %v1153_v48  ;;  %v1278_v57 = vpack.i.b16 %v1277_v51, %v1276_v45  ;;  %v1288_v58 = vperm.slane %v1275_v50, %v4398_v37  ;;  %v1165_v0 = vperm.slane %v1152_v55, %v4398_v37 }
 0x28b   : > { %v1289_v59 = vrot.slane %v1288_v58, 4  ;;  %v1292_v60 = vsel %vm1167_vm14, %v1288_v58, %v1291_v52  ;;  %v1314_v63 = vperm.slane %v1278_v57, %v4398_v37  ;;  %v1192_v1 = vperm.slane %v1155_v56, %v4398_v37 }
 0x28c   : > { %v1300_v62 = vperm.slane %v1292_v60, %v4410_v54  ;;  %v1166_v19 = vrot.slane %v1165_v0, 4 }
 0x28d   : > { %v1290_v2 = vsel %vm1167_vm14, %v1289_v59, %v1283_v42  ;;  %v1315_v6 = vrot.slane %v1314_v63, 4  ;;  %v1318_v7 = vsel %vm1167_vm14, %v1314_v63, %v1317_v61  ;;  %v1193_v21 = vrot.slane %v1192_v1, 4 }
 0x28e   : > { %v1296_v3 = vperm.slane %v1290_v2, %v4410_v54  ;;  %v1303_v5 = vrot.slane %v1300_v62, 4  ;;  %v1326_v8 = vperm.slane %v1318_v7, %v4410_v54 }
 0x28f   : > { %v1316_v11 = vsel %vm1167_vm14, %v1315_v6, %v1309_v53 }
 0x290   : > { %v1301_v9 = vrot.slane %v1296_v3, 4  ;;  %v1304_v10 = vsel %vm1167_vm14, 0, %v1303_v5  ;;  %v1139_v13 = vpop.permute.xlu1 %1138  ;;  %v1322_v15 = vperm.slane %v1316_v11, %v4410_v54  ;;  %v1329_v16 = vrot.slane %v1326_v8, 4 }
 0x291   : > { %v1336_v17 = vrot.slane %v1304_v10, 4  ;;  %v1146_v18 = vpack.i.b16 %v1139_v13, %v4384_v30  ;;  %v1148_v22 = vshrl.u32 %v1139_v13, 16  ;;  %v1331_v29 = vsel %vm1167_vm14, %v1303_v5, %v1296_v3 }
 0x292   : > { %v1302_v23 = vsel %vm1167_vm14, 0, %v1301_v9  ;;  %v1327_v24 = vrot.slane %v1322_v15, 4  ;;  %v1330_v25 = vsel %vm1167_vm14, 0, %v1329_v16  ;;  %v1350_v36 = vsel %vm1167_vm14, %v1329_v16, %v1322_v15 }
 0x293   : > { %v1160_v20 = vperm.slane %v1146_v18, %v4398_v37  ;;  %v1337_v26 = vsel %vm1167_vm14, %v1336_v17, %v1302_v23  ;;  %v1355_v27 = vrot.slane %v1330_v25, 4  ;;  %v1149_v28 = vpack.i.b16 %v1148_v22, %v1147_v14 }
 0x294   : > { %v1341_v31 = vperm.slane %v1337_v26, %v4398_v37  ;;  %v1328_v35 = vsel %vm1167_vm14, 0, %v1327_v24  ;;  %v1335_v43 = vperm.slane %v1331_v29, %v4398_v37  ;;  %v1354_v52 = vperm.slane %v1350_v36, %v4398_v37 }
 0x295   : > { %v1168_v30 = vsel %vm1167_vm14, %v1166_v19, %v1160_v20  ;;  %v1169_v34 = vrot.slane %v1160_v20, 4  ;;  %v1187_v39 = vperm.slane %v1149_v28, %v4398_v37  ;;  %v1356_v41 = vsel %vm1167_vm14, %v1355_v27, %v1328_v35 }
 0x296   : > { %v1174_v38 = vperm.slane %v1168_v30, %v4410_v54  ;;  %v1342_v40 = vrot.slane %v1341_v31, 4  ;;  %v1360_v44 = vperm.slane %v1356_v41, %v4398_v37 }
 0x297   : > { %v1170_v42 = vsel %vm1167_vm14, %v1165_v0, %v1169_v34  ;;  %v1194_v48 = vsel %vm1167_vm14, %v1193_v21, %v1187_v39  ;;  %v1195_v49 = vrot.slane %v1187_v39, 4 }
 0x298   : > { %v1178_v45 = vperm.slane %v1170_v42, %v4410_v54  ;;  %v1179_v46 = vrot.slane %v1174_v38, 4  ;;  %v1200_v50 = vperm.slane %v1194_v48, %v4410_v54  ;;  %v1343_v51 = vsel %vm1167_vm14, %v1342_v40, %v1335_v43 }
 0x299   : > { %v1361_v53 = vrot.slane %v1360_v44, 4  ;;  %v1196_v56 = vsel %vm1167_vm14, %v1192_v1, %v1195_v49  ;;  %v1347_v57 = vperm.slane %v1343_v51, %v4410_v54 }
 0x29a   : > { %v1181_v55 = vrot.slane %v1178_v45, 4  ;;  %v1204_v58 = vperm.slane %v1196_v56, %v4410_v54  ;;  %v1205_v59 = vrot.slane %v1200_v50, 4  ;;  %v1180_v61 = vsel %vm1167_vm14, 0, %v1179_v46 }
 0x29b   : > { %v1362_v60 = vsel %vm1167_vm14, %v1361_v53, %v1354_v52  ;;  %v1348_v5 = vrot.slane %v1347_v57, 4  ;;  %v1372_v6 = vshrl.u32 %v1347_v57, 16  ;;  %v963_v53 = vld [vmem:[%s950_s2] sm:$0xff]  ;;  %s2925_s2 = sshll.u32 %s938_s21, 4  ;;  %s2926_s2 = int_to_ptr.vmem [resolvable:$true] %s2925_s2 }
 0x29c   : > { %v1182_v62 = vsel %vm1167_vm14, 0, %v1181_v55  ;;  %v1366_v63 = vperm.slane %v1362_v60, %v4410_v54  ;;  %v1207_v0 = vrot.slane %v1204_v58, 4  ;;  %v1209_v2 = vsel %vm1167_vm14, %v1181_v55, %v1174_v38 }
 0x29d   : > { %v1214_v3 = vrot.slane %v1182_v62, 4  ;;  %v1206_v9 = vsel %vm1167_vm14, 0, %v1205_v59  ;;  %v1349_v11 = vsel %vm1167_vm14, 0, %v1348_v5  ;;  %v1213_v24 = vperm.slane %v1209_v2, %v4398_v37 }
 0x29e   : > { %v1371_v1 = vpack.i.b16 %v1366_v63, %v1347_v57  ;;  %v1373_v7 = vshrl.u32 %v1366_v63, 16  ;;  %v1367_v8 = vrot.slane %v1366_v63, 4  ;;  %v1208_v10 = vsel %vm1167_vm14, 0, %v1207_v0 }
 0x29f   : > { %v1215_v13 = vsel %vm1167_vm14, %v1214_v3, %v1180_v61  ;;  %v1233_v14 = vrot.slane %v1208_v10, 4  ;;  %v1378_v19 = vshrl.u32 %v1349_v11, 16  ;;  %v1228_v25 = vsel %vm1167_vm14, %v1207_v0, %v1200_v50  ;;  %v1382_v10 = vpop.permute.xlu0 %1381 }
 0x2a0   : > { %v1508_v15 = vsel %vm1503_vm15, %v1371_v1, 0  ;;  %v1374_v16 = vpack.i.b16 %v1373_v7, %v1372_v6  ;;  %v1368_v17 = vsel %vm1167_vm14, 0, %v1367_v8  ;;  %v1219_v22 = vperm.slane %v1215_v13, %v4398_v37 }
 0x2a1   : > { %1517 = vmatpush.bf16.xpose.msra.mxu2 %v1508_v15  ;;  %v1377_v18 = vpack.i.b16 %v1368_v17, %v1349_v11  ;;  %v1379_v21 = vshrl.u32 %v1368_v17, 16  ;;  %v1234_v20 = vsel %vm1167_vm14, %v1233_v14, %v1206_v9  ;;  %v1232_v34 = vperm.slane %v1228_v25, %v4398_v37 }
 0x2a2   : > { %v1527_v23 = vsel %vm1503_vm15, %v1374_v16, 0  ;;  %v1220_v28 = vrot.slane %v1219_v22, 4  ;;  %v1238_v29 = vperm.slane %v1234_v20, %v4398_v37  ;;  %vm964_vm1 = vcmp.eq.f32.partialorder %v963_v53, 0.0 }
 0x2a3   : > { %1536 = vmatpush.bf16.xpose.msra.mxu3 %v1527_v23  ;;  %v1546_v26 = vsel %vm1503_vm15, %v1377_v18, 0  ;;  %v1380_v27 = vpack.i.b16 %v1379_v21, %v1378_v19  ;;  %v4025_v55 = vmov 0.0  }
 0x2a4   : > { %1555 = vmatpush.bf16.xpose.msrb.mxu0 %v1546_v26  ;;  %v1221_v30 = vsel %vm1167_vm14, %v1220_v28, %v1213_v24  ;;  %v1239_v35 = vrot.slane %v1238_v29, 4  ;;  %v965_v56 = vsel %vm964_vm1, -1e+09, %v4025_v55  ;;  %v1392_v26 = vshrl.u32 %v1382_v10, 16 }
 0x2a5   : > { %v1565_v31 = vsel %vm1503_vm15, %v1380_v27, 0  ;;  %v1225_v36 = vperm.slane %v1221_v30, %v4410_v54 }
 0x2a6   : > { %1574 = vmatpush.bf16.xpose.msrb.mxu1 %v1565_v31  ;;  %v1240_v38 = vsel %vm1167_vm14, %v1239_v35, %v1232_v34 }
 0x2a7   : > { %v1244_v39 = vperm.slane %v1240_v38, %v4410_v54  ;;  %v1226_v40 = vrot.slane %v1225_v36, 4  ;;  %v1250_v41 = vshrl.u32 %v1225_v36, 16 }
 0x2a9   : > { %v1249_v42 = vpack.i.b16 %v1244_v39, %v1225_v36  ;;  %v1251_v43 = vshrl.u32 %v1244_v39, 16  ;;  %v1227_v44 = vsel %vm1167_vm14, 0, %v1226_v40  ;;  %v1245_v45 = vrot.slane %v1244_v39, 4 }
 0x2aa   : > { %v1256_v50 = vshrl.u32 %v1227_v44, 16 }
 0x2ab   : > { %3200 = vmatmul.msk.bf16.vlgmr.msra.gmra.mxu2 %vm1503_vm15, %v1249_v42  ;;  %v1252_v46 = vpack.i.b16 %v1251_v43, %v1250_v41  ;;  %v1246_v48 = vsel %vm1167_vm14, 0, %v1245_v45 }
 0x2ac   : > { %v1255_v49 = vpack.i.b16 %v1246_v48, %v1227_v44  ;;  %v1257_v51 = vshrl.u32 %v1246_v48, 16 }
 0x2ad   : > { %3201 = vmatmul.msk.bf16.vlgmr.msra.gmra.mxu3 %vm1503_vm15, %v1252_v46 }
 0x2ae   : > { %3202 = vmatmul.msk.bf16.vlgmr.msrb.gmra.mxu0 %vm1503_vm15, %v1255_v49  ;;  %v1258_v52 = vpack.i.b16 %v1257_v51, %v1256_v50 }
 0x2b0   : > { %3203 = vmatmul.msk.bf16.vlgmr.msrb.gmra.mxu1 %vm1503_vm15, %v1258_v52 }
 0x32b   : > { %v1557_v57 = vpop.f32.mrf.mxu0 }
 0x32c   : > { %v1558_v58 = vadd.f32 %v1557_v57, %v965_v56 }
 0x32d   : > { %v1576_v59 = vpop.f32.mrf.mxu1 }
 0x32e   : > { %v1577_v60 = vadd.f32 %v1576_v59, %v965_v56  ;;  %v1519_v61 = vpop.f32.mrf.mxu2  ;;  %v1586_v62 = vsel %vm1503_vm15, %v1558_v58, -inf }
 0x32f   : > { %1587 = vmax.xlane.f32.xlu1 %v1586_v62  ;;  %v1520_v1 = vadd.f32 %v1519_v61, %v965_v56 }
 0x330   : > { %v1538_v63 = vpop.f32.mrf.mxu3  ;;  %v1589_v0 = vsel %vm1503_vm15, %v1577_v60, -inf }
 0x331   : > { %v1539_v2 = vadd.f32 %v1538_v63, %v965_v56  ;;  %1590 = vmax.xlane.f32.xlu2 %v1589_v0  ;;  %v1580_v9 = vsel %vm1503_vm15, %v1520_v1, -inf }
 0x333   : > { %v1559_v3 = vpop.f32.mrf.mxu0  ;;  %v1583_v5 = vsel %vm1503_vm15, %v1539_v2, -inf }
 0x334   : > { %1584 = vmax.xlane.f32.xlu0 %v1583_v5 }
 0x335   : > { %v1578_v6 = vpop.f32.mrf.mxu1 }
 0x336   : > { %v1521_v7 = vpop.f32.mrf.mxu2 }
 0x338   : > { %v1540_v8 = vpop.f32.mrf.mxu3 }
 0x339   : > { %1581 = vmax.xlane.f32.xlu2 %v1580_v9 }
 0x348   : > { %1387 = vrot.lane.b32.xlu0 %v4404_v47, %s4021_s13  ;;  %1385 = vrot.lane.b32.xlu1 %v4396_v33, %s4021_s13 }
 0x351   : > { %1383 = vrot.lane.b32.xlu2 %v4394_v32, %s4021_s13 }
 0x3a2   : > { %v1588_v11 = vpop.xlane.xlu1 %1587 }
 0x3a3   : > { %v1594_v13 = vsub.f32 %v1558_v58, %v1588_v11 }
 0x3a4   : > { %v1591_v14 = vpop.xlane.xlu2 %1590 }
 0x3a5   : > { %v1600_v15 = vmul.f32 1.442695, %v1594_v13  ;;  %v1595_v22 = vsub.f32 %v1577_v60, %v1591_v14 }
 0x3a7   : > { %3494 = vpow2.f32 %v1600_v15  ;;  %v1585_v16 = vpop.xlane.xlu0 %1584  ;;  %v1602_v24 = vmul.f32 1.442695, %v1595_v22 }
 0x3a8   : > { %v1593_v17 = vsub.f32 %v1539_v2, %v1585_v16 }
 0x3aa   : > { %v1598_v18 = vmul.f32 1.442695, %v1593_v17 }
 0x3ac   : > { %3496 = vpow2.f32 %v1598_v18  ;;  %v1582_v19 = vpop.xlane.xlu2 %1581 }
 0x3ad   : > { %v4501_v21 = vpop.eup %3494  ;;  %v1592_v47 = vsub.f32 %v1520_v1, %v1582_v19 }
 0x3ae   : > { %v1610_v33 = vsel %vm1503_vm15, %v4501_v21, 0.0 }
 0x3af   : > { %v1596_v23 = vmul.f32 1.442695, %v1592_v47  ;;  %1611 = vadd.xlane.f32.xlu1 %v1610_v33 }
 0x3b1   : > { %3498 = vpow2.f32 %v1596_v23 }
 0x3b2   : > { %v4505_v32 = vpop.eup %3496  ;;  %3500 = vpow2.f32 %v1602_v24 }
 0x3b3   : > { %v1607_v25 = vsel %vm1503_vm15, %v4505_v32, 0.0 }
 0x3b4   : > { %v1384_v20 = vpop.permute.xlu2 %1383  ;;  %1608 = vadd.xlane.f32.xlu0 %v1607_v25 }
 0x3b5   : > { %v1391_v27 = vpack.i.b16 %v1384_v20, %v1382_v10  ;;  %v1393_v28 = vshrl.u32 %v1384_v20, 16 }
 0x3b7   : > { %v4509_v29 = vpop.eup %3498  ;;  %v1394_v31 = vpack.i.b16 %v1393_v28, %v1392_v26  ;;  %v1405_v34 = vperm.slane %v1391_v27, %v4398_v37 }
 0x3b8   : > { %v1604_v30 = vsel %vm1503_vm15, %v4509_v29, 0.0  ;;  %v4515_v42 = vpop.eup %3500 }
 0x3b9   : > { %1605 = vadd.xlane.f32.xlu2 %v1604_v30  ;;  %v1431_v38 = vperm.slane %v1394_v31, %v4398_v37  ;;  %v1413_v43 = vrot.slane %v1405_v34, 4  ;;  %v1613_v52 = vsel %vm1503_vm15, %v4515_v42, 0.0 }
 0x3ba   : > { %v1386_v35 = vpop.permute.xlu1 %1385  ;;  %v1388_v36 = vpop.permute.xlu0 %1387 }
 0x3bb   : > { %v1398_v39 = vshrl.u32 %v1386_v35, 16  ;;  %v1397_v40 = vpack.i.b16 %v1388_v36, %v1386_v35  ;;  %v1399_v41 = vshrl.u32 %v1388_v36, 16  ;;  %v1439_v46 = vrot.slane %v1431_v38, 4 }
 0x3bd   : > { %v1400_v44 = vpack.i.b16 %v1399_v41, %v1398_v39  ;;  %v1410_v45 = vperm.slane %v1397_v40, %v4398_v37 }
 0x3bf   : > { %v1411_v48 = vrot.slane %v1410_v45, 4  ;;  %v1414_v49 = vsel %vm1167_vm14, %v1410_v45, %v1413_v43  ;;  %v1436_v50 = vperm.slane %v1400_v44, %v4398_v37 }
 0x3c0   : > { %v1422_v51 = vperm.slane %v1414_v49, %v4410_v54 }
 0x3c1   : > { %v1412_v53 = vsel %vm1167_vm14, %v1411_v48, %v1405_v34  ;;  %v1437_v56 = vrot.slane %v1436_v50, 4  ;;  %v1440_v57 = vsel %vm1167_vm14, %v1436_v50, %v1439_v46  ;;  %1614 = vadd.xlane.f32.xlu2 %v1613_v52 }
 0x3c2   : > { %v1418_v58 = vperm.slane %v1412_v53, %v4410_v54  ;;  %v1425_v59 = vrot.slane %v1422_v51, 4  ;;  %v1448_v60 = vperm.slane %v1440_v57, %v4410_v54 }
 0x3c3   : > { %v1438_v61 = vsel %vm1167_vm14, %v1437_v56, %v1431_v38 }
 0x3c4   : > { %v1423_v62 = vrot.slane %v1418_v58, 4  ;;  %v1426_v63 = vsel %vm1167_vm14, 0, %v1425_v59  ;;  %v1444_v0 = vperm.slane %v1438_v61, %v4410_v54  ;;  %v1451_v2 = vrot.slane %v1448_v60, 4 }
 0x3c5   : > { %v1458_v3 = vrot.slane %v1426_v63, 4  ;;  %v1453_v8 = vsel %vm1167_vm14, %v1425_v59, %v1418_v58  ;;  %v1710_v63 = vld [vmem:[%s4984_s6 + $0x4] sm:$0xf] }
 0x3c6   : > { %v1424_v5 = vsel %vm1167_vm14, 0, %v1423_v62  ;;  %v1449_v1 = vrot.slane %v1444_v0, 4  ;;  %v1452_v6 = vsel %vm1167_vm14, 0, %v1451_v2  ;;  %v1472_v13 = vsel %vm1167_vm14, %v1451_v2, %v1444_v0  ;;  %v1712_v2 = vld [vmem:[%s4984_s6 + $0xc] sm:$0xf] }
 0x3c7   : > { %v1477_v7 = vrot.slane %v1452_v6, 4  ;;  %v1459_v9 = vsel %vm1167_vm14, %v1458_v3, %v1424_v5  ;;  %v1457_v15 = vperm.slane %v1453_v8, %v4398_v37  ;;  %v1476_v19 = vperm.slane %v1472_v13, %v4398_v37 }
 0x3c8   : > { %v1450_v10 = vsel %vm1167_vm14, 0, %v1449_v1  ;;  %v1463_v11 = vperm.slane %v1459_v9, %v4398_v37  ;;  %v1736_v0 = vsel %vm1631_vm2, %v1710_v63, 0  ;;  %v1774_v3 = vsel %vm1631_vm2, %v1712_v2, 0 }
 0x3c9   : > { %v1478_v14 = vsel %vm1167_vm14, %v1477_v7, %v1450_v10 }
 0x3ca   : > { %v1464_v16 = vrot.slane %v1463_v11, 4  ;;  %v1482_v17 = vperm.slane %v1478_v14, %v4398_v37 }
 0x3cc   : > { %v1465_v18 = vsel %vm1167_vm14, %v1464_v16, %v1457_v15  ;;  %v1483_v47 = vrot.slane %v1482_v17, 4 }
 0x3cd   : > { %v1469_v33 = vperm.slane %v1465_v18, %v4410_v54 }
 0x3ce   : > { %v1484_v22 = vsel %vm1167_vm14, %v1483_v47, %v1476_v19 }
 0x3cf   : > { %v1488_v23 = vperm.slane %v1484_v22, %v4410_v54  ;;  %v1470_v24 = vrot.slane %v1469_v33, 4  ;;  %v1494_v25 = vshrl.u32 %v1469_v33, 16 }
 0x3d1   : > { %v1493_v20 = vpack.i.b16 %v1488_v23, %v1469_v33  ;;  %v1495_v26 = vshrl.u32 %v1488_v23, 16  ;;  %v1471_v27 = vsel %vm1167_vm14, 0, %v1470_v24  ;;  %v1489_v28 = vrot.slane %v1488_v23, 4 }
 0x3d2   : > { %v1500_v36 = vshrl.u32 %v1471_v27, 16 }
 0x3d3   : > { %v1633_v31 = vsel %vm1631_vm2, %v1493_v20, 0  ;;  %v1496_v30 = vpack.i.b16 %v1495_v26, %v1494_v25  ;;  %v1490_v34 = vsel %vm1167_vm14, 0, %v1489_v28  ;;  %v3474_v28 = vld [vmem:[#allocation10] ss:$0 sm:$0xff] }
 0x3d4   : > { %1642 = vmatpush.bf16.msrb.mxu2 %v1633_v31  ;;  %v1499_v35 = vpack.i.b16 %v1490_v34, %v1471_v27  ;;  %v1501_v38 = vshrl.u32 %v1490_v34, 16 }
 0x3d5   : > { %v1652_v39 = vsel %vm1631_vm2, %v1496_v30, 0 }
 0x3d6   : > { %1661 = vmatpush.bf16.msrb.mxu3 %v1652_v39  ;;  %v1671_v40 = vsel %vm1631_vm2, %v1499_v35, 0  ;;  %v1502_v41 = vpack.i.b16 %v1501_v38, %v1500_v36  ;;  %v3285_v39 = vld [vmem:[#allocation14 + $0x8] sm:$0xff] }
 0x3d7   : > { %1680 = vmatpush.bf16.msra.mxu0 %v1671_v40  ;;  %v3223_v40 = vld [vmem:[%s943_s30] sm:$0xf] }
 0x3d8   : > { %v1690_v43 = vsel %vm1631_vm2, %v1502_v41, 0  ;;  %v3277_v41 = vld [vmem:[%s943_s30] sm:$0x10] }
 0x3d9   : > { %1699 = vmatpush.bf16.msra.mxu1 %v1690_v43  ;;  %v3284_v43 = vld [vmem:[#allocation14] sm:$0xff] }
 0x3da   : > { %1745 = vmatpush.bf16.msra.mxu3 %v1736_v0 }
 0x3dd   : > { %1783 = vmatpush.bf16.msrb.mxu1 %v1774_v3 }
 0x422   : > { %v1612_v44 = vpop.xlane.xlu1 %1611 }
 0x423   : > { %3502 = vrcp.f32 %v1612_v44  ;;  %v3224_v44 = vor.u32 %v3277_v41, %v3223_v40 }
 0x427   : > { %v1609_v45 = vpop.xlane.xlu0 %1608 }
 0x428   : > { %3504 = vrcp.f32 %v1609_v45 }
 0x429   : > { %v3503_v46 = vpop.eup %3502 }
 0x42a   : > { %v1622_v48 = vmul.f32 %v3503_v46, %v4501_v21 }
 0x42c   : > { %v1626_v49 = vpack.c.bf16 %v1622_v48, %v1622_v48  ;;  %v1606_v50 = vpop.xlane.xlu2 %1605 }
 0x42d   : > { %3506 = vrcp.f32 %v1606_v50  ;;  %v3283_v50 = vld [vmem:[#allocation11 + $0x8] sm:$0xff] }
 0x42e   : > { %v3505_v51 = vpop.eup %3504  ;;  %3206 = vmatmul.msk.bf16.vlgmr.msra.gmra.mxu0 %vm1503_vm15, %v1626_v49 }
 0x42f   : > { %v1621_v52 = vmul.f32 %v3505_v51, %v4505_v32  ;;  %v1711_v32 = vld [vmem:[%s4984_s6 + $0x8] sm:$0xf]  ;;  %v3476_v51 = vld [vmem:[#allocation16] ss:$0 sm:$0xff] }
 0x430   : > { %v1755_v62 = vsel %vm1631_vm2, %v1711_v32, 0 }
 0x431   : > { %v1625_v53 = vpack.c.bf16 %v1621_v52, %v1621_v52  ;;  %1764 = vmatpush.bf16.msrb.mxu0 %v1755_v62 }
 0x433   : > { %v3507_v56 = vpop.eup %3506  ;;  %3205 = vmatmul.msk.bf16.vlgmr.msrb.gmra.mxu3 %vm1503_vm15, %v1625_v53 }
 0x434   : > { %v1620_v57 = vmul.f32 %v3507_v56, %v4509_v29  ;;  %v1615_v58 = vpop.xlane.xlu2 %1614  ;;  %v1709_v29 = vld [vmem:[%s4984_s6] sm:$0xf]  ;;  %1918 = vmatpush.bf16.msrb.mxu3 %v3285_v39  ;;  %v3282_v56 = vld [vmem:[#allocation11] sm:$0xff] }
 0x435   : > { %3508 = vrcp.f32 %v1615_v58 }
 0x436   : > { %v1624_v59 = vpack.c.bf16 %v1620_v57, %v1620_v57 }
 0x438   : > { %3204 = vmatmul.msk.bf16.vlgmr.msrb.gmra.mxu2 %vm1503_vm15, %v1624_v59  ;;  %1919 = vmatpush.bf16.msrb.mxu3 %v3284_v43 }
 0x43b   : > { %v3509_v21 = vpop.eup %3508 }
 0x43c   : > { %v1623_v60 = vmul.f32 %v3509_v21, %v4515_v42  ;;  %v1717_v42 = vsel %vm1631_vm2, %v1709_v29, 0 }
 0x43d   : > { %1726 = vmatpush.bf16.msra.mxu2 %v1717_v42 }
 0x43e   : > { %v1627_v61 = vpack.c.bf16 %v1623_v60, %v1623_v60 }
 0x440   : > { %3207 = vmatmul.msk.bf16.vlgmr.msra.gmra.mxu1 %vm1503_vm15, %v1627_v61 }
 0x441   : > { %1876 = vmatpush.bf16.msrb.mxu2 %v3283_v50 }
 0x445   : > { %1877 = vmatpush.bf16.msrb.mxu2 %v3282_v56 }
 0x4ab   : > { %v1682_v5 = vpop.f32.mrf.mxu0 }
 0x4ac   : > { %v1707_v1 = vpack.c.bf16 %v1682_v5, %v1682_v5 }
 0x4ae   : > { %3210 = vmatmul.msk.bf16.vlgmr.msrb.gmra.mxu0 %vm1503_vm15, %v1707_v1 }
 0x4b3   : > { %v1684_v6 = vpop.f32.mrf.mxu0 }
 0x4b6   : > { %v1663_v7 = vpop.f32.mrf.mxu3 }
 0x4b7   : > { %v1706_v8 = vpack.c.bf16 %v1663_v7, %v1663_v7 }
 0x4b9   : > { %3209 = vmatmul.msk.bf16.vlgmr.msra.gmra.mxu3 %vm1503_vm15, %v1706_v8 }
 0x4bb   : > { %v1644_v9 = vpop.f32.mrf.mxu2 }
 0x4bc   : > { %v1705_v10 = vpack.c.bf16 %v1644_v9, %v1644_v9 }
 0x4bd   : > { %v1701_v11 = vpop.f32.mrf.mxu1 }
 0x4be   : > { %v1708_v13 = vpack.c.bf16 %v1701_v11, %v1701_v11  ;;  %v1665_v14 = vpop.f32.mrf.mxu3  ;;  %3208 = vmatmul.msk.bf16.vlgmr.msra.gmra.mxu2 %vm1503_vm15, %v1705_v10  ;;  %v3475_v11 = vld [vmem:[%s4925_s20 + $0x1] ss:$0 sm:$0xff] }
 0x4c0   : > { %3211 = vmatmul.msk.bf16.vlgmr.msrb.gmra.mxu1 %vm1503_vm15, %v1708_v13 }
 0x4c3   : > { %v1646_v15 = vpop.f32.mrf.mxu2 }
 0x4c5   : > { %v1703_v16 = vpop.f32.mrf.mxu1 }
 0x4c9   : > { %3233 = vmatmul.msk.bf16.vlgmr.msrb.gmra.mxu3 %vm971_vm0, %v3224_v44 }
 0x52b   : > { %v1766_v17 = vpop.f32.mrf.mxu0 }
 0x52c   : > { %v1792_v25 = vsel %vm971_vm0, %v1766_v17, 0.0 }
 0x533   : > { %v1768_v18 = vpop.f32.mrf.mxu0 }
 0x53c   : > { %v1747_v19 = vpop.f32.mrf.mxu3 }
 0x53d   : > { %v1785_v47 = vpop.f32.mrf.mxu1  ;;  %v1790_v22 = vsel %vm971_vm0, %v1747_v19, 0.0  ;;  %v3477_v19 = vld [vmem:[%s4981_s19 + $0x1] ss:$0 sm:$0xff] }
 0x53e   : > { %v1794_v31 = vsel %vm971_vm0, %v1785_v47, 0.0 }
 0x541   : > { %v1728_v33 = vpop.f32.mrf.mxu2 }
 0x542   : > { %v1789_v23 = vsel %vm971_vm0, %v1728_v33, 0.0 }
 0x543   : > { %v1791_v24 = vadd.f32 %v1790_v22, %v1789_v23 }
 0x544   : > { %v1749_v20 = vpop.f32.mrf.mxu3 }
 0x545   : > { %v1793_v26 = vadd.f32 %v1792_v25, %v1791_v24  ;;  %v1787_v27 = vpop.f32.mrf.mxu1 }
 0x547   : > { %v1795_v30 = vadd.f32 %v1794_v31, %v1793_v26 }
 0x549   : > { %v1730_v34 = vpop.f32.mrf.mxu2  ;;  %v1800_v35 = vadd.f32 %v3474_v28, %v1795_v30 }
 0x54b   : > { %v4584_v36 = vadd.f32 %v1800_v35, %v4341_v4 }
 0x54c   : > { %v1921_v52 = vpop.f32.mrf.mxu3 }
 0x54d   : > { %v1804_v38 = vsel %vm971_vm0, %v4584_v36, 0.0  ;;  %v1922_v53 = vadd.f32 %v3476_v51, %v1921_v52 }
 0x54e   : > { %1805 = vadd.xlane.f32.xlu0 %v1804_v38 }
 0x54f   : > { %v4597_v57 = vpack.c.bf16 %v1922_v53, %v1922_v53 }
 0x551   : > { %2052 = vrot.lane.b32.xlu2 %v4597_v57, %s4020_s12  ;;  %v2067_v26 = vperm.slane %v4597_v57, %v4398_v37 }
 0x553   : > { %v2075_v34 = vrot.slane %v2067_v26, 4 }
 0x554   : > { %v1923_v21 = vpop.f32.mrf.mxu3 }
 0x555   : > { %v1924_v60 = vadd.f32 %v3476_v51, %v1923_v21 }
 0x557   : > { %v4605_v61 = vpack.c.bf16 %v1924_v60, %v1924_v60 }
 0x559   : > { %2058 = vrot.lane.b32.xlu2 %v4605_v61, %s4022_s27 }
 0x562   : > { %2056 = vrot.lane.b32.xlu0 %v4597_v57, %s4022_s27 }
 0x5ab   : > { %v2053_v24 = vpop.permute.xlu2 %2052 }
 0x5ac   : > { %v2093_v20 = vperm.slane %v2053_v24, %v4398_v37 }
 0x5ae   : > { %v2101_v31 = vrot.slane %v2093_v20, 4 }
 0x5c1   : > { %v1806_v4 = vpop.xlane.xlu0 %1805 }
 0x5c2   : > { %v1807_v45 = vmul.f32 %v1806_v4, %v4345_v12 }
 0x5c4   : > { %v1808_v46 = vsub.f32 %v4584_v36, %v1807_v45 }
 0x5c6   : > { %v1809_v48 = vmul.f32 %v1808_v46, %v1808_v46  ;;  %v1815_v17 = vmul.f32 %v3475_v11, %v1808_v46 }
 0x5c8   : > { %v1810_v49 = vsel %vm971_vm0, %v1809_v48, 0.0  ;;  %v4641_v48 = vpop.permute.xlu2 %2058 }
 0x5c9   : > { %1811 = vadd.xlane.f32.xlu1 %v1810_v49  ;;  %v2116_v52 = vrot.slane %v4641_v48, 4 }
 0x5d4   : > { %v4626_v27 = vpop.permute.xlu0 %2056 }
 0x5d5   : > { %v2072_v30 = vperm.slane %v4626_v27, %v4398_v37 }
 0x5d7   : > { %v2073_v39 = vrot.slane %v2072_v30, 4  ;;  %v2076_v40 = vsel %vm1167_vm14, %v2072_v30, %v2075_v34 }
 0x5d8   : > { %v2084_v4 = vperm.slane %v2076_v40, %v4410_v54 }
 0x5d9   : > { %v2074_v45 = vsel %vm1167_vm14, %v2073_v39, %v2067_v26 }
 0x5da   : > { %v2080_v50 = vperm.slane %v2074_v45, %v4410_v54  ;;  %v2087_v51 = vrot.slane %v2084_v4, 4 }
 0x5dc   : > { %v2085_v56 = vrot.slane %v2080_v50, 4 }
 0x5e2   : > { %2060 = vrot.lane.b32.xlu1 %v4597_v57, %s4019_s22 }
 0x5ea   : > { %2062 = vrot.lane.b32.xlu1 %v4605_v61, %s4019_s22 }
 0x5f2   : > { %2054 = vrot.lane.b32.xlu1 %v4605_v61, %s4020_s12 }
 0x5fa   : > { %2250 = vrot.lane.b32.xlu1 %v2053_v24, %s4021_s13 }
 0x63c   : > { %v1812_v58 = vpop.xlane.xlu1 %1811 }
 0x63d   : > { %v1813_v59 = vmul.f32 0.032258064, %v1812_v58  ;;  %v2088_v58 = vsel %vm1167_vm14, 0, %v2087_v51 }
 0x63f   : > { %3510 = vrsqrt.f32 %v1813_v59  ;;  %vm1823_vm3 = vcmp.eq.f32.partialorder %v1813_v59, inf  ;;  %v1826_v3 = vand.u32 2147483648, %v1813_v59  ;;  %vm1825_vm4 = vcmp.eq.f32.partialorder %v1813_v59, 0.0 }
 0x645   : > { %v3511_v32 = vpop.eup %3510 }
 0x646   : > { %v1817_v62 = vmul.f32 %v3511_v32, %v1813_v59 }
 0x648   : > { %v1818_v29 = vmul.f32 %v3511_v32, %v1817_v62  ;;  %v2150_v62 = vshrl.u32 %v2084_v4, 16 }
 0x64a   : > { %v1819_v63 = vmul.f32 0.5, %v1818_v29  ;;  %v2117_v29 = vsel %vm1167_vm14, %v2116_v52, %v4605_v61 }
 0x64c   : > { %v1820_v42 = vsub.f32 1.5, %v1819_v63  ;;  %v2158_v63 = vshrl.u32 %v2088_v58, 16 }
 0x64e   : > { %v1821_v0 = vmul.f32 %v3511_v32, %v1820_v42 }
 0x650   : > { %v1822_v2 = vmul.f32 %v1821_v0, %v1813_v59 }
 0x652   : > { %v1824_v5 = vsel %vm1823_vm3, %v1813_v59, %v1822_v2  ;;  %v2086_v2 = vsel %vm1167_vm14, 0, %v2085_v56  ;;  %vm2887_vm3 = vcmask 523264  }
 0x653   : > { %v1827_v1 = vsel %vm1825_vm4, %v1826_v3, %v1824_v5  ;;  %v2142_v11 = vshrl.u32 %v2086_v2, 16 }
 0x654   : > { %v1828_v6 = vadd.f32 1e-06, %v1827_v1  ;;  %v4621_v25 = vpop.permute.xlu1 %2060  ;;  %v2121_v1 = vperm.slane %v2117_v29, %v4410_v54 }
 0x655   : > { %v2098_v28 = vperm.slane %v4621_v25, %v4398_v37 }
 0x656   : > { %3512 = vrcp.f32 %v1828_v6  ;;  %v1840_v10 = vand.u32 2147483648, %v1828_v6  ;;  %v1838_v14 = vand.u32 2147483647, %v1828_v6  ;;  %vm1834_vm6 = vweird.f32 %v1828_v6 }
 0x657   : > { %v2099_v35 = vrot.slane %v2098_v28, 4  ;;  %v2102_v38 = vsel %vm1167_vm14, %v2098_v28, %v2101_v31 }
 0x658   : > { %v1841_v16 = vor.u32 1.1754944e-38, %v1840_v10  ;;  %vm1839_vm8 = vcmp.eq.f32.partialorder %v1838_v14, 8.507059e+37  ;;  %v2110_v44 = vperm.slane %v2102_v38, %v4410_v54 }
 0x659   : > { %v2100_v43 = vsel %vm1167_vm14, %v2099_v35, %v2093_v20 }
 0x65a   : > { %v2106_v46 = vperm.slane %v2100_v43, %v4410_v54  ;;  %v2113_v49 = vrot.slane %v2110_v44, 4  ;;  %v2151_v32 = vshrl.u32 %v2110_v44, 16  ;;  %v2148_v5 = vpack.i.b16 %v2110_v44, %v2084_v4 }
 0x65c   : > { %v3513_v7 = vpop.eup %3512  ;;  %v4634_v41 = vpop.permute.xlu1 %2062  ;;  %v2111_v53 = vrot.slane %v2106_v46, 4  ;;  %v2114_v59 = vsel %vm1167_vm14, 0, %v2113_v49 }
 0x65d   : > { %v1830_v8 = vmul.f32 %v3513_v7, %v1828_v6  ;;  %vm1835_vm5 = vweird.f32 %v3513_v7  ;;  %v2124_v21 = vrot.slane %v4634_v41, 4  ;;  %v2159_v42 = vshrl.u32 %v2114_v59, 16 }
 0x65e   : > { %vm1836_vm7 = vmor %vm1834_vm6, %vm1835_vm5  ;;  %v2112_v0 = vsel %vm1167_vm14, 0, %v2111_v53  ;;  %v2135_v6 = vshrl.u32 %v2106_v46, 16 }
 0x65f   : > { %v1831_v9 = vsub.f32 1.0, %v1830_v8  ;;  %v2152_v8 = vpack.i.b16 %v2151_v32, %v2150_v62  ;;  %v2143_v10 = vshrl.u32 %v2112_v0, 16 }
 0x661   : > { %v1832_v13 = vmul.f32 %v3513_v7, %v1831_v9  ;;  %v2156_v9 = vpack.i.b16 %v2114_v59, %v2088_v58 }
 0x663   : > { %v1833_v15 = vadd.f32 %v3513_v7, %v1832_v13  ;;  %v2160_v13 = vpack.i.b16 %v2159_v42, %v2158_v63 }
 0x664   : > { %v4648_v60 = vpop.permute.xlu1 %2054 }
 0x665   : > { %v1837_v18 = vsel %vm1836_vm7, %v3513_v7, %v1833_v15  ;;  %v2125_v3 = vsel %vm1167_vm14, %v2124_v21, %v4648_v60  ;;  %v2134_v7 = vshrl.u32 %v2080_v50, 16  ;;  %v2132_v15 = vpack.i.b16 %v2106_v46, %v2080_v50 }
 0x666   : > { %v1842_v47 = vsel %vm1839_vm8, %v1841_v16, %v1837_v18  ;;  %v2129_v14 = vperm.slane %v2125_v3, %v4410_v54  ;;  %v2168_v16 = vrot.slane %v2148_v5, 4  ;;  %v2140_v18 = vpack.i.b16 %v2112_v0, %v2086_v2 }
 0x667   : > { %v1843_v33 = vmul.f32 %v1842_v47, %v1815_v17  ;;  %v2136_v17 = vpack.i.b16 %v2135_v6, %v2134_v7  ;;  %v2165_v47 = vshrl.u32 %v2121_v1, 16 }
 0x668   : > { %v2166_v24 = vshrl.u32 %v2129_v14, 16  ;;  %v2169_v20 = vsel %vm1167_vm14, %v2168_v16, %v2132_v15  ;;  %v2164_v28 = vpack.i.b16 %v2129_v14, %v2121_v1 }
 0x669   : > { %v1845_v22 = vadd.f32 %v3477_v19, %v1843_v33  ;;  %v2188_v19 = vrot.slane %v2152_v8, 4  ;;  %v2144_v33 = vpack.i.b16 %v2143_v10, %v2142_v11  ;;  %v2173_v35 = vperm.slane %v2169_v20, %v4398_v37 }
 0x66a   : > { %v2167_v31 = vpack.i.b16 %v2166_v24, %v2165_v47  ;;  %v2212_v4 = vperm.slane %v2164_v28, %v4410_v54 }
 0x66b   : > { %v1846_v23 = vpack.c.bf16 %v1845_v22, %v1845_v22  ;;  %v2174_v22 = vrot.slane %v2156_v9, 4  ;;  %v2189_v26 = vsel %vm1167_vm14, %v2188_v19, %v2136_v17 }
 0x66c   : > { %v2193_v43 = vperm.slane %v2189_v26, %v4398_v37  ;;  %v2219_v45 = vperm.slane %v2167_v31, %v4410_v54  ;;  %v2237_v59 = vshrl.u32 %v2212_v4, 16  ;;  %v2213_v0 = vrot.slane %v2212_v4, 4 }
 0x66d   : > { %3220 = vmatmul.msk.bf16.vlgmr.msrb.gmra.mxu2 %vm971_vm0, %v1846_v23  ;;  %v2194_v23 = vrot.slane %v2160_v13, 4  ;;  %v2175_v30 = vsel %vm1167_vm14, %v2174_v22, %v2140_v18 }
 0x66e   : > { %v2179_v38 = vperm.slane %v2175_v30, %v4398_v37  ;;  %v2236_v53 = vpack.i.b16 %v2219_v45, %v2212_v4  ;;  %v2238_v21 = vshrl.u32 %v2219_v45, 16  ;;  %v2220_v1 = vrot.slane %v2219_v45, 4 }
 0x66f   : > { %v2195_v34 = vsel %vm1167_vm14, %v2194_v23, %v2144_v33  ;;  %v2214_v8 = vsel %vm1167_vm14, 0, %v2213_v0 }
 0x670   : > { %v2199_v39 = vperm.slane %v2195_v34, %v4398_v37  ;;  %v2180_v40 = vrot.slane %v2179_v38, 4  ;;  %v2450_v63 = vunpack.c.l.b16 %v2236_v53  ;;  %v2239_v2 = vpack.i.b16 %v2238_v21, %v2237_v59 }
 0x671   : > { %v2221_v11 = vsel %vm1167_vm14, 0, %v2220_v1  ;;  %v2243_v18 = vshrl.u32 %v2214_v8, 16 }
 0x672   : > { %v2200_v44 = vrot.slane %v2199_v39, 4  ;;  %v2181_v46 = vsel %vm1167_vm14, %v2180_v40, %v2173_v35  ;;  %v2472_v10 = vunpack.c.l.b16 %v2239_v2  ;;  %v2242_v16 = vpack.i.b16 %v2221_v11, %v2214_v8  ;;  %v3478_v35 = vld [vmem:[#allocation13] ss:$0 sm:$0xff] }
 0x673   : > { %v2185_v50 = vperm.slane %v2181_v46, %v4410_v54  ;;  %v2244_v33 = vshrl.u32 %v2221_v11, 16 }
 0x674   : > { %v2201_v49 = vsel %vm1167_vm14, %v2200_v44, %v2193_v43  ;;  %v2494_v22 = vunpack.c.l.b16 %v2242_v16 }
 0x675   : > { %v2205_v51 = vperm.slane %v2201_v49, %v4410_v54  ;;  %v2225_v56 = vshrl.u32 %v2185_v50, 16  ;;  %v2186_v32 = vrot.slane %v2185_v50, 4  ;;  %v2245_v24 = vpack.i.b16 %v2244_v33, %v2243_v18 }
 0x677   : > { %v2224_v52 = vpack.i.b16 %v2205_v51, %v2185_v50  ;;  %v2226_v58 = vshrl.u32 %v2205_v51, 16  ;;  %v2206_v62 = vrot.slane %v2205_v51, 4  ;;  %v2187_v3 = vsel %vm1167_vm14, 0, %v2186_v32 }
 0x678   : > { %v2231_v13 = vshrl.u32 %v2187_v3, 16  ;;  %v2516_v28 = vunpack.c.l.b16 %v2245_v24 }
 0x679   : > { %v2449_v29 = vunpack.c.l.b16 %v2224_v52  ;;  %v2227_v42 = vpack.i.b16 %v2226_v58, %v2225_v56  ;;  %v2207_v5 = vsel %vm1167_vm14, 0, %v2206_v62 }
 0x67a   : > { %v2230_v9 = vpack.i.b16 %v2207_v5, %v2187_v3  ;;  %v2232_v14 = vshrl.u32 %v2207_v5, 16 }
 0x67b   : > { %v2451_v6 = vpack.c.b16 %v2450_v63, %v2449_v29  ;;  %v2471_v7 = vunpack.c.l.b16 %v2227_v42 }
 0x67c   : > { %v2493_v17 = vunpack.c.l.b16 %v2230_v9  ;;  %v2233_v47 = vpack.i.b16 %v2232_v14, %v2231_v13 }
 0x67d   : > { %v2456_v15 = vsel %vm1503_vm15, %v2451_v6, 0  ;;  %v2473_v19 = vpack.c.b16 %v2472_v10, %v2471_v7 }
 0x67e   : > { %2465 = vmatpush.bf16.xpose.msra.mxu0 %v2456_v15  ;;  %v2515_v20 = vunpack.c.l.b16 %v2233_v47  ;;  %v2495_v26 = vpack.c.b16 %v2494_v22, %v2493_v17 }
 0x67f   : > { %v2478_v23 = vsel %vm1503_vm15, %v2473_v19, 0 }
 0x680   : > { %2487 = vmatpush.bf16.xpose.msra.mxu1 %v2478_v23  ;;  %v2500_v31 = vsel %vm1503_vm15, %v2495_v26, 0  ;;  %v2517_v30 = vpack.c.b16 %v2516_v28, %v2515_v20 }
 0x681   : > { %2509 = vmatpush.bf16.xpose.msra.mxu2 %v2500_v31 }
 0x682   : > { %v2522_v34 = vsel %vm1503_vm15, %v2517_v30, 0 }
 0x683   : > { %2531 = vmatpush.bf16.xpose.msra.mxu3 %v2522_v34 }
 0x6f0   : > { %v1879_v38 = vpop.f32.mrf.mxu2 }
 0x6f1   : > { %v1880_v39 = vadd.f32 %v3478_v35, %v1879_v38 }
 0x6f3   : > { %v1883_v40 = vmul.f32 0.35355338, %v1880_v39 }
 0x6f5   : > { %v1926_v43 = vpack.c.bf16 %v1883_v40, %v1883_v40 }
 0x6f7   : > { %1928 = vrot.lane.b32.xlu0 %v1926_v43, %s4020_s12  ;;  %1932 = vrot.lane.b32.xlu2 %v1926_v43, %s4019_s22  ;;  %v1937_v46 = vshrl.u32 %v1926_v43, 16  ;;  %s4986_s12 = sld [smem:[#allocation53_spill]] }
 0x6f8   : > { %v1881_v44 = vpop.f32.mrf.mxu2 }
 0x6ff   : > { %1930 = vrot.lane.b32.xlu0 %v1926_v43, %s4022_s27  ;;  %2246 = vrot.lane.b32.xlu2 %v4597_v57, %s4021_s13  ;;  %s4988_s27 = sld [smem:[#allocation56_spill]] }
 0x705   : > { %s3914_s17 = scalar_lea.hbm %s4988_s27, 16 }
 0x707   : > { %2254 = vrot.lane.b32.xlu0 %v4626_v27, %s4021_s13  ;;  %2258 = vrot.lane.b32.xlu2 %v4621_v25, %s4021_s13 }
 0x70f   : > { %2256 = vrot.lane.b32.xlu0 %v4641_v48, %s4021_s13 }
 0x751   : > { %v1933_v51 = vpop.permute.xlu2 %1932 }
 0x752   : > { %v1944_v56 = vshrl.u32 %v1933_v51, 16 }
 0x769   : > { %v1929_v4 = vpop.permute.xlu0 %1928 }
 0x76a   : > { %v1938_v45 = vshrl.u32 %v1929_v4, 16  ;;  %v1936_v49 = vpack.i.b16 %v1929_v4, %v1926_v43 }
 0x76c   : > { %v1939_v50 = vpack.i.b16 %v1938_v45, %v1937_v46  ;;  %v1950_v52 = vperm.slane %v1936_v49, %v4398_v37 }
 0x76e   : > { %v1976_v57 = vperm.slane %v1939_v50, %v4398_v37  ;;  %v1958_v59 = vrot.slane %v1950_v52, 4 }
 0x770   : > { %v1984_v32 = vrot.slane %v1976_v57, 4 }
 0x771   : > { %v1931_v53 = vpop.permute.xlu0 %1930 }
 0x772   : > { %v1942_v58 = vpack.i.b16 %v1933_v51, %v1931_v53  ;;  %v1943_v27 = vshrl.u32 %v1931_v53, 16  ;;  %v966_v53 = vld [vmem:[%s811_s15] sm:$0x1]  ;;  %s3273_s15 = sshll.u32 %s4982_s11, 3  ;;  %s2912_s11 = scalar_lea.sflag [#allocation4], %s4302_s10 }
 0x773   : > { %vm967_vm9 = vcmp.eq.f32.partialorder %v966_v53, 0.0  ;;  %s2923_s1 = scalar_lea.hbm %s4988_s27, %s3273_s15 }
 0x774   : > { %v1945_v21 = vpack.i.b16 %v1944_v56, %v1943_v27  ;;  %v1955_v25 = vperm.slane %v1942_v58, %v4398_v37  ;;  %v968_v56 = vsel %vm967_vm9, -1e+09, %v4025_v55  ;;  %s2927_s18 = sshll.u32 %s2923_s1, 4  ;;  %s2928_s18 = int_to_ptr.hbm [resolvable:$true] %s2927_s18 }
 0x775   : > { %s3908_s30 = sshra.s32 %s2928_s18, 4  ;;  %s3909_s30 = int_to_ptr.hbm [resolvable:$true] %s3908_s30 }
 0x776   : > { %v1956_v48 = vrot.slane %v1955_v25, 4  ;;  %v1959_v62 = vsel %vm1167_vm14, %v1955_v25, %v1958_v59  ;;  %v1981_v29 = vperm.slane %v1945_v21, %v4398_v37  ;;  %s3910_s14 = scalar_lea.hbm %s3909_s30, 8  ;;  %p3915_p11 = scmp.lt.s32.totalorder %s3909_s30, %s4988_s27 }
 0x777   : > { %v1967_v63 = vperm.slane %v1959_v62, %v4410_v54  ;;  %p3911_p3 = scmp.ne.s32.totalorder %s3909_s30, %s3910_s14  ;;  %p3916_p12 = scmp.lt.s32.totalorder %s3914_s17, %s3910_s14 }
 0x778   : > { %v1957_v42 = vsel %vm1167_vm14, %v1956_v48, %v1950_v52  ;;  %v1982_v0 = vrot.slane %v1981_v29, 4  ;;  %v1985_v2 = vsel %vm1167_vm14, %v1981_v29, %v1984_v32 }
 0x779   : > { %v1963_v3 = vperm.slane %v1957_v42, %v4410_v54  ;;  %v1970_v5 = vrot.slane %v1967_v63, 4  ;;  %v1993_v1 = vperm.slane %v1985_v2, %v4410_v54  ;;  %p3912_p9 = pnand %p3911_p3, %p4275_p2  ;;  %p3917_p13 = por %p3916_p12, %p3915_p11 }
 0x77a   : > { %v1983_v6 = vsel %vm1167_vm14, %v1982_v0, %v1976_v57  ;;  %v2447_v57 = vperm.slane %v968_v56, 0 }
 0x77b   : > { %v1968_v7 = vrot.slane %v1963_v3, 4  ;;  %v1971_v8 = vsel %vm1167_vm14, 0, %v1970_v5  ;;  %v1989_v9 = vperm.slane %v1983_v6, %v4410_v54  ;;  %v1996_v10 = vrot.slane %v1993_v1, 4  ;;  %v2247_v1 = vpop.permute.xlu2 %2246  ;;  %v2251_v6 = vpop.permute.xlu1 %2250  ;;  %p3913_p10 = pneg %p3912_p9 }
 0x77c   : > { %v2003_v11 = vrot.slane %v1971_v8, 4  ;;  %v1998_v16 = vsel %vm1167_vm14, %v1970_v5, %v1963_v3  ;;  %v2255_v8 = vpop.permute.xlu0 %2254 }
 0x77d   : > { %v1969_v13 = vsel %vm1167_vm14, 0, %v1968_v7  ;;  %v1994_v14 = vrot.slane %v1989_v9, 4  ;;  %v1997_v15 = vsel %vm1167_vm14, 0, %v1996_v10  ;;  %v2002_v22 = vperm.slane %v1998_v16, %v4398_v37  ;;  %p3918_p0 = pnand %p3917_p13, %p3913_p10 }
 0x77e   : > { %v2004_v17 = vsel %vm1167_vm14, %v2003_v11, %v1969_v13  ;;  %v2022_v18 = vrot.slane %v1997_v15, 4  ;;  %v2017_v24 = vsel %vm1167_vm14, %v1996_v10, %v1989_v9  ;;  %v2292_v7 = vperm.slane %v2251_v6, %v4398_v37 }
 0x77f   : > { %v1995_v19 = vsel %vm1167_vm14, 0, %v1994_v14  ;;  %v2008_v47 = vperm.slane %v2004_v17, %v4398_v37  ;;  %v2021_v31 = vperm.slane %v2017_v24, %v4398_v37  ;;  %v2266_v10 = vperm.slane %v2247_v1, %v4398_v37 }
 0x780   : > { %v2023_v33 = vsel %vm1167_vm14, %v2022_v18, %v1995_v19  ;;  %v2300_v11 = vrot.slane %v2292_v7, 4  ;;  %v2271_v13 = vperm.slane %v2255_v8, %v4398_v37 }
 0x781   : > { %v2009_v23 = vrot.slane %v2008_v47, 4  ;;  %v2027_v20 = vperm.slane %v2023_v33, %v4398_v37 }
 0x782   : > { %v2272_v15 = vrot.slane %v2271_v13, 4 }
 0x783   : > { %v2028_v26 = vrot.slane %v2027_v20, 4  ;;  %v2010_v28 = vsel %vm1167_vm14, %v2009_v23, %v2002_v22  ;;  %v2259_v9 = vpop.permute.xlu2 %2258 }
 0x784   : > { %v2014_v30 = vperm.slane %v2010_v28, %v4410_v54  ;;  %v2297_v14 = vperm.slane %v2259_v9, %v4398_v37  ;;  %v2273_v19 = vsel %vm1167_vm14, %v2272_v15, %v2266_v10  ;;  %v4759_v20 = vpop.permute.xlu0 %2256 }
 0x785   : > { %v2029_v34 = vsel %vm1167_vm14, %v2028_v26, %v2021_v31  ;;  %v2279_v33 = vperm.slane %v2273_v19, %v4410_v54 }
 0x786   : > { %v2033_v35 = vperm.slane %v2029_v34, %v4410_v54  ;;  %v2015_v38 = vrot.slane %v2014_v30, 4  ;;  %v2039_v40 = vshrl.u32 %v2014_v30, 16  ;;  %v2298_v16 = vrot.slane %v2297_v14, 4 }
 0x787   : > { %v2284_v26 = vrot.slane %v2279_v33, 4 }
 0x788   : > { %v2038_v39 = vpack.i.b16 %v2033_v35, %v2014_v30  ;;  %v2040_v43 = vshrl.u32 %v2033_v35, 16  ;;  %v2016_v44 = vsel %vm1167_vm14, 0, %v2015_v38  ;;  %v2034_v4 = vrot.slane %v2033_v35, 4 }
 0x789   : > { %v2045_v50 = vshrl.u32 %v2016_v44, 16  ;;  %v2299_v47 = vsel %vm1167_vm14, %v2298_v16, %v2292_v7 }
 0x78a   : > { %3234 = vmatmul.msk.bf16.vlgmr.msra.gmra.mxu0 %vm1503_vm15, %v2038_v39  ;;  %v2041_v45 = vpack.i.b16 %v2040_v43, %v2039_v40  ;;  %v2035_v46 = vsel %vm1167_vm14, 0, %v2034_v4  ;;  %v2305_v23 = vperm.slane %v2299_v47, %v4410_v54  ;;  %v2285_v39 = vsel %vm1167_vm14, 0, %v2284_v26 }
 0x78b   : > { %v2044_v49 = vpack.i.b16 %v2035_v46, %v2016_v44  ;;  %v2046_v51 = vshrl.u32 %v2035_v46, 16 }
 0x78c   : > { %3235 = vmatmul.msk.bf16.vlgmr.msra.gmra.mxu1 %vm1503_vm15, %v2041_v45  ;;  %v2310_v31 = vrot.slane %v2305_v23, 4  ;;  %v2342_v45 = vshrl.u32 %v2285_v39, 16  ;;  %v2332_v7 = vpack.i.b16 %v2305_v23, %v2279_v33 }
 0x78d   : > { %3236 = vmatmul.msk.bf16.vlgmr.msra.gmra.mxu2 %vm1503_vm15, %v2044_v49  ;;  %v2047_v52 = vpack.i.b16 %v2046_v51, %v2045_v50 }
 0x78e   : > { %v2311_v40 = vsel %vm1167_vm14, 0, %v2310_v31 }
 0x78f   : > { %3237 = vmatmul.msk.bf16.vlgmr.msra.gmra.mxu3 %vm1503_vm15, %v2047_v52  ;;  %v2343_v46 = vshrl.u32 %v2311_v40, 16 }
 0x791   : > { %v2344_v53 = vpack.i.b16 %v2343_v46, %v2342_v45 }
 0x807   : > { %v2467_v58 = vpop.f32.mrf.mxu0 }
 0x808   : > { %v2468_v27 = vadd.f32 %v2467_v58, %v2447_v57 }
 0x809   : > { %v2489_v59 = vpop.f32.mrf.mxu1 }
 0x80a   : > { %v4728_v21 = vadd.f32 %v2489_v59, %v2447_v57  ;;  %v2538_v25 = vsel %vm2537_vm10, %v2468_v27, -inf  ;;  %v2334_v59 = vshrl.u32 %v2279_v33, 16  ;;  %v2316_v33 = vrot.slane %v4759_v20, 4 }
 0x80b   : > { %2539 = vmax.xlane.f32.xlu1 %v2538_v25  ;;  %v2335_v25 = vshrl.u32 %v2305_v23, 16 }
 0x80c   : > { %v2541_v32 = vsel %vm2537_vm10, %v4728_v21, -inf }
 0x80d   : > { %2542 = vmax.xlane.f32.xlu0 %v2541_v32  ;;  %v2336_v8 = vpack.i.b16 %v2335_v25, %v2334_v59 }
 0x80f   : > { %v2469_v48 = vpop.f32.mrf.mxu0 }
 0x810   : > { %v2511_v62 = vpop.f32.mrf.mxu2 }
 0x811   : > { %v2491_v29 = vpop.f32.mrf.mxu1  ;;  %v4733_v63 = vadd.f32 %v2511_v62, %v2447_v57 }
 0x812   : > { %v2533_v55 = vpop.f32.mrf.mxu3 }
 0x813   : > { %v4735_v42 = vadd.f32 %v2533_v55, %v2447_v57  ;;  %v2544_v0 = vsel %vm2537_vm10, %v4733_v63, -inf  ;;  %v2340_v57 = vpack.i.b16 %v2311_v40, %v2285_v39 }
 0x815   : > { %2545 = vmax.xlane.f32.xlu0 %v2544_v0  ;;  %v2547_v2 = vsel %vm2537_vm10, %v4735_v42, -inf }
 0x816   : > { %2548 = vmax.xlane.f32.xlu2 %v2547_v2 }
 0x818   : > { %v2513_v3 = vpop.f32.mrf.mxu2 }
 0x81a   : > { %v2535_v5 = vpop.f32.mrf.mxu3 }
 0x824   : > { %2260 = vrot.lane.b32.xlu1 %v4634_v41, %s4021_s13  ;;  %v2274_v41 = vrot.slane %v2266_v10, 4 }
 0x829   : > { %2252 = vrot.lane.b32.xlu0 %v4648_v60, %s4021_s13  ;;  %v2275_v60 = vsel %vm1167_vm14, %v2271_v13, %v2274_v41 }
 0x82a   : > { %v2283_v17 = vperm.slane %v2275_v60, %v4410_v54 }
 0x82c   : > { %v2286_v22 = vrot.slane %v2283_v17, 4  ;;  %v2350_v51 = vshrl.u32 %v2283_v17, 16 }
 0x82e   : > { %2248 = vrot.lane.b32.xlu2 %v4605_v61, %s4021_s13  ;;  %v2301_v61 = vsel %vm1167_vm14, %v2297_v14, %v2300_v11  ;;  %v2287_v28 = vsel %vm1167_vm14, 0, %v2286_v22 }
 0x82f   : > { %v2309_v18 = vperm.slane %v2301_v61, %v4410_v54  ;;  %v2358_v34 = vshrl.u32 %v2287_v28, 16 }
 0x831   : > { %v2312_v24 = vrot.slane %v2309_v18, 4  ;;  %v2351_v52 = vshrl.u32 %v2309_v18, 16 }
 0x833   : > { %v2313_v30 = vsel %vm1167_vm14, 0, %v2312_v24  ;;  %v2352_v32 = vpack.i.b16 %v2351_v52, %v2350_v51 }
 0x834   : > { %v2359_v35 = vshrl.u32 %v2313_v30, 16  ;;  %v2356_v50 = vpack.i.b16 %v2313_v30, %v2287_v28 }
 0x835   : > { %v2388_v9 = vrot.slane %v2352_v32, 4 }
 0x836   : > { %v2360_v49 = vpack.i.b16 %v2359_v35, %v2358_v34  ;;  %v2374_v58 = vrot.slane %v2356_v50, 4 }
 0x837   : > { %v2389_v41 = vsel %vm1167_vm14, %v2388_v9, %v2336_v8 }
 0x838   : > { %v2394_v56 = vrot.slane %v2360_v49, 4  ;;  %v2375_v3 = vsel %vm1167_vm14, %v2374_v58, %v2340_v57  ;;  %v2393_v16 = vperm.slane %v2389_v41, %v4398_v37 }
 0x839   : > { %v2379_v13 = vperm.slane %v2375_v3, %v4398_v37 }
 0x83a   : > { %v2395_v2 = vsel %vm1167_vm14, %v2394_v56, %v2344_v53 }
 0x83b   : > { %v2399_v11 = vperm.slane %v2395_v2, %v4398_v37  ;;  %v2380_v60 = vrot.slane %v2379_v13, 4 }
 0x83d   : > { %v2400_v15 = vrot.slane %v2399_v11, 4 }
 0x83f   : > { %v2401_v47 = vsel %vm1167_vm14, %v2400_v15, %v2393_v16 }
 0x840   : > { %v2405_v26 = vperm.slane %v2401_v47, %v4410_v54 }
 0x842   : > { %v2406_v39 = vrot.slane %v2405_v26, 4  ;;  %v2426_v46 = vshrl.u32 %v2405_v26, 16 }
 0x844   : > { %v2407_v49 = vsel %vm1167_vm14, 0, %v2406_v39 }
 0x845   : > { %v2432_v59 = vshrl.u32 %v2407_v49, 16 }
 0x87e   : > { %v2540_v38 = vpop.xlane.xlu1 %2539 }
 0x87f   : > { %v2550_v43 = vsub.f32 %v2468_v27, %v2540_v38  ;;  %v2348_v27 = vpack.i.b16 %v2309_v18, %v2283_v17 }
 0x880   : > { %v2543_v44 = vpop.xlane.xlu0 %2542 }
 0x881   : > { %v2554_v4 = vmul.f32 1.442695, %v2550_v43  ;;  %v2551_v5 = vsub.f32 %v4728_v21, %v2543_v44  ;;  %v2368_v10 = vrot.slane %v2348_v27, 4 }
 0x883   : > { %3514 = vpow2.f32 %v2554_v4  ;;  %v2556_v14 = vmul.f32 1.442695, %v2551_v5  ;;  %v2369_v21 = vsel %vm1167_vm14, %v2368_v10, %v2332_v7 }
 0x884   : > { %v2373_v61 = vperm.slane %v2369_v21, %v4398_v37 }
 0x886   : > { %v2381_v23 = vsel %vm1167_vm14, %v2380_v60, %v2373_v61 }
 0x887   : > { %v2385_v31 = vperm.slane %v2381_v23, %v4410_v54 }
 0x888   : > { %v2546_v48 = vpop.xlane.xlu0 %2545 }
 0x889   : > { %v4765_v62 = vpop.eup %3514  ;;  %v2552_v29 = vsub.f32 %v4733_v63, %v2546_v48  ;;  %v2549_v55 = vpop.xlane.xlu2 %2548  ;;  %v2386_v43 = vrot.slane %v2385_v31, 4  ;;  %v2424_v53 = vpack.i.b16 %v2405_v26, %v2385_v31  ;;  %v2425_v56 = vshrl.u32 %v2385_v31, 16 }
 0x88a   : > { %v2562_v0 = vsel %vm2537_vm10, %v4765_v62, 0.0  ;;  %v2553_v6 = vsub.f32 %v4735_v42, %v2549_v55 }
 0x88b   : > { %v2558_v1 = vmul.f32 1.442695, %v2552_v29  ;;  %2563 = vadd.xlane.f32.xlu0 %v2562_v0  ;;  %v2387_v52 = vsel %vm1167_vm14, 0, %v2386_v43  ;;  %v2427_v25 = vpack.i.b16 %v2426_v46, %v2425_v56  ;;  %v2586_v2 = vunpack.c.l.b16 %v2424_v53  ;;  %v2682_v46 = vld [vmem:[#allocation17 + $0xc] sm:$0xf] }
 0x88c   : > { %v2560_v63 = vmul.f32 1.442695, %v2553_v6  ;;  %v2431_v48 = vshrl.u32 %v2387_v52, 16  ;;  %v2430_v3 = vpack.i.b16 %v2407_v49, %v2387_v52  ;;  %v2680_v49 = vld [vmem:[#allocation17 + $0x4] sm:$0xf] }
 0x88d   : > { %3516 = vpow2.f32 %v2558_v1 }
 0x88e   : > { %3518 = vpow2.f32 %v2560_v63  ;;  %v2433_v7 = vpack.i.b16 %v2432_v59, %v2431_v48  ;;  %v2609_v63 = vunpack.c.l.b16 %v2427_v25  ;;  %v2631_v13 = vunpack.c.l.b16 %v2430_v3 }
 0x88f   : > { %3520 = vpow2.f32 %v2556_v14 }
 0x890   : > { %v2653_v16 = vunpack.c.l.b16 %v2433_v7 }
 0x891   : > { %v2249_v19 = vpop.permute.xlu2 %2248 }
 0x892   : > { %v2317_v37 = vsel %vm1167_vm14, %v2316_v33, %v2249_v19 }
 0x893   : > { %v4778_v42 = vpop.eup %3516  ;;  %v2321_v34 = vperm.slane %v2317_v37, %v4410_v54 }
 0x894   : > { %v2568_v17 = vsel %vm2537_vm10, %v4778_v42, 0.0  ;;  %v4784_v18 = vpop.eup %3518 }
 0x895   : > { %2569 = vadd.xlane.f32.xlu1 %v2568_v17  ;;  %v2571_v22 = vsel %vm2537_vm10, %v4784_v18, 0.0  ;;  %v4793_v28 = vpop.eup %3520  ;;  %v2365_v44 = vshrl.u32 %v2321_v34, 16 }
 0x896   : > { %v2261_v24 = vpop.permute.xlu1 %2260  ;;  %2572 = vadd.xlane.f32.xlu2 %v2571_v22  ;;  %v2565_v38 = vsel %vm2537_vm10, %v4793_v28, 0.0 }
 0x897   : > { %v2324_v30 = vrot.slane %v2261_v24, 4 }
 0x89b   : > { %v2253_v35 = vpop.permute.xlu0 %2252 }
 0x89c   : > { %v2325_v20 = vsel %vm1167_vm14, %v2324_v30, %v2253_v35 }
 0x89d   : > { %v2329_v40 = vperm.slane %v2325_v20, %v4410_v54  ;;  %2566 = vadd.xlane.f32.xlu1 %v2565_v38 }
 0x89f   : > { %v2364_v4 = vpack.i.b16 %v2329_v40, %v2321_v34  ;;  %v2366_v45 = vshrl.u32 %v2329_v40, 16 }
 0x8a1   : > { %v2367_v50 = vpack.i.b16 %v2366_v45, %v2365_v44  ;;  %v2412_v51 = vperm.slane %v2364_v4, %v4410_v54  ;;  %v2679_v4 = vld [vmem:[#allocation17] sm:$0xf]  ;;  %v2681_v45 = vld [vmem:[#allocation17 + $0x8] sm:$0xf] }
 0x8a3   : > { %v2419_v57 = vperm.slane %v2367_v50, %v4410_v54  ;;  %v2413_v58 = vrot.slane %v2412_v51, 4  ;;  %v2437_v32 = vshrl.u32 %v2412_v51, 16  ;;  %v2744_v50 = vsel %vm1631_vm2, %v2682_v46, 0 }
 0x8a5   : > { %v2436_v27 = vpack.i.b16 %v2419_v57, %v2412_v51  ;;  %v2438_v29 = vshrl.u32 %v2419_v57, 16  ;;  %v2414_v55 = vsel %vm1167_vm14, 0, %v2413_v58  ;;  %v2420_v0 = vrot.slane %v2419_v57, 4 }
 0x8a6   : > { %v2443_v54 = vshrl.u32 %v2414_v55, 16  ;;  %v2706_v51 = vsel %vm1631_vm2, %v2680_v49, 0 }
 0x8a7   : > { %v2587_v5 = vunpack.c.l.b16 %v2436_v27  ;;  %v2439_v1 = vpack.i.b16 %v2438_v29, %v2437_v32  ;;  %v2421_v6 = vsel %vm1167_vm14, 0, %v2420_v0 }
 0x8a8   : > { %v2442_v8 = vpack.i.b16 %v2421_v6, %v2414_v55  ;;  %v2444_v9 = vshrl.u32 %v2421_v6, 16 }
 0x8a9   : > { %v2588_v10 = vpack.c.b16 %v2587_v5, %v2586_v2  ;;  %v2610_v11 = vunpack.c.l.b16 %v2439_v1 }
 0x8aa   : > { %v2632_v14 = vunpack.c.l.b16 %v2442_v8  ;;  %v2445_v41 = vpack.i.b16 %v2444_v9, %v2443_v54  ;;  %v3479_v9 = vld [vmem:[#allocation19] ss:$0 sm:$0xff] }
 0x8ab   : > { %v2594_v21 = vsel %vm2592_vm11, %v2588_v10, 0  ;;  %v2611_v15 = vpack.c.b16 %v2610_v11, %v2609_v63 }
 0x8ac   : > { %2603 = vmatpush.bf16.msrb.mxu0 %v2594_v21  ;;  %v2633_v60 = vpack.c.b16 %v2632_v14, %v2631_v13  ;;  %v2654_v61 = vunpack.c.l.b16 %v2445_v41 }
 0x8ad   : > { %v2616_v17 = vsel %vm2592_vm11, %v2611_v15, 0 }
 0x8ae   : > { %2625 = vmatpush.bf16.msrb.mxu1 %v2616_v17  ;;  %v2638_v19 = vsel %vm2592_vm11, %v2633_v60, 0  ;;  %v2655_v47 = vpack.c.b16 %v2654_v61, %v2653_v16 }
 0x8af   : > { %2647 = vmatpush.bf16.msrb.mxu2 %v2638_v19 }
 0x8b0   : > { %v2660_v33 = vsel %vm2592_vm11, %v2655_v47, 0  ;;  %v3287_v47 = vld [vmem:[#allocation20 + $0x8] sm:$0xff] }
 0x8b1   : > { %2669 = vmatpush.bf16.msrb.mxu3 %v2660_v33  ;;  %v3286_v33 = vld [vmem:[#allocation20] sm:$0xff] }
 0x8b2   : > { %2715 = vmatpush.bf16.msra.mxu1 %v2706_v51 }
 0x8b5   : > { %2753 = vmatpush.bf16.msra.mxu3 %v2744_v50 }
 0x8fe   : > { %v2564_v22 = vpop.xlane.xlu0 %2563 }
 0x8ff   : > { %3522 = vrcp.f32 %v2564_v22 }
 0x905   : > { %v3523_v23 = vpop.eup %3522 }
 0x906   : > { %v2578_v24 = vmul.f32 %v3523_v23, %v4765_v62 }
 0x908   : > { %v2582_v37 = vpack.c.bf16 %v2578_v24, %v2578_v24  ;;  %v2570_v26 = vpop.xlane.xlu1 %2569 }
 0x909   : > { %3524 = vrcp.f32 %v2570_v26  ;;  %v2573_v31 = vpop.xlane.xlu2 %2572 }
 0x90a   : > { %3238 = vmatmul.msk.bf16.vlgmr.msrb.gmra.mxu0 %vm2537_vm10, %v2582_v37  ;;  %3526 = vrcp.f32 %v2573_v31 }
 0x90f   : > { %v3525_v30 = vpop.eup %3524 }
 0x910   : > { %v2580_v34 = vmul.f32 %v3525_v30, %v4778_v42  ;;  %v2567_v35 = vpop.xlane.xlu1 %2566  ;;  %v3527_v20 = vpop.eup %3526  ;;  %v2687_v42 = vsel %vm1631_vm2, %v2679_v4, 0 }
 0x911   : > { %3528 = vrcp.f32 %v2567_v35  ;;  %v2581_v39 = vmul.f32 %v3527_v20, %v4784_v18  ;;  %2696 = vmatpush.bf16.msra.mxu0 %v2687_v42  ;;  %v2725_v18 = vsel %vm1631_vm2, %v2681_v45, 0  ;;  %v3480_v42 = vld [vmem:[%s4925_s20 + $0x2] ss:$0 sm:$0xff] }
 0x912   : > { %v2584_v38 = vpack.c.bf16 %v2580_v34, %v2580_v34  ;;  %2734 = vmatpush.bf16.msra.mxu2 %v2725_v18  ;;  %v3290_v34 = vld [vmem:[%s4986_s12 + $0x10] sm:$0xff] }
 0x913   : > { %v2585_v40 = vpack.c.bf16 %v2581_v39, %v2581_v39 }
 0x914   : > { %3240 = vmatmul.msk.bf16.vlgmr.msrb.gmra.mxu2 %vm2537_vm10, %v2584_v38 }
 0x915   : > { %3241 = vmatmul.msk.bf16.vlgmr.msrb.gmra.mxu3 %vm2537_vm10, %v2585_v40  ;;  %2846 = vmatpush.bf16.msrb.mxu0 %v3287_v47 }
 0x917   : > { %v3529_v62 = vpop.eup %3528 }
 0x918   : > { %v2579_v43 = vmul.f32 %v3529_v62, %v4793_v28 }
 0x919   : > { %2847 = vmatpush.bf16.msrb.mxu0 %v3286_v33 }
 0x91a   : > { %v2583_v44 = vpack.c.bf16 %v2579_v43, %v2579_v43 }
 0x91c   : > { %3239 = vmatmul.msk.bf16.vlgmr.msrb.gmra.mxu1 %vm2537_vm10, %v2583_v44 }
 0x987   : > { %v2605_v28 = vpop.f32.mrf.mxu0 }
 0x988   : > { %v2675_v52 = vpack.c.bf16 %v2605_v28, %v2605_v28  ;;  %v3481_v28 = vld [vmem:[%s4981_s19 + $0x2] ss:$0 sm:$0xff] }
 0x98a   : > { %3242 = vmatmul.msk.bf16.vlgmr.msra.gmra.mxu0 %vm1503_vm15, %v2675_v52 }
 0x98f   : > { %v2607_v53 = vpop.f32.mrf.mxu0 }
 0x997   : > { %v2649_v56 = vpop.f32.mrf.mxu2 }
 0x998   : > { %v2677_v57 = vpack.c.bf16 %v2649_v56, %v2649_v56  ;;  %v2671_v58 = vpop.f32.mrf.mxu3 }
 0x999   : > { %v2627_v59 = vpop.f32.mrf.mxu1  ;;  %v2678_v25 = vpack.c.bf16 %v2671_v58, %v2671_v58  ;;  %v3289_v58 = vld [vmem:[%s4986_s12 + $0x8] sm:$0xff] }
 0x99a   : > { %v2676_v32 = vpack.c.bf16 %v2627_v59, %v2627_v59  ;;  %3244 = vmatmul.msk.bf16.vlgmr.msra.gmra.mxu2 %vm1503_vm15, %v2677_v57  ;;  %v3288_v59 = vld [vmem:[%s4986_s12] sm:$0xff] }
 0x99b   : > { %3245 = vmatmul.msk.bf16.vlgmr.msra.gmra.mxu3 %vm1503_vm15, %v2678_v25  ;;  %v3482_v25 = vld [vmem:[%s4987_s7] ss:$0 sm:$0xff] }
 0x99c   : > { %3243 = vmatmul.msk.bf16.vlgmr.msra.gmra.mxu1 %vm1503_vm15, %v2676_v32 }
 0x99f   : > { %v2651_v48 = vpop.f32.mrf.mxu2 }
 0x9a0   : > { %v2673_v27 = vpop.f32.mrf.mxu3 }
 0x9a1   : > { %v2629_v29 = vpop.f32.mrf.mxu1 }
 0xa07   : > { %v2698_v55 = vpop.f32.mrf.mxu0 }
 0xa08   : > { %v2759_v5 = vsel %vm971_vm0, %v2698_v55, 0.0 }
 0xa0f   : > { %v2700_v0 = vpop.f32.mrf.mxu0 }
 0xa10   : > { %v3483_v0 = vld [vmem:[%s4989_s24] ss:$0 sm:$0xff] }
 0xa19   : > { %v2717_v2 = vpop.f32.mrf.mxu1 }
 0xa1a   : > { %v2760_v3 = vsel %vm971_vm0, %v2717_v2, 0.0 }
 0xa1b   : > { %v2761_v1 = vadd.f32 %v2760_v3, %v2759_v5 }
 0xa1d   : > { %v2736_v6 = vpop.f32.mrf.mxu2 }
 0xa1e   : > { %v2762_v7 = vsel %vm971_vm0, %v2736_v6, 0.0  ;;  %v2755_v54 = vpop.f32.mrf.mxu3 }
 0xa1f   : > { %v2763_v8 = vadd.f32 %v2762_v7, %v2761_v1  ;;  %v2764_v10 = vsel %vm971_vm0, %v2755_v54, 0.0 }
 0xa21   : > { %v2765_v63 = vadd.f32 %v2764_v10, %v2763_v8  ;;  %v2719_v11 = vpop.f32.mrf.mxu1 }
 0xa23   : > { %v2770_v13 = vadd.f32 %v3479_v9, %v2765_v63 }
 0xa25   : > { %v2738_v14 = vpop.f32.mrf.mxu2  ;;  %v4832_v41 = vadd.f32 %v2770_v13, %v4584_v36 }
 0xa26   : > { %v2757_v21 = vpop.f32.mrf.mxu3 }
 0xa27   : > { %v2774_v15 = vsel %vm971_vm0, %v4832_v41, 0.0 }
 0xa28   : > { %2775 = vadd.xlane.f32.xlu2 %v2774_v15 }
 0xa9b   : > { %v2776_v60 = vpop.xlane.xlu2 %2775 }
 0xa9c   : > { %v2777_v16 = vmul.f32 %v2776_v60, %v4345_v12  ;;  %v3291_v12 = vld [vmem:[%s4986_s12 + $0x18] sm:$0xff] }
 0xa9d   : > { %2895 = vmatpush.bf16.msrb.mxu1 %v3291_v12 }
 0xa9e   : > { %v2778_v61 = vsub.f32 %v4832_v41, %v2777_v16 }
 0xaa0   : > { %v2779_v17 = vmul.f32 %v2778_v61, %v2778_v61  ;;  %v2785_v50 = vmul.f32 %v3480_v42, %v2778_v61 }
 0xaa1   : > { %2896 = vmatpush.bf16.msrb.mxu1 %v3290_v34 }
 0xaa2   : > { %v2780_v19 = vsel %vm971_vm0, %v2779_v17, 0.0 }
 0xaa3   : > { %2781 = vadd.xlane.f32.xlu0 %v2780_v19 }
 0xaa5   : > { %2897 = vmatpush.bf16.msrb.mxu1 %v3289_v58 }
 0xaa9   : > { %2898 = vmatpush.bf16.msrb.mxu1 %v3288_v59 }
 0xb16   : > { %v2782_v22 = vpop.xlane.xlu0 %2781 }
 0xb17   : > { %v2783_v36 = vmul.f32 0.032258064, %v2782_v22 }
 0xb19   : > { %3530 = vrsqrt.f32 %v2783_v36  ;;  %vm2793_vm12 = vcmp.eq.f32.partialorder %v2783_v36, inf  ;;  %v2796_v20 = vand.u32 2147483648, %v2783_v36  ;;  %vm2795_vm13 = vcmp.eq.f32.partialorder %v2783_v36, 0.0 }
 0xb1f   : > { %v3531_v23 = vpop.eup %3530 }
 0xb20   : > { %v2787_v24 = vmul.f32 %v3531_v23, %v2783_v36 }
 0xb22   : > { %v2788_v37 = vmul.f32 %v3531_v23, %v2787_v24 }
 0xb24   : > { %v2789_v26 = vmul.f32 0.5, %v2788_v37 }
 0xb26   : > { %v2790_v31 = vsub.f32 1.5, %v2789_v26 }
 0xb28   : > { %v2791_v30 = vmul.f32 %v3531_v23, %v2790_v31 }
 0xb2a   : > { %v2792_v35 = vmul.f32 %v2791_v30, %v2783_v36 }
 0xb2c   : > { %v2794_v38 = vsel %vm2793_vm12, %v2783_v36, %v2792_v35 }
 0xb2d   : > { %v2797_v39 = vsel %vm2795_vm13, %v2796_v20, %v2794_v38 }
 0xb2e   : > { %v2798_v40 = vadd.f32 1e-06, %v2797_v39 }
 0xb30   : > { %3532 = vrcp.f32 %v2798_v40  ;;  %v2810_v4 = vand.u32 2147483648, %v2798_v40  ;;  %v2808_v46 = vand.u32 2147483647, %v2798_v40  ;;  %vm2804_vm15 = vweird.f32 %v2798_v40 }
 0xb32   : > { %v2811_v18 = vor.u32 1.1754944e-38, %v2810_v4  ;;  %vm2809_vm2 = vcmp.eq.f32.partialorder %v2808_v46, 8.507059e+37 }
 0xb36   : > { %v3533_v62 = vpop.eup %3532 }
 0xb37   : > { %v2800_v43 = vmul.f32 %v3533_v62, %v2798_v40  ;;  %vm2805_vm14 = vweird.f32 %v3533_v62 }
 0xb38   : > { %vm2806_vm1 = vmor %vm2804_vm15, %vm2805_vm14 }
 0xb39   : > { %v2801_v44 = vsub.f32 1.0, %v2800_v43 }
 0xb3b   : > { %v2802_v45 = vmul.f32 %v3533_v62, %v2801_v44 }
 0xb3d   : > { %v2803_v49 = vadd.f32 %v3533_v62, %v2802_v45 }
 0xb3f   : > { %v2807_v51 = vsel %vm2806_vm1, %v3533_v62, %v2803_v49 }
 0xb40   : > { %v2812_v52 = vsel %vm2809_vm2, %v2811_v18, %v2807_v51 }
 0xb41   : > { %v2813_v53 = vmul.f32 %v2812_v52, %v2785_v50 }
 0xb43   : > { %v2815_v56 = vadd.f32 %v3481_v28, %v2813_v53 }
 0xb45   : > { %v2816_v57 = vpack.c.bf16 %v2815_v56, %v2815_v56 }
 0xb47   : > { %3254 = vmatmul.msk.bf16.vlgmr.msrb.gmra.mxu0 %vm971_vm0, %v2816_v57 }
 0xbc4   : > { %v2849_v32 = vpop.f32.mrf.mxu0 }
 0xbc5   : > { %v2850_v48 = vadd.f32 %v3482_v25, %v2849_v32 }
 0xbc7   : > { %v2853_v27 = vmax.f32 %v2850_v48, 0.0 }
 0xbc9   : > { %v2854_v29 = vpack.c.bf16 %v2853_v27, %v2853_v27 }
 0xbcb   : > { %3271 = vmatmul.msk.bf16.vlgmr.msrb.gmra.mxu1 %vm2887_vm3, %v2854_v29 }
 0xbcc   : > { %v2851_v55 = vpop.f32.mrf.mxu0 }
 0xc48   : > { %v2900_v2 = vpop.f32.mrf.mxu1 }
 0xc49   : > { %v2904_v3 = vadd.f32 %v2900_v2, %v4832_v41 }
 0xc4b   : > { %v2909_v5 = vadd.f32 %v3483_v0, %v2904_v3 }
 0xc4d   : > { %2910 = vst.msk [vmem:[%s938_s21] sm:$0xff] %vm971_vm0, %v2909_v5 }
 0xc4e   : > { %3921 = shalt.err (!%p3918_p0)
}
 0xc4f   : > { %3336 = dma.vmem_to_hbm [thread:$0]  (%p4275_p2), %s2926_s2, 128, %s2928_s18, %s2912_s11  }
 0xc50   : > { %v2902_v1 = vpop.f32.mrf.mxu1 }
 0xc51 PF: > { %s2939_s10 = sand.u32 1, %s3984_s3   ;;  %p3377_p5 = pnand %p3163_p4, %p4282_p6 }
 0xc52   : > { %s2940_s13 = scalar_lea.sflag [#allocation4], %s2939_s10 }
 0xc53   : > { %p3378_p7 = pneg %p3377_p5 }
 0xc55   : > { %3979 = dma.done.wait (%p3378_p7), %s2940_s13, 128  }
 0xc56   : > { %3981 = vsyncadd (%p3378_p7), %s2940_s13, 4294967168  ;;  %s46_s0 = sadd.s32 1, %s4004_s0   ;;  %s4990_s5 = sld [smem:[#allocation34_spill]] }
 0xc57   : > { %p43_p8 = scmp.ge.s32.totalorder %s46_s0, 4   ;;  %s4991_s1 = sld [smem:[#allocation33_spill]] }
 0xc58   : > { %s4992_s3 = smov %s3988_s28  ;;  %s4993_s28 = smov %s3992_s29 }
 0xc59   : > { %s4995_s30 = smov %s4000_s4  ;;  %45 = sbr.rel (!%p43_p8) target bundleno = 36 (0x24), region = 213 }
 0xc5c   : > { %s4994_s29 = smov %s4990_s5 }
 0xc5d   : > { %s4996_s4 = smov %s4991_s1 }
 0xc5e   :  { %2946 = vsyncpa [#allocation3], 1 }
 0xc5f   :  { %2948 = vsyncpa [#allocation3 + $0x1], 1 }
 0xc60   :  { %2949 = vsyncpa [#allocation6], 1 }
 0xc61   :  { %2951 = vsyncpa [#allocation6 + $0x1], 1 }
 0xc62   :  { %2952 = vsyncpa [#allocation9], 1 }
 0xc63   :  { %2953 = vsyncpa [#allocation12], 1 }
 0xc64   :  { %2954 = vsyncpa [#allocation15], 1 }
 0xc65   :  { %2955 = vsyncpa [#allocation18], 1 }
 0xc66   :  { %2956 = vsyncpa [#allocation21], 1 }
 0xc67   :  { %2957 = vsyncpa [#allocation4], 1 }
 0xc68   :  { %2959 = vsyncpa [#allocation4 + $0x1], 1 }

// kernel: tpu_custom_call.1
= control target key start
LH: loop header
LB: loop body
LE: loop exit
PB: predicated region body
PF: predicated region fallthrough
CT: control target
= control target key end

     0   :  { %s4905_s0 = inlined_call_operand.hbm [shape: bf16[2,8,32], index: 0, kind: input, shape index: {}]   ;;  %s4906_s1 = inlined_call_operand.vmem [shape: bf16[2,10,32], index: 1, kind: input, shape index: {}]   ;;  %s4907_s2 = inlined_call_operand.vmem [shape: f32[2,8,8], index: 2, kind: input, shape index: {}]   ;;  %s4908_s3 = inlined_call_operand.hbm [shape: f32[2,1,10], index: 3, kind: input, shape index: {}]   ;;  %s4909_s4 = inlined_call_operand.vmem [shape: bf16[32,32], index: 4, kind: input, shape index: {}]   ;;  %s4910_s5 = inlined_call_operand.hbm [shape: f32[1,32], index: 5, kind: input, shape index: {}]   ;;  %s4911_s6 = inlined_call_operand.vmem [shape: bf16[32,64], index: 6, kind: input, shape index: {}]   ;;  %s4912_s7 = inlined_call_operand.hbm [shape: f32[1,64], index: 7, kind: input, shape index: {}]   ;;  %s4913_s8 = inlined_call_operand.vmem [shape: bf16[4,8,32], index: 8, kind: input, shape index: {}]   ;;  %s4914_s9 = inlined_call_operand.hbm [shape: f32[1,32], index: 9, kind: input, shape index: {}]   ;;  %s4915_s10 = inlined_call_operand.hbm [shape: bf16[32,32], index: 10, kind: input, shape index: {}]   ;;  %s4916_s11 = inlined_call_operand.hbm [shape: f32[1,32], index: 11, kind: input, shape index: {}]   ;;  %s4917_s12 = inlined_call_operand.hbm [shape: bf16[32,64], index: 12, kind: input, shape index: {}]   ;;  %s4918_s13 = inlined_call_operand.hbm [shape: f32[1,64], index: 13, kind: input, shape index: {}]   ;;  %s4919_s14 = inlined_call_operand.hbm [shape: bf16[4,8,32], index: 14, kind: input, shape index: {}]   ;;  %s4920_s15 = inlined_call_operand.hbm [shape: f32[1,32], index: 15, kind: input, shape index: {}]   ;;  %s4921_s16 = inlined_call_operand.hbm [shape: bf16[32,64], index: 16, kind: input, shape index: {}]   ;;  %s4922_s17 = inlined_call_operand.vmem [shape: f32[1,64], index: 17, kind: input, shape index: {}]   ;;  %s4923_s18 = inlined_call_operand.vmem [shape: bf16[64,32], index: 18, kind: input, shape index: {}]   ;;  %s4924_s19 = inlined_call_operand.vmem [shape: f32[1,32], index: 19, kind: input, shape index: {}]   ;;  %s4925_s20 = inlined_call_operand.vmem [shape: f32[3,32], index: 20, kind: input, shape index: {}]   ;;  %s4926_s21 = inlined_call_operand.vmem [shape: f32[3,32], index: 21, kind: input, shape index: {}]   ;;  %s4927_s22 = inlined_call_operand.hbm [shape: f32[2,8,32], index: 22, kind: output, shape index: {}]  }
   0x1   :  { %4936 = sst [smem:[#allocation35_spill]] %s4905_s0 }
   0x2   :  { %4937 = sst [smem:[#allocation36_spill]] %s4906_s1 }
   0x3   :  { %4938 = sst [smem:[#allocation37_spill]] %s4907_s2 }
   0x4   :  { %4939 = sst [smem:[#allocation38_spill]] %s4908_s3 }
   0x5   :  { %4940 = sst [smem:[#allocation39_spill]] %s4909_s4 }
   0x6   :  { %4941 = sst [smem:[#allocation40_spill]] %s4910_s5 }
   0x7   :  { %4942 = sst [smem:[#allocation41_spill]] %s4911_s6 }
   0x8   :  { %4943 = sst [smem:[#allocation42_spill]] %s4912_s7 }
   0x9   :  { %4944 = sst [smem:[#allocation43_spill]] %s4913_s8 }
   0xa   :  { %4945 = sst [smem:[#allocation44_spill]] %s4914_s9 }
   0xb   :  { %4946 = sst [smem:[#allocation45_spill]] %s4915_s10 }
   0xc   :  { %4947 = sst [smem:[#allocation46_spill]] %s4916_s11 }
   0xd   :  { %4948 = sst [smem:[#allocation47_spill]] %s4917_s12 }
   0xe   :  { %4949 = sst [smem:[#allocation48_spill]] %s4918_s13 }
   0xf   :  { %4950 = sst [smem:[#allocation49_spill]] %s4919_s14 }
  0x10   :  { %4951 = sst [smem:[#allocation50_spill]] %s4920_s15 }
  0x11   :  { %4952 = sst [smem:[#allocation51_spill]] %s4921_s16 }
  0x12   :  { %4953 = sst [smem:[#allocation52_spill]] %s4922_s17 }
  0x13   :  { %4954 = sst [smem:[#allocation53_spill]] %s4923_s18 }
  0x14   :  { %4955 = sst [smem:[#allocation54_spill]] %s4924_s19 }
  0x15   :  { %4956 = sst [smem:[#allocation55_spill]] %s4926_s21 }
  0x16   :  { %4957 = sst [smem:[#allocation56_spill]] %s4927_s22 }
  0x17   :  { %27 = vsyncpa [#allocation3], 0 }
  0x18   :  { %29 = vsyncpa [#allocation3 + $0x1], 0 }
  0x19   :  { %30 = vsyncpa [#allocation6], 0 }
  0x1a   :  { %32 = vsyncpa [#allocation6 + $0x1], 0 }
  0x1b   :  { %33 = vsyncpa [#allocation9], 0 }
  0x1c   :  { %34 = vsyncpa [#allocation12], 0 }
  0x1d   :  { %35 = vsyncpa [#allocation15], 0 }
  0x1e   :  { %36 = vsyncpa [#allocation18], 0 }
  0x1f   :  { %37 = vsyncpa [#allocation21], 0 }
  0x20   :  { %38 = vsyncpa [#allocation4], 0 }
  0x21   :  { %40 = vsyncpa [#allocation4 + $0x1], 0  ;;  %s4141_s3 = smov 0   ;;  %s4143_s28 = smov 0  }
  0x22   :  { %s4145_s29 = smov 0   ;;  %s4147_s30 = smov 0  }
  0x23   :  { %s4149_s4 = smov 0   ;;  %s4151_s0 = smov 0  }
  0x24 LB: > { %4958 = sst [smem:[#allocation32_spill]] %s3996_s30  ;;  %s4172_s23 = sadd.s32 4294967295, %s4004_s0   ;;  %s4004_s0 = sphi %s4151_s0, %s46_s0   ;;  %s4000_s4 = sphi %s4149_s4, %s4996_s4   ;;  %s3996_s30 = sphi %s4147_s30, %s4995_s30   ;;  %s3992_s29 = sphi %s4145_s29, %s4994_s29   ;;  %s3988_s28 = sphi %s4143_s28, %s4993_s28   ;;  %s3984_s3 = sphi %s4141_s3, %s4992_s3  }
  0x25   : > { %p3152_p0 = scmp.ge.s32.totalorder %s4004_s0, 1  ;;  %p79_p1 = scmp.eq.s32.totalorder %s4172_s23, 0 }
  0x26   : > { %p575_p2 = scmp.lt.s32.totalorder %s4004_s0, 3  ;;  %s4959_s24 = sld [smem:[#allocation40_spill]] }
  0x27   : > { %p3163_p4 = scmp.ge.s32.totalorder %s4004_s0, 2  ;;  %s4006_s26 = smov [#allocation7]  }
  0x28   : > { %p4180_p3 = pnand %p3152_p0, %p575_p2  ;;  %s592_s2 = sshll.u32 %s4006_s26, 4  ;;  %s593_s2 = int_to_ptr.vmem [resolvable:$true] %s592_s2 }
  0x29   : > { %s4961_s7 = sld [smem:[#allocation42_spill]]  ;;  %s4007_s18 = smov [#allocation8]  }
  0x2a   : > { %p3338_p5 = pneg %p4180_p3  ;;  %s4963_s10 = sld [smem:[#allocation45_spill]] }
  0x2b   : > { %s607_s26 = sshll.u32 %s4007_s18, 4  ;;  %s4008_s19 = smov [#allocation11]   ;;  %s608_s26 = int_to_ptr.vmem [resolvable:$true] %s607_s26 }
  0x2c   : > { %s590_s6 = sshll.u32 %s4959_s24, 4  ;;  %p4192_p6 = pnand %p3338_p5, %p79_p1  ;;  %s591_s6 = int_to_ptr.hbm [resolvable:$true] %s590_s6 }
  0x2d   : > { %s633_s27 = sshll.u32 %s4008_s19, 4  ;;  %s4964_s12 = sld [smem:[#allocation47_spill]]  ;;  %s634_s27 = int_to_ptr.vmem [resolvable:$true] %s633_s27 }
  0x2e   : > { %3341 = dma.hbm_to_vmem [thread:$0]  (!%p4192_p6), %s591_s6, 16, %s593_s2, [#allocation6]  }
  0x2f   : > { %s605_s22 = sshll.u32 %s4961_s7, 4  ;;  %s4009_s21 = smov 64   ;;  %s606_s22 = int_to_ptr.hbm [resolvable:$true] %s605_s22 }
  0x30   : > { %s631_s17 = sshll.u32 %s4963_s10, 4  ;;  %s4010_s5 = smov 4   ;;  %s632_s17 = int_to_ptr.hbm [resolvable:$true] %s631_s17 }
  0x31   : > { %3344 = dma.hbm_to_vmem [thread:$0]  (!%p4192_p6), %s606_s22, 16, %s608_s26, [#allocation9]  }
  0x32   : > { %3350 = dma.hbm_to_vmem [thread:$0]  (!%p4192_p6), %s632_s17, 256, %s634_s27, [#allocation12], %s4009_s21, %s4009_s21, %s4010_s5  }
  0x33   : > { %s657_s30 = sshll.u32 %s4964_s12, 4  ;;  %s4011_s18 = smov [#allocation14]   ;;  %s658_s30 = int_to_ptr.hbm [resolvable:$true] %s657_s30 }
  0x34   : > { %s659_s6 = sshll.u32 %s4011_s18, 4  ;;  %s4965_s14 = sld [smem:[#allocation49_spill]]  ;;  %s660_s6 = int_to_ptr.vmem [resolvable:$true] %s659_s6 }
  0x35   : > { %3356 = dma.hbm_to_vmem [thread:$0]  (!%p4192_p6), %s658_s30, 256, %s660_s6, [#allocation15], %s4009_s21, %s4009_s21, %s4010_s5  }
  0x36   : > { %s4966_s9 = sld [smem:[#allocation44_spill]]  ;;  %s4012_s17 = smov [#allocation17]  }
  0x37   : > { %s685_s19 = sshll.u32 %s4012_s17, 4  ;;  %s4013_s27 = smov [#allocation10]   ;;  %s686_s19 = int_to_ptr.vmem [resolvable:$true] %s685_s19 }
  0x38   : > { %s622_s18 = sshll.u32 %s4013_s27, 4  ;;  %s4967_s11 = sld [smem:[#allocation46_spill]]  ;;  %s623_s18 = int_to_ptr.vmem [resolvable:$true] %s622_s18 }
  0x39   : > { %s4968_s13 = sld [smem:[#allocation48_spill]]  ;;  %s4014_s17 = smov [#allocation13]  }
  0x3a   : > { %s683_s24 = sshll.u32 %s4965_s14, 4  ;;  %s4969_s15 = sld [smem:[#allocation50_spill]]  ;;  %s684_s24 = int_to_ptr.hbm [resolvable:$true] %s683_s24 }
  0x3b   : > { %3362 = dma.hbm_to_vmem [thread:$0]  (!%p4192_p6), %s684_s24, 256, %s686_s19, [#allocation18], %s4009_s21, %s4009_s21, %s4010_s5  }
  0x3c   : > { %s620_s26 = sshll.u32 %s4966_s9, 4  ;;  %s648_s9 = sshll.u32 %s4014_s17, 4  ;;  %s621_s26 = int_to_ptr.hbm [resolvable:$true] %s620_s26  ;;  %s649_s9 = int_to_ptr.vmem [resolvable:$true] %s648_s9 }
  0x3d   : > { %3347 = dma.hbm_to_vmem [thread:$0]  (!%p4192_p6), %s621_s26, 16, %s623_s18, [#allocation9]  }
  0x3e   : > { %s646_s30 = sshll.u32 %s4967_s11, 4  ;;  %s4015_s24 = smov [#allocation16]   ;;  %s647_s30 = int_to_ptr.hbm [resolvable:$true] %s646_s30 }
  0x3f   : > { %s672_s8 = sshll.u32 %s4968_s13, 4  ;;  %s674_s19 = sshll.u32 %s4015_s24, 4  ;;  %s673_s8 = int_to_ptr.hbm [resolvable:$true] %s672_s8  ;;  %s675_s19 = int_to_ptr.vmem [resolvable:$true] %s674_s19 }
  0x40   : > { %3353 = dma.hbm_to_vmem [thread:$0]  (!%p4192_p6), %s647_s30, 16, %s649_s9, [#allocation12]  }
  0x41   : > { %s698_s26 = sshll.u32 %s4969_s15, 4  ;;  %s4970_s16 = sld [smem:[#allocation51_spill]]  ;;  %s699_s26 = int_to_ptr.hbm [resolvable:$true] %s698_s26 }
  0x42   : > { %3359 = dma.hbm_to_vmem [thread:$0]  (!%p4192_p6), %s673_s8, 16, %s675_s19, [#allocation15]  }
  0x43   : > { %s4016_s30 = smov [#allocation19]   ;;  %s4017_s7 = smov [#allocation20]  }
  0x44   : > { %s700_s6 = sshll.u32 %s4016_s30, 4  ;;  %s711_s17 = sshll.u32 %s4017_s7, 4  ;;  %s701_s6 = int_to_ptr.vmem [resolvable:$true] %s700_s6  ;;  %s712_s17 = int_to_ptr.vmem [resolvable:$true] %s711_s17 }
  0x45   : > { %3365 = dma.hbm_to_vmem [thread:$0]  (!%p4192_p6), %s699_s26, 16, %s701_s6, [#allocation18]  }
  0x46   : > { %s3151_s8 = sadd.s32 4294967294, %s4004_s0   ;;  %s58_s24 = sadd.s32 1, %s4000_s4 }
  0x47   : > { %s709_s9 = sshll.u32 %s4970_s16, 4  ;;  %p60_p7 = scmp.ge.s32.totalorder %s58_s24, 2  ;;  %s710_s9 = int_to_ptr.hbm [resolvable:$true] %s709_s9 }
  0x48   : > { %3368 = dma.hbm_to_vmem [thread:$0]  (!%p4192_p6), %s710_s9, 256, %s712_s17, [#allocation21], %s4009_s21, %s4009_s21, %s4010_s5  }
  0x49   : > { %s65_s19 = sadd.s32 1, %s3992_s29  ;;  %p72_p8 = scmp.ne.s32.totalorder %s3992_s29, %s3988_s28 }
  0x4a   : > { %p73_p9 = scmp.eq.s32.totalorder %s4004_s0, 0  ;;  %s4998_s24 = smov (%p60_p7, %s58_s24), 0 }
  0x4b   : > { %4971 = sst [smem:[#allocation33_spill]] %s4998_s24  ;;  %p78_p11 = scmp.ne.s32.totalorder %s3988_s28, %s3984_s3 }
  0x4c   : > { %p4260_p10 = por %p73_p9, %p72_p8  ;;  %s62_s1 = ssub.s32 %s4000_s4, %s4998_s24 }
  0x4d   : > { %p562_p12 = scmp.eq.s32.totalorder %s4172_s23, 1  ;;  %p63_p13 = scmp.eq.s32.totalorder %s62_s1, 0 }
  0x4e   : > { %p4271_p0 = por %p79_p1, %p78_p11  ;;  %p568_p5 = scmp.eq.s32.totalorder %s3151_s8, 1 }
  0x4f   : > { %p4275_p2 = por %p562_p12, %p72_p8  ;;  %p3390_p7 = scmp.lt.s32.totalorder %s4004_s0, 2 }
  0x50   : > { %s4280_s2 = scalar_select %p63_p13, %s3992_s29, %s65_s19  }
  0x51   : > { %p4282_p6 = por %p568_p5, %p78_p11  ;;  %s740_s18 = sand.u32 1, %s3992_s29  }
  0x52   : > { %4975 = sst [smem:[#allocation34_spill]] %s4280_s2  ;;  %s3165_s22 = sshll.u32 %s4000_s4, 2 }
  0x53   : > { %s3164_s9 = sshll.u32 %s740_s18, 2  ;;  %s4977_s7 = sld [smem:[#allocation35_spill]] }
  0x54   : > { %s744_s10 = scalar_lea.vmem [#allocation2], %s3164_s9  ;;  %p3370_p8 = pnand %p3390_p7, %p4260_p10 }
  0x55   : > { %s752_s11 = sshll.u32 %s744_s10, 4  ;;  %s777_s8 = sand.u32 1, %s4004_s0   ;;  %s753_s11 = int_to_ptr.vmem [resolvable:$true] %s752_s11 }
  0x56   : > { %s4978_s13 = sld [smem:[#allocation38_spill]]  ;;  %s741_s15 = scalar_lea.sflag [#allocation3], %s740_s18 }
  0x57   : > { %s780_s24 = scalar_lea.vmem [#allocation5], %s740_s18  ;;  %s4302_s10 = sand.u32 (!%p4180_p3), 1, %s3988_s28  }
  0x58   : > { %s787_s2 = sshll.u32 %s780_s24, 4  ;;  %s3167_s12 = sshll.u32 (!%p4180_p3), %s4302_s10, 2  ;;  %s788_s2 = int_to_ptr.vmem [resolvable:$true] %s787_s2 }
  0x59   : > { %s748_s17 = scalar_lea.hbm %s4977_s7, %s3165_s22  ;;  %s778_s22 = scalar_lea.sflag [#allocation6], %s777_s8 }
  0x5a   : > { %s750_s1 = sshll.u32 %s748_s17, 4  ;;  %796 = sbr.rel (%p4180_p3) target bundleno = 3153 (0xc51), region = 108  ;;  %s751_s1 = int_to_ptr.hbm [resolvable:$true] %s750_s1 }
  0x5b   : > { %3372 = dma.hbm_to_vmem [thread:$0]  (!%p3370_p8), %s751_s1, 64, %s753_s11, %s741_s15  }
  0x5c   : > { %s783_s14 = scalar_lea.hbm %s4978_s13, %s4000_s4  ;;  %s799_s13 = scalar_lea.sflag (!%p4180_p3), [#allocation3], %s4302_s10 }
  0x5d   : > { %s785_s16 = sshll.u32 %s783_s14, 4  ;;  %s802_s27 = scalar_lea.vmem (!%p4180_p3), [#allocation2], %s3167_s12  ;;  %s786_s16 = int_to_ptr.hbm [resolvable:$true] %s785_s16 }
  0x5e   : > { %3375 = dma.hbm_to_vmem [thread:$0]  (!%p3370_p8), %s786_s16, 16, %s788_s2, %s778_s22  }
  0x5f   : > { %3947 = dma.done.wait (%p4271_p0), %s799_s13, 64  }
  0x60   : > { %3949 = vsyncadd (%p4271_p0), %s799_s13, 4294967232  ;;  %s808_s11 = sand.u32 1, %s4172_s23   ;;  %s811_s15 = scalar_lea.vmem [#allocation5], %s4302_s10 }
  0x61   : > { %s809_s14 = scalar_lea.sflag [#allocation6], %s808_s11 }
  0x62   : > { %3951 = dma.done.wait (%p4271_p0), %s809_s14, 16  }
  0x63   : > { %3953 = vsyncadd (%p4271_p0), %s809_s14, 4294967280 }
  0x64   : > { %3955 = dma.done.wait (%p79_p1), [#allocation6], 16  }
  0x65   : > { %3957 = vsyncadd (%p79_p1), [#allocation6], 4294967280 }
  0x66   : > { %3959 = dma.done.wait (%p79_p1), [#allocation9], 32  }
  0x67   : > { %3961 = vsyncadd (%p79_p1), [#allocation9], 4294967264 }
  0x68   : > { %3963 = dma.done.wait (%p79_p1), [#allocation12], 272  }
  0x69   : > { %3965 = vsyncadd (%p79_p1), [#allocation12], 4294967024 }
  0x6a   : > { %3967 = dma.done.wait (%p79_p1), [#allocation15], 272  }
  0x6b   : > { %3969 = vsyncadd (%p79_p1), [#allocation15], 4294967024 }
  0x6c   : > { %3971 = dma.done.wait (%p79_p1), [#allocation18], 272  }
  0x6d   : > { %3973 = vsyncadd (%p79_p1), [#allocation18], 4294967024 }
  0x6e   : > { %3975 = dma.done.wait (%p79_p1), [#allocation21], 256  }
  0x6f   : > { %3977 = vsyncadd (%p79_p1), [#allocation21], 4294967040  ;;  %v953_v0 = vld [vmem:[%s802_s27] sm:$0xf]  ;;  %vm971_vm0 = vcmask 261120   ;;  %v4018_v6 = vmov 32.0  }
  0x70   : > { %v954_v1 = vunpack.c.l.bf16 %v953_v0  ;;  %v959_v2 = vld [vmem:[%s802_s27] sm:$0xf]  ;;  %3484 = vrcp.f32 %v4018_v6  ;;  %s4979_s25 = sld [smem:[#allocation41_spill]]  ;;  %s4019_s22 = smov 104   ;;  %vm1167_vm14 = vcmask 1047556   ;;  %vm1503_vm15 = vcmask 64512  }
  0x71   : > { %v4341_v4 = vunpack.c.l.bf16 %v959_v2  ;;  %s4980_s9 = sld [smem:[#allocation39_spill]]  ;;  %v3470_v57 = vld [vmem:[%s4925_s20] ss:$0 sm:$0xff]  ;;  %s4020_s12 = smov 120  }
  0x72   : > { %v972_v3 = vsel %vm971_vm0, %v954_v1, 0.0  ;;  %s4981_s19 = sld [smem:[#allocation55_spill]]  ;;  %s4021_s13 = smov 96  }
  0x73   : > { %973 = vadd.xlane.f32.xlu0 %v972_v3  ;;  %v1022_v5 = vsel %vm971_vm0, %v4341_v4, 0.0  ;;  %s4022_s27 = smov 112   ;;  %s4982_s11 = sld [smem:[#allocation32_spill]] }
  0x74   : > { %s4983_s21 = sld [smem:[#allocation37_spill]]  ;;  %s3178_s17 = sshll.u32 %s4302_s10, 3 }
  0x75   : > { %s4984_s6 = sld [smem:[#allocation43_spill]] }
  0x76   : > { %v3485_v7 = vpop.eup %3484  ;;  %v3281_v23 = vld [vmem:[%s4979_s25 + $0x8] sm:$0xff]  ;;  %v3280_v25 = vld [vmem:[%s4979_s25] sm:$0xff]  ;;  %s4985_s18 = sld [smem:[#allocation36_spill]] }
  0x77   : > { %v976_v8 = vmul.f32 32.0, %v3485_v7  ;;  %vm980_vm1 = vweird.f32 %v3485_v7  ;;  %1129 = vmatpush.bf16.msra.mxu1 %v3281_v23  ;;  %v3279_v35 = vld [vmem:[%s4980_s9 + $0x8] sm:$0xff]  ;;  %v3278_v38 = vld [vmem:[%s4980_s9] sm:$0xff]  ;;  %s4987_s7 = sld [smem:[#allocation52_spill]] }
  0x78   : > { %1092 = vmatpush.bf16.msra.mxu0 %v3279_v35  ;;  %s4989_s24 = sld [smem:[#allocation54_spill]] }
  0x79   : > { %v977_v9 = vsub.f32 1.0, %v976_v8  ;;  %p939_p1 = scmp.lt.s32.totalorder %s4982_s11, 1 }
  0x7b   : > { %1023 = vadd.xlane.f32.xlu0 %v1022_v5  ;;  %v978_v10 = vmul.f32 %v3485_v7, %v977_v9  ;;  %1130 = vmatpush.bf16.msra.mxu1 %v3280_v25  ;;  %s4482_s14 = scalar_select %p939_p1, %s4982_s11, 1 }
  0x7c   : > { %1093 = vmatpush.bf16.msra.mxu0 %v3278_v38 }
  0x7d   : > { %v979_v11 = vadd.f32 %v3485_v7, %v978_v10  ;;  %s3276_s16 = sshll.u32 %s4482_s14, 3 }
  0x7e   : > { %s950_s2 = scalar_lea.vmem %s4983_s21, %s3276_s16  ;;  %s943_s30 = scalar_lea.vmem %s4985_s18, %s3276_s16 }
  0x7f   : > { %v4345_v12 = vsel %vm980_vm1, %v3485_v7, %v979_v11  ;;  %s938_s21 = scalar_lea.vmem [#allocation22], %s3178_s17 }
  0xe6   : > { %v974_v13 = vpop.xlane.xlu0 %973 }
  0xe7   : > { %v982_v14 = vmul.f32 %v4345_v12, %v974_v13 }
  0xe9   : > { %v4348_v15 = vsub.f32 %v954_v1, %v982_v14  ;;  %v3471_v1 = vld [vmem:[%s4981_s19] ss:$0 sm:$0xff] }
  0xeb   : > { %v984_v16 = vmul.f32 %v4348_v15, %v4348_v15  ;;  %v990_v63 = vmul.f32 %v3470_v57, %v4348_v15 }
  0xed   : > { %v985_v17 = vsel %vm971_vm0, %v984_v16, 0.0 }
  0xee   : > { %986 = vadd.xlane.f32.xlu1 %v985_v17  ;;  %v1024_v18 = vpop.xlane.xlu0 %1023 }
  0xef   : > { %v1025_v19 = vmul.f32 %v1024_v18, %v4345_v12 }
  0xf1   : > { %v4355_v20 = vsub.f32 %v4341_v4, %v1025_v19 }
  0xf3   : > { %v1027_v21 = vmul.f32 %v4355_v20, %v4355_v20  ;;  %v1032_v15 = vmul.f32 %v3470_v57, %v4355_v20  ;;  %v3473_v20 = vld [vmem:[#allocation7] ss:$0 sm:$0xff] }
  0xf5   : > { %v1028_v22 = vsel %vm971_vm0, %v1027_v21, 0.0 }
  0xf6   : > { %1029 = vadd.xlane.f32.xlu1 %v1028_v22  ;;  %v3472_v22 = vld [vmem:[#allocation8] ss:$0 sm:$0xff] }
 0x161   : > { %v987_v24 = vpop.xlane.xlu1 %986 }
 0x162   : > { %v988_v26 = vmul.f32 0.032258064, %v987_v24 }
 0x164   : > { %3486 = vrsqrt.f32 %v988_v26  ;;  %vm998_vm2 = vcmp.eq.f32.partialorder %v988_v26, inf  ;;  %v1001_v41 = vand.u32 2147483648, %v988_v26  ;;  %vm1000_vm3 = vcmp.eq.f32.partialorder %v988_v26, 0.0 }
 0x169   : > { %v1030_v27 = vpop.xlane.xlu1 %1029 }
 0x16a   : > { %v3487_v28 = vpop.eup %3486  ;;  %v1031_v29 = vmul.f32 0.032258064, %v1030_v27 }
 0x16b   : > { %v992_v30 = vmul.f32 %v3487_v28, %v988_v26 }
 0x16c   : > { %3488 = vrsqrt.f32 %v1031_v29  ;;  %vm1040_vm4 = vcmp.eq.f32.partialorder %v1031_v29, inf  ;;  %v1043_v49 = vand.u32 2147483648, %v1031_v29  ;;  %vm1042_vm5 = vcmp.eq.f32.partialorder %v1031_v29, 0.0 }
 0x16d   : > { %v993_v31 = vmul.f32 %v3487_v28, %v992_v30 }
 0x16f   : > { %v994_v32 = vmul.f32 0.5, %v993_v31 }
 0x171   : > { %v995_v33 = vsub.f32 1.5, %v994_v32 }
 0x172   : > { %v3489_v34 = vpop.eup %3488 }
 0x173   : > { %v996_v36 = vmul.f32 %v3487_v28, %v995_v33  ;;  %v1034_v37 = vmul.f32 %v3489_v34, %v1031_v29 }
 0x175   : > { %v997_v39 = vmul.f32 %v996_v36, %v988_v26  ;;  %v1035_v40 = vmul.f32 %v3489_v34, %v1034_v37 }
 0x177   : > { %v999_v42 = vsel %vm998_vm2, %v988_v26, %v997_v39  ;;  %v1036_v43 = vmul.f32 0.5, %v1035_v40  ;;  %vm1631_vm2 = vcmask 1043456  }
 0x178   : > { %v1002_v44 = vsel %vm1000_vm3, %v1001_v41, %v999_v42 }
 0x179   : > { %v1037_v45 = vsub.f32 1.5, %v1036_v43  ;;  %v1003_v46 = vadd.f32 1e-06, %v1002_v44  ;;  %v4024_v43 = vmov 1934713408  }
 0x17a   : > { %v1172_v44 = vunpack.c.l.s4 %v4024_v43 }
 0x17b   : > { %v1038_v47 = vmul.f32 %v3489_v34, %v1037_v45  ;;  %3490 = vrcp.f32 %v1003_v46  ;;  %v1015_v56 = vand.u32 2147483648, %v1003_v46  ;;  %v1013_v59 = vand.u32 2147483647, %v1003_v46 }
 0x17c   : > { %vm1009_vm7 = vweird.f32 %v1003_v46  ;;  %v4023_v34 = vmov 1983009808  }
 0x17d   : > { %v1039_v48 = vmul.f32 %v1038_v47, %v1031_v29  ;;  %v1016_v62 = vor.u32 1.1754944e-38, %v1015_v56  ;;  %vm1014_vm9 = vcmp.eq.f32.partialorder %v1013_v59, 8.507059e+37  ;;  %v1158_v35 = vunpack.c.l.s4 %v4023_v34 }
 0x17f   : > { %v1041_v50 = vsel %vm1040_vm4, %v1031_v29, %v1039_v48  ;;  %v4398_v37 = vunpack.c.0.s8 %v1158_v35 }
 0x180   : > { %v1044_v51 = vsel %vm1042_vm5, %v1043_v49, %v1041_v50 }
 0x181   : > { %v3491_v52 = vpop.eup %3490  ;;  %v1045_v53 = vadd.f32 1e-06, %v1044_v51 }
 0x182   : > { %v1005_v54 = vmul.f32 %v3491_v52, %v1003_v46  ;;  %vm1010_vm6 = vweird.f32 %v3491_v52 }
 0x183   : > { %3492 = vrcp.f32 %v1045_v53  ;;  %vm1011_vm8 = vmor %vm1009_vm7, %vm1010_vm6  ;;  %v1057_v7 = vand.u32 2147483648, %v1045_v53  ;;  %v1055_v10 = vand.u32 2147483647, %v1045_v53  ;;  %vm1051_vm11 = vweird.f32 %v1045_v53 }
 0x184   : > { %v1006_v55 = vsub.f32 1.0, %v1005_v54  ;;  %v4410_v54 = vunpack.c.0.s8 %v1172_v44 }
 0x185   : > { %v1058_v14 = vor.u32 1.1754944e-38, %v1057_v7  ;;  %vm1056_vm13 = vcmp.eq.f32.partialorder %v1055_v10, 8.507059e+37 }
 0x186   : > { %v1007_v58 = vmul.f32 %v3491_v52, %v1006_v55 }
 0x188   : > { %v1008_v60 = vadd.f32 %v3491_v52, %v1007_v58 }
 0x189   : > { %v3493_v61 = vpop.eup %3492 }
 0x18a   : > { %v1012_v0 = vsel %vm1011_vm8, %v3491_v52, %v1008_v60  ;;  %v1047_v2 = vmul.f32 %v3493_v61, %v1045_v53  ;;  %vm1052_vm10 = vweird.f32 %v3493_v61 }
 0x18b   : > { %v1017_v3 = vsel %vm1014_vm9, %v1016_v62, %v1012_v0  ;;  %vm1053_vm12 = vmor %vm1051_vm11, %vm1052_vm10  ;;  %vm2537_vm10 = vcmask 80896   ;;  %vm2592_vm11 = vcmask 1044480  }
 0x18c   : > { %v1018_v5 = vmul.f32 %v1017_v3, %v990_v63  ;;  %v1048_v6 = vsub.f32 1.0, %v1047_v2 }
 0x18e   : > { %v1020_v8 = vadd.f32 %v3471_v1, %v1018_v5  ;;  %v1049_v9 = vmul.f32 %v3493_v61, %v1048_v6 }
 0x190   : > { %v1021_v11 = vpack.c.bf16 %v1020_v8, %v1020_v8  ;;  %v1050_v13 = vadd.f32 %v3493_v61, %v1049_v9 }
 0x192   : > { %3199 = vmatmul.msk.bf16.vlgmr.msra.gmra.mxu1 %vm971_vm0, %v1021_v11  ;;  %v1054_v16 = vsel %vm1053_vm12, %v3493_v61, %v1050_v13 }
 0x193   : > { %v1059_v17 = vsel %vm1056_vm13, %v1058_v14, %v1054_v16 }
 0x194   : > { %v1060_v18 = vmul.f32 %v1059_v17, %v1032_v15 }
 0x196   : > { %v1061_v19 = vadd.f32 %v3471_v1, %v1060_v18 }
 0x198   : > { %v1062_v21 = vpack.c.bf16 %v1061_v19, %v1061_v19 }
 0x19a   : > { %3190 = vmatmul.msk.bf16.vlgmr.msra.gmra.mxu0 %vm971_vm0, %v1062_v21 }
 0x20f   : > { %v1132_v23 = vpop.f32.mrf.mxu1 }
 0x210   : > { %v1133_v24 = vadd.f32 %v3472_v22, %v1132_v23 }
 0x212   : > { %v1259_v25 = vpack.c.bf16 %v1133_v24, %v1133_v24 }
 0x214   : > { %1265 = vrot.lane.b32.xlu0 %v1259_v25, %s4019_s22  ;;  %1261 = vrot.lane.b32.xlu2 %v1259_v25, %s4020_s12  ;;  %v1270_v40 = vshrl.u32 %v1259_v25, 16 }
 0x217   : > { %v1095_v26 = vpop.f32.mrf.mxu0  ;;  %v1134_v27 = vpop.f32.mrf.mxu1 }
 0x218   : > { %v1096_v28 = vadd.f32 %v3473_v20, %v1095_v26 }
 0x21a   : > { %v1099_v29 = vmul.f32 0.35355338, %v1096_v28 }
 0x21c   : > { %v4384_v30 = vpack.c.bf16 %v1099_v29, %v1099_v29  ;;  %1381 = vrot.lane.b32.xlu0 %v1259_v25, %s4021_s13  ;;  %1263 = vrot.lane.b32.xlu2 %v1259_v25, %s4022_s27 }
 0x21e   : > { %1138 = vrot.lane.b32.xlu1 %v4384_v30, %s4020_s12  ;;  %v1147_v14 = vshrl.u32 %v4384_v30, 16 }
 0x21f   : > { %v1097_v31 = vpop.f32.mrf.mxu0 }
 0x224   : > { %1140 = vrot.lane.b32.xlu2 %v4384_v30, %s4022_s27 }
 0x22c   : > { %1142 = vrot.lane.b32.xlu2 %v4384_v30, %s4019_s22 }
 0x26e   : > { %v4394_v32 = vpop.permute.xlu2 %1261 }
 0x26f   : > { %v1269_v38 = vpack.i.b16 %v4394_v32, %v1259_v25  ;;  %v1271_v39 = vshrl.u32 %v4394_v32, 16 }
 0x271   : > { %v1272_v41 = vpack.i.b16 %v1271_v39, %v1270_v40  ;;  %v1283_v42 = vperm.slane %v1269_v38, %v4398_v37 }
 0x273   : > { %v1291_v52 = vrot.slane %v1283_v42, 4  ;;  %v1309_v53 = vperm.slane %v1272_v41, %v4398_v37 }
 0x275   : > { %v1317_v61 = vrot.slane %v1309_v53, 4 }
 0x276   : > { %v4396_v33 = vpop.permute.xlu2 %1263 }
 0x277   : > { %v1276_v45 = vshrl.u32 %v4396_v33, 16 }
 0x27e   : > { %v1141_v36 = vpop.permute.xlu2 %1140 }
 0x27f   : > { %v1153_v48 = vshrl.u32 %v1141_v36, 16 }
 0x286   : > { %v1143_v46 = vpop.permute.xlu2 %1142  ;;  %v4404_v47 = vpop.permute.xlu0 %1265 }
 0x287   : > { %v1154_v49 = vshrl.u32 %v1143_v46, 16  ;;  %v1275_v50 = vpack.i.b16 %v4404_v47, %v4396_v33  ;;  %v1277_v51 = vshrl.u32 %v4404_v47, 16  ;;  %v1152_v55 = vpack.i.b16 %v1143_v46, %v1141_v36 }
 0x289   : > { %v1155_v56 = vpack.i.b16 %v1154_v49, %v1153_v48  ;;  %v1278_v57 = vpack.i.b16 %v1277_v51, %v1276_v45  ;;  %v1288_v58 = vperm.slane %v1275_v50, %v4398_v37  ;;  %v1165_v0 = vperm.slane %v1152_v55, %v4398_v37 }
 0x28b   : > { %v1289_v59 = vrot.slane %v1288_v58, 4  ;;  %v1292_v60 = vsel %vm1167_vm14, %v1288_v58, %v1291_v52  ;;  %v1314_v63 = vperm.slane %v1278_v57, %v4398_v37  ;;  %v1192_v1 = vperm.slane %v1155_v56, %v4398_v37 }
 0x28c   : > { %v1300_v62 = vperm.slane %v1292_v60, %v4410_v54  ;;  %v1166_v19 = vrot.slane %v1165_v0, 4 }
 0x28d   : > { %v1290_v2 = vsel %vm1167_vm14, %v1289_v59, %v1283_v42  ;;  %v1315_v6 = vrot.slane %v1314_v63, 4  ;;  %v1318_v7 = vsel %vm1167_vm14, %v1314_v63, %v1317_v61  ;;  %v1193_v21 = vrot.slane %v1192_v1, 4 }
 0x28e   : > { %v1296_v3 = vperm.slane %v1290_v2, %v4410_v54  ;;  %v1303_v5 = vrot.slane %v1300_v62, 4  ;;  %v1326_v8 = vperm.slane %v1318_v7, %v4410_v54 }
 0x28f   : > { %v1316_v11 = vsel %vm1167_vm14, %v1315_v6, %v1309_v53 }
 0x290   : > { %v1301_v9 = vrot.slane %v1296_v3, 4  ;;  %v1304_v10 = vsel %vm1167_vm14, 0, %v1303_v5  ;;  %v1139_v13 = vpop.permute.xlu1 %1138  ;;  %v1322_v15 = vperm.slane %v1316_v11, %v4410_v54  ;;  %v1329_v16 = vrot.slane %v1326_v8, 4 }
 0x291   : > { %v1336_v17 = vrot.slane %v1304_v10, 4  ;;  %v1146_v18 = vpack.i.b16 %v1139_v13, %v4384_v30  ;;  %v1148_v22 = vshrl.u32 %v1139_v13, 16  ;;  %v1331_v29 = vsel %vm1167_vm14, %v1303_v5, %v1296_v3 }
 0x292   : > { %v1302_v23 = vsel %vm1167_vm14, 0, %v1301_v9  ;;  %v1327_v24 = vrot.slane %v1322_v15, 4  ;;  %v1330_v25 = vsel %vm1167_vm14, 0, %v1329_v16  ;;  %v1350_v36 = vsel %vm1167_vm14, %v1329_v16, %v1322_v15 }
 0x293   : > { %v1160_v20 = vperm.slane %v1146_v18, %v4398_v37  ;;  %v1337_v26 = vsel %vm1167_vm14, %v1336_v17, %v1302_v23  ;;  %v1355_v27 = vrot.slane %v1330_v25, 4  ;;  %v1149_v28 = vpack.i.b16 %v1148_v22, %v1147_v14 }
 0x294   : > { %v1341_v31 = vperm.slane %v1337_v26, %v4398_v37  ;;  %v1328_v35 = vsel %vm1167_vm14, 0, %v1327_v24  ;;  %v1335_v43 = vperm.slane %v1331_v29, %v4398_v37  ;;  %v1354_v52 = vperm.slane %v1350_v36, %v4398_v37 }
 0x295   : > { %v1168_v30 = vsel %vm1167_vm14, %v1166_v19, %v1160_v20  ;;  %v1169_v34 = vrot.slane %v1160_v20, 4  ;;  %v1187_v39 = vperm.slane %v1149_v28, %v4398_v37  ;;  %v1356_v41 = vsel %vm1167_vm14, %v1355_v27, %v1328_v35 }
 0x296   : > { %v1174_v38 = vperm.slane %v1168_v30, %v4410_v54  ;;  %v1342_v40 = vrot.slane %v1341_v31, 4  ;;  %v1360_v44 = vperm.slane %v1356_v41, %v4398_v37 }
 0x297   : > { %v1170_v42 = vsel %vm1167_vm14, %v1165_v0, %v1169_v34  ;;  %v1194_v48 = vsel %vm1167_vm14, %v1193_v21, %v1187_v39  ;;  %v1195_v49 = vrot.slane %v1187_v39, 4 }
 0x298   : > { %v1178_v45 = vperm.slane %v1170_v42, %v4410_v54  ;;  %v1179_v46 = vrot.slane %v1174_v38, 4  ;;  %v1200_v50 = vperm.slane %v1194_v48, %v4410_v54  ;;  %v1343_v51 = vsel %vm1167_vm14, %v1342_v40, %v1335_v43 }
 0x299   : > { %v1361_v53 = vrot.slane %v1360_v44, 4  ;;  %v1196_v56 = vsel %vm1167_vm14, %v1192_v1, %v1195_v49  ;;  %v1347_v57 = vperm.slane %v1343_v51, %v4410_v54 }
 0x29a   : > { %v1181_v55 = vrot.slane %v1178_v45, 4  ;;  %v1204_v58 = vperm.slane %v1196_v56, %v4410_v54  ;;  %v1205_v59 = vrot.slane %v1200_v50, 4  ;;  %v1180_v61 = vsel %vm1167_vm14, 0, %v1179_v46 }
 0x29b   : > { %v1362_v60 = vsel %vm1167_vm14, %v1361_v53, %v1354_v52  ;;  %v1348_v5 = vrot.slane %v1347_v57, 4  ;;  %v1372_v6 = vshrl.u32 %v1347_v57, 16  ;;  %v963_v53 = vld [vmem:[%s950_s2] sm:$0xff]  ;;  %s2925_s2 = sshll.u32 %s938_s21, 4  ;;  %s2926_s2 = int_to_ptr.vmem [resolvable:$true] %s2925_s2 }
 0x29c   : > { %v1182_v62 = vsel %vm1167_vm14, 0, %v1181_v55  ;;  %v1366_v63 = vperm.slane %v1362_v60, %v4410_v54  ;;  %v1207_v0 = vrot.slane %v1204_v58, 4  ;;  %v1209_v2 = vsel %vm1167_vm14, %v1181_v55, %v1174_v38 }
 0x29d   : > { %v1214_v3 = vrot.slane %v1182_v62, 4  ;;  %v1206_v9 = vsel %vm1167_vm14, 0, %v1205_v59  ;;  %v1349_v11 = vsel %vm1167_vm14, 0, %v1348_v5  ;;  %v1213_v24 = vperm.slane %v1209_v2, %v4398_v37 }
 0x29e   : > { %v1371_v1 = vpack.i.b16 %v1366_v63, %v1347_v57  ;;  %v1373_v7 = vshrl.u32 %v1366_v63, 16  ;;  %v1367_v8 = vrot.slane %v1366_v63, 4  ;;  %v1208_v10 = vsel %vm1167_vm14, 0, %v1207_v0 }
 0x29f   : > { %v1215_v13 = vsel %vm1167_vm14, %v1214_v3, %v1180_v61  ;;  %v1233_v14 = vrot.slane %v1208_v10, 4  ;;  %v1378_v19 = vshrl.u32 %v1349_v11, 16  ;;  %v1228_v25 = vsel %vm1167_vm14, %v1207_v0, %v1200_v50  ;;  %v1382_v10 = vpop.permute.xlu0 %1381 }
 0x2a0   : > { %v1508_v15 = vsel %vm1503_vm15, %v1371_v1, 0  ;;  %v1374_v16 = vpack.i.b16 %v1373_v7, %v1372_v6  ;;  %v1368_v17 = vsel %vm1167_vm14, 0, %v1367_v8  ;;  %v1219_v22 = vperm.slane %v1215_v13, %v4398_v37 }
 0x2a1   : > { %1517 = vmatpush.bf16.xpose.msra.mxu2 %v1508_v15  ;;  %v1377_v18 = vpack.i.b16 %v1368_v17, %v1349_v11  ;;  %v1379_v21 = vshrl.u32 %v1368_v17, 16  ;;  %v1234_v20 = vsel %vm1167_vm14, %v1233_v14, %v1206_v9  ;;  %v1232_v34 = vperm.slane %v1228_v25, %v4398_v37 }
 0x2a2   : > { %v1527_v23 = vsel %vm1503_vm15, %v1374_v16, 0  ;;  %v1220_v28 = vrot.slane %v1219_v22, 4  ;;  %v1238_v29 = vperm.slane %v1234_v20, %v4398_v37  ;;  %vm964_vm1 = vcmp.eq.f32.partialorder %v963_v53, 0.0 }
 0x2a3   : > { %1536 = vmatpush.bf16.xpose.msra.mxu3 %v1527_v23  ;;  %v1546_v26 = vsel %vm1503_vm15, %v1377_v18, 0  ;;  %v1380_v27 = vpack.i.b16 %v1379_v21, %v1378_v19  ;;  %v4025_v55 = vmov 0.0  }
 0x2a4   : > { %1555 = vmatpush.bf16.xpose.msrb.mxu0 %v1546_v26  ;;  %v1221_v30 = vsel %vm1167_vm14, %v1220_v28, %v1213_v24  ;;  %v1239_v35 = vrot.slane %v1238_v29, 4  ;;  %v965_v56 = vsel %vm964_vm1, -1e+09, %v4025_v55  ;;  %v1392_v26 = vshrl.u32 %v1382_v10, 16 }
 0x2a5   : > { %v1565_v31 = vsel %vm1503_vm15, %v1380_v27, 0  ;;  %v1225_v36 = vperm.slane %v1221_v30, %v4410_v54 }
 0x2a6   : > { %1574 = vmatpush.bf16.xpose.msrb.mxu1 %v1565_v31  ;;  %v1240_v38 = vsel %vm1167_vm14, %v1239_v35, %v1232_v34 }
 0x2a7   : > { %v1244_v39 = vperm.slane %v1240_v38, %v4410_v54  ;;  %v1226_v40 = vrot.slane %v1225_v36, 4  ;;  %v1250_v41 = vshrl.u32 %v1225_v36, 16 }
 0x2a9   : > { %v1249_v42 = vpack.i.b16 %v1244_v39, %v1225_v36  ;;  %v1251_v43 = vshrl.u32 %v1244_v39, 16  ;;  %v1227_v44 = vsel %vm1167_vm14, 0, %v1226_v40  ;;  %v1245_v45 = vrot.slane %v1244_v39, 4 }
 0x2aa   : > { %v1256_v50 = vshrl.u32 %v1227_v44, 16 }
 0x2ab   : > { %3200 = vmatmul.msk.bf16.vlgmr.msra.gmra.mxu2 %vm1503_vm15, %v1249_v42  ;;  %v1252_v46 = vpack.i.b16 %v1251_v43, %v1250_v41  ;;  %v1246_v48 = vsel %vm1167_vm14, 0, %v1245_v45 }
 0x2ac   : > { %v1255_v49 = vpack.i.b16 %v1246_v48, %v1227_v44  ;;  %v1257_v51 = vshrl.u32 %v1246_v48, 16 }
 0x2ad   : > { %3201 = vmatmul.msk.bf16.vlgmr.msra.gmra.mxu3 %vm1503_vm15, %v1252_v46 }
 0x2ae   : > { %3202 = vmatmul.msk.bf16.vlgmr.msrb.gmra.mxu0 %vm1503_vm15, %v1255_v49  ;;  %v1258_v52 = vpack.i.b16 %v1257_v51, %v1256_v50 }
 0x2b0   : > { %3203 = vmatmul.msk.bf16.vlgmr.msrb.gmra.mxu1 %vm1503_vm15, %v1258_v52 }
 0x32b   : > { %v1557_v57 = vpop.f32.mrf.mxu0 }
 0x32c   : > { %v1558_v58 = vadd.f32 %v1557_v57, %v965_v56 }
 0x32d   : > { %v1576_v59 = vpop.f32.mrf.mxu1 }
 0x32e   : > { %v1577_v60 = vadd.f32 %v1576_v59, %v965_v56  ;;  %v1519_v61 = vpop.f32.mrf.mxu2  ;;  %v1586_v62 = vsel %vm1503_vm15, %v1558_v58, -inf }
 0x32f   : > { %1587 = vmax.xlane.f32.xlu1 %v1586_v62  ;;  %v1520_v1 = vadd.f32 %v1519_v61, %v965_v56 }
 0x330   : > { %v1538_v63 = vpop.f32.mrf.mxu3  ;;  %v1589_v0 = vsel %vm1503_vm15, %v1577_v60, -inf }
 0x331   : > { %v1539_v2 = vadd.f32 %v1538_v63, %v965_v56  ;;  %1590 = vmax.xlane.f32.xlu2 %v1589_v0  ;;  %v1580_v9 = vsel %vm1503_vm15, %v1520_v1, -inf }
 0x333   : > { %v1559_v3 = vpop.f32.mrf.mxu0  ;;  %v1583_v5 = vsel %vm1503_vm15, %v1539_v2, -inf }
 0x334   : > { %1584 = vmax.xlane.f32.xlu0 %v1583_v5 }
 0x335   : > { %v1578_v6 = vpop.f32.mrf.mxu1 }
 0x336   : > { %v1521_v7 = vpop.f32.mrf.mxu2 }
 0x338   : > { %v1540_v8 = vpop.f32.mrf.mxu3 }
 0x339   : > { %1581 = vmax.xlane.f32.xlu2 %v1580_v9 }
 0x348   : > { %1387 = vrot.lane.b32.xlu0 %v4404_v47, %s4021_s13  ;;  %1385 = vrot.lane.b32.xlu1 %v4396_v33, %s4021_s13 }
 0x351   : > { %1383 = vrot.lane.b32.xlu2 %v4394_v32, %s4021_s13 }
 0x3a2   : > { %v1588_v11 = vpop.xlane.xlu1 %1587 }
 0x3a3   : > { %v1594_v13 = vsub.f32 %v1558_v58, %v1588_v11 }
 0x3a4   : > { %v1591_v14 = vpop.xlane.xlu2 %1590 }
 0x3a5   : > { %v1600_v15 = vmul.f32 1.442695, %v1594_v13  ;;  %v1595_v22 = vsub.f32 %v1577_v60, %v1591_v14 }
 0x3a7   : > { %3494 = vpow2.f32 %v1600_v15  ;;  %v1585_v16 = vpop.xlane.xlu0 %1584  ;;  %v1602_v24 = vmul.f32 1.442695, %v1595_v22 }
 0x3a8   : > { %v1593_v17 = vsub.f32 %v1539_v2, %v1585_v16 }
 0x3aa   : > { %v1598_v18 = vmul.f32 1.442695, %v1593_v17 }
 0x3ac   : > { %3496 = vpow2.f32 %v1598_v18  ;;  %v1582_v19 = vpop.xlane.xlu2 %1581 }
 0x3ad   : > { %v4501_v21 = vpop.eup %3494  ;;  %v1592_v47 = vsub.f32 %v1520_v1, %v1582_v19 }
 0x3ae   : > { %v1610_v33 = vsel %vm1503_vm15, %v4501_v21, 0.0 }
 0x3af   : > { %v1596_v23 = vmul.f32 1.442695, %v1592_v47  ;;  %1611 = vadd.xlane.f32.xlu1 %v1610_v33 }
 0x3b1   : > { %3498 = vpow2.f32 %v1596_v23 }
 0x3b2   : > { %v4505_v32 = vpop.eup %3496  ;;  %3500 = vpow2.f32 %v1602_v24 }
 0x3b3   : > { %v1607_v25 = vsel %vm1503_vm15, %v4505_v32, 0.0 }
 0x3b4   : > { %v1384_v20 = vpop.permute.xlu2 %1383  ;;  %1608 = vadd.xlane.f32.xlu0 %v1607_v25 }
 0x3b5   : > { %v1391_v27 = vpack.i.b16 %v1384_v20, %v1382_v10  ;;  %v1393_v28 = vshrl.u32 %v1384_v20, 16 }
 0x3b7   : > { %v4509_v29 = vpop.eup %3498  ;;  %v1394_v31 = vpack.i.b16 %v1393_v28, %v1392_v26  ;;  %v1405_v34 = vperm.slane %v1391_v27, %v4398_v37 }
 0x3b8   : > { %v1604_v30 = vsel %vm1503_vm15, %v4509_v29, 0.0  ;;  %v4515_v42 = vpop.eup %3500 }
 0x3b9   : > { %1605 = vadd.xlane.f32.xlu2 %v1604_v30  ;;  %v1431_v38 = vperm.slane %v1394_v31, %v4398_v37  ;;  %v1413_v43 = vrot.slane %v1405_v34, 4  ;;  %v1613_v52 = vsel %vm1503_vm15, %v4515_v42, 0.0 }
 0x3ba   : > { %v1386_v35 = vpop.permute.xlu1 %1385  ;;  %v1388_v36 = vpop.permute.xlu0 %1387 }
 0x3bb   : > { %v1398_v39 = vshrl.u32 %v1386_v35, 16  ;;  %v1397_v40 = vpack.i.b16 %v1388_v36, %v1386_v35  ;;  %v1399_v41 = vshrl.u32 %v1388_v36, 16  ;;  %v1439_v46 = vrot.slane %v1431_v38, 4 }
 0x3bd   : > { %v1400_v44 = vpack.i.b16 %v1399_v41, %v1398_v39  ;;  %v1410_v45 = vperm.slane %v1397_v40, %v4398_v37 }
 0x3bf   : > { %v1411_v48 = vrot.slane %v1410_v45, 4  ;;  %v1414_v49 = vsel %vm1167_vm14, %v1410_v45, %v1413_v43  ;;  %v1436_v50 = vperm.slane %v1400_v44, %v4398_v37 }
 0x3c0   : > { %v1422_v51 = vperm.slane %v1414_v49, %v4410_v54 }
 0x3c1   : > { %v1412_v53 = vsel %vm1167_vm14, %v1411_v48, %v1405_v34  ;;  %v1437_v56 = vrot.slane %v1436_v50, 4  ;;  %v1440_v57 = vsel %vm1167_vm14, %v1436_v50, %v1439_v46  ;;  %1614 = vadd.xlane.f32.xlu2 %v1613_v52 }
 0x3c2   : > { %v1418_v58 = vperm.slane %v1412_v53, %v4410_v54  ;;  %v1425_v59 = vrot.slane %v1422_v51, 4  ;;  %v1448_v60 = vperm.slane %v1440_v57, %v4410_v54 }
 0x3c3   : > { %v1438_v61 = vsel %vm1167_vm14, %v1437_v56, %v1431_v38 }
 0x3c4   : > { %v1423_v62 = vrot.slane %v1418_v58, 4  ;;  %v1426_v63 = vsel %vm1167_vm14, 0, %v1425_v59  ;;  %v1444_v0 = vperm.slane %v1438_v61, %v4410_v54  ;;  %v1451_v2 = vrot.slane %v1448_v60, 4 }
 0x3c5   : > { %v1458_v3 = vrot.slane %v1426_v63, 4  ;;  %v1453_v8 = vsel %vm1167_vm14, %v1425_v59, %v1418_v58  ;;  %v1710_v63 = vld [vmem:[%s4984_s6 + $0x4] sm:$0xf] }
 0x3c6   : > { %v1424_v5 = vsel %vm1167_vm14, 0, %v1423_v62  ;;  %v1449_v1 = vrot.slane %v1444_v0, 4  ;;  %v1452_v6 = vsel %vm1167_vm14, 0, %v1451_v2  ;;  %v1472_v13 = vsel %vm1167_vm14, %v1451_v2, %v1444_v0  ;;  %v1712_v2 = vld [vmem:[%s4984_s6 + $0xc] sm:$0xf] }
 0x3c7   : > { %v1477_v7 = vrot.slane %v1452_v6, 4  ;;  %v1459_v9 = vsel %vm1167_vm14, %v1458_v3, %v1424_v5  ;;  %v1457_v15 = vperm.slane %v1453_v8, %v4398_v37  ;;  %v1476_v19 = vperm.slane %v1472_v13, %v4398_v37 }
 0x3c8   : > { %v1450_v10 = vsel %vm1167_vm14, 0, %v1449_v1  ;;  %v1463_v11 = vperm.slane %v1459_v9, %v4398_v37  ;;  %v1736_v0 = vsel %vm1631_vm2, %v1710_v63, 0  ;;  %v1774_v3 = vsel %vm1631_vm2, %v1712_v2, 0 }
 0x3c9   : > { %v1478_v14 = vsel %vm1167_vm14, %v1477_v7, %v1450_v10 }
 0x3ca   : > { %v1464_v16 = vrot.slane %v1463_v11, 4  ;;  %v1482_v17 = vperm.slane %v1478_v14, %v4398_v37 }
 0x3cc   : > { %v1465_v18 = vsel %vm1167_vm14, %v1464_v16, %v1457_v15  ;;  %v1483_v47 = vrot.slane %v1482_v17, 4 }
 0x3cd   : > { %v1469_v33 = vperm.slane %v1465_v18, %v4410_v54 }
 0x3ce   : > { %v1484_v22 = vsel %vm1167_vm14, %v1483_v47, %v1476_v19 }
 0x3cf   : > { %v1488_v23 = vperm.slane %v1484_v22, %v4410_v54  ;;  %v1470_v24 = vrot.slane %v1469_v33, 4  ;;  %v1494_v25 = vshrl.u32 %v1469_v33, 16 }
 0x3d1   : > { %v1493_v20 = vpack.i.b16 %v1488_v23, %v1469_v33  ;;  %v1495_v26 = vshrl.u32 %v1488_v23, 16  ;;  %v1471_v27 = vsel %vm1167_vm14, 0, %v1470_v24  ;;  %v1489_v28 = vrot.slane %v1488_v23, 4 }
 0x3d2   : > { %v1500_v36 = vshrl.u32 %v1471_v27, 16 }
 0x3d3   : > { %v1633_v31 = vsel %vm1631_vm2, %v1493_v20, 0  ;;  %v1496_v30 = vpack.i.b16 %v1495_v26, %v1494_v25  ;;  %v1490_v34 = vsel %vm1167_vm14, 0, %v1489_v28  ;;  %v3474_v28 = vld [vmem:[#allocation10] ss:$0 sm:$0xff] }
 0x3d4   : > { %1642 = vmatpush.bf16.msrb.mxu2 %v1633_v31  ;;  %v1499_v35 = vpack.i.b16 %v1490_v34, %v1471_v27  ;;  %v1501_v38 = vshrl.u32 %v1490_v34, 16 }
 0x3d5   : > { %v1652_v39 = vsel %vm1631_vm2, %v1496_v30, 0 }
 0x3d6   : > { %1661 = vmatpush.bf16.msrb.mxu3 %v1652_v39  ;;  %v1671_v40 = vsel %vm1631_vm2, %v1499_v35, 0  ;;  %v1502_v41 = vpack.i.b16 %v1501_v38, %v1500_v36  ;;  %v3285_v39 = vld [vmem:[#allocation14 + $0x8] sm:$0xff] }
 0x3d7   : > { %1680 = vmatpush.bf16.msra.mxu0 %v1671_v40  ;;  %v3223_v40 = vld [vmem:[%s943_s30] sm:$0xf] }
 0x3d8   : > { %v1690_v43 = vsel %vm1631_vm2, %v1502_v41, 0  ;;  %v3277_v41 = vld [vmem:[%s943_s30] sm:$0x10] }
 0x3d9   : > { %1699 = vmatpush.bf16.msra.mxu1 %v1690_v43  ;;  %v3284_v43 = vld [vmem:[#allocation14] sm:$0xff] }
 0x3da   : > { %1745 = vmatpush.bf16.msra.mxu3 %v1736_v0 }
 0x3dd   : > { %1783 = vmatpush.bf16.msrb.mxu1 %v1774_v3 }
 0x422   : > { %v1612_v44 = vpop.xlane.xlu1 %1611 }
 0x423   : > { %3502 = vrcp.f32 %v1612_v44  ;;  %v3224_v44 = vor.u32 %v3277_v41, %v3223_v40 }
 0x427   : > { %v1609_v45 = vpop.xlane.xlu0 %1608 }
 0x428   : > { %3504 = vrcp.f32 %v1609_v45 }
 0x429   : > { %v3503_v46 = vpop.eup %3502 }
 0x42a   : > { %v1622_v48 = vmul.f32 %v3503_v46, %v4501_v21 }
 0x42c   : > { %v1626_v49 = vpack.c.bf16 %v1622_v48, %v1622_v48  ;;  %v1606_v50 = vpop.xlane.xlu2 %1605 }
 0x42d   : > { %3506 = vrcp.f32 %v1606_v50  ;;  %v3283_v50 = vld [vmem:[#allocation11 + $0x8] sm:$0xff] }
 0x42e   : > { %v3505_v51 = vpop.eup %3504  ;;  %3206 = vmatmul.msk.bf16.vlgmr.msra.gmra.mxu0 %vm1503_vm15, %v1626_v49 }
 0x42f   : > { %v1621_v52 = vmul.f32 %v3505_v51, %v4505_v32  ;;  %v1711_v32 = vld [vmem:[%s4984_s6 + $0x8] sm:$0xf]  ;;  %v3476_v51 = vld [vmem:[#allocation16] ss:$0 sm:$0xff] }
 0x430   : > { %v1755_v62 = vsel %vm1631_vm2, %v1711_v32, 0 }
 0x431   : > { %v1625_v53 = vpack.c.bf16 %v1621_v52, %v1621_v52  ;;  %1764 = vmatpush.bf16.msrb.mxu0 %v1755_v62 }
 0x433   : > { %v3507_v56 = vpop.eup %3506  ;;  %3205 = vmatmul.msk.bf16.vlgmr.msrb.gmra.mxu3 %vm1503_vm15, %v1625_v53 }
 0x434   : > { %v1620_v57 = vmul.f32 %v3507_v56, %v4509_v29  ;;  %v1615_v58 = vpop.xlane.xlu2 %1614  ;;  %v1709_v29 = vld [vmem:[%s4984_s6] sm:$0xf]  ;;  %1918 = vmatpush.bf16.msrb.mxu3 %v3285_v39  ;;  %v3282_v56 = vld [vmem:[#allocation11] sm:$0xff] }
 0x435   : > { %3508 = vrcp.f32 %v1615_v58 }
 0x436   : > { %v1624_v59 = vpack.c.bf16 %v1620_v57, %v1620_v57 }
 0x438   : > { %3204 = vmatmul.msk.bf16.vlgmr.msrb.gmra.mxu2 %vm1503_vm15, %v1624_v59  ;;  %1919 = vmatpush.bf16.msrb.mxu3 %v3284_v43 }
 0x43b   : > { %v3509_v21 = vpop.eup %3508 }
 0x43c   : > { %v1623_v60 = vmul.f32 %v3509_v21, %v4515_v42  ;;  %v1717_v42 = vsel %vm1631_vm2, %v1709_v29, 0 }
 0x43d   : > { %1726 = vmatpush.bf16.msra.mxu2 %v1717_v42 }
 0x43e   : > { %v1627_v61 = vpack.c.bf16 %v1623_v60, %v1623_v60 }
 0x440   : > { %3207 = vmatmul.msk.bf16.vlgmr.msra.gmra.mxu1 %vm1503_vm15, %v1627_v61 }
 0x441   : > { %1876 = vmatpush.bf16.msrb.mxu2 %v3283_v50 }
 0x445   : > { %1877 = vmatpush.bf16.msrb.mxu2 %v3282_v56 }
 0x4ab   : > { %v1682_v5 = vpop.f32.mrf.mxu0 }
 0x4ac   : > { %v1707_v1 = vpack.c.bf16 %v1682_v5, %v1682_v5 }
 0x4ae   : > { %3210 = vmatmul.msk.bf16.vlgmr.msrb.gmra.mxu0 %vm1503_vm15, %v1707_v1 }
 0x4b3   : > { %v1684_v6 = vpop.f32.mrf.mxu0 }
 0x4b6   : > { %v1663_v7 = vpop.f32.mrf.mxu3 }
 0x4b7   : > { %v1706_v8 = vpack.c.bf16 %v1663_v7, %v1663_v7 }
 0x4b9   : > { %3209 = vmatmul.msk.bf16.vlgmr.msra.gmra.mxu3 %vm1503_vm15, %v1706_v8 }
 0x4bb   : > { %v1644_v9 = vpop.f32.mrf.mxu2 }
 0x4bc   : > { %v1705_v10 = vpack.c.bf16 %v1644_v9, %v1644_v9 }
 0x4bd   : > { %v1701_v11 = vpop.f32.mrf.mxu1 }
 0x4be   : > { %v1708_v13 = vpack.c.bf16 %v1701_v11, %v1701_v11  ;;  %v1665_v14 = vpop.f32.mrf.mxu3  ;;  %3208 = vmatmul.msk.bf16.vlgmr.msra.gmra.mxu2 %vm1503_vm15, %v1705_v10  ;;  %v3475_v11 = vld [vmem:[%s4925_s20 + $0x1] ss:$0 sm:$0xff] }
 0x4c0   : > { %3211 = vmatmul.msk.bf16.vlgmr.msrb.gmra.mxu1 %vm1503_vm15, %v1708_v13 }
 0x4c3   : > { %v1646_v15 = vpop.f32.mrf.mxu2 }
 0x4c5   : > { %v1703_v16 = vpop.f32.mrf.mxu1 }
 0x4c9   : > { %3233 = vmatmul.msk.bf16.vlgmr.msrb.gmra.mxu3 %vm971_vm0, %v3224_v44 }
 0x52b   : > { %v1766_v17 = vpop.f32.mrf.mxu0 }
 0x52c   : > { %v1792_v25 = vsel %vm971_vm0, %v1766_v17, 0.0 }
 0x533   : > { %v1768_v18 = vpop.f32.mrf.mxu0 }
 0x53c   : > { %v1747_v19 = vpop.f32.mrf.mxu3 }
 0x53d   : > { %v1785_v47 = vpop.f32.mrf.mxu1  ;;  %v1790_v22 = vsel %vm971_vm0, %v1747_v19, 0.0  ;;  %v3477_v19 = vld [vmem:[%s4981_s19 + $0x1] ss:$0 sm:$0xff] }
 0x53e   : > { %v1794_v31 = vsel %vm971_vm0, %v1785_v47, 0.0 }
 0x541   : > { %v1728_v33 = vpop.f32.mrf.mxu2 }
 0x542   : > { %v1789_v23 = vsel %vm971_vm0, %v1728_v33, 0.0 }
 0x543   : > { %v1791_v24 = vadd.f32 %v1790_v22, %v1789_v23 }
 0x544   : > { %v1749_v20 = vpop.f32.mrf.mxu3 }
 0x545   : > { %v1793_v26 = vadd.f32 %v1792_v25, %v1791_v24  ;;  %v1787_v27 = vpop.f32.mrf.mxu1 }
 0x547   : > { %v1795_v30 = vadd.f32 %v1794_v31, %v1793_v26 }
 0x549   : > { %v1730_v34 = vpop.f32.mrf.mxu2  ;;  %v1800_v35 = vadd.f32 %v3474_v28, %v1795_v30 }
 0x54b   : > { %v4584_v36 = vadd.f32 %v1800_v35, %v4341_v4 }
 0x54c   : > { %v1921_v52 = vpop.f32.mrf.mxu3 }
 0x54d   : > { %v1804_v38 = vsel %vm971_vm0, %v4584_v36, 0.0  ;;  %v1922_v53 = vadd.f32 %v3476_v51, %v1921_v52 }
 0x54e   : > { %1805 = vadd.xlane.f32.xlu0 %v1804_v38 }
 0x54f   : > { %v4597_v57 = vpack.c.bf16 %v1922_v53, %v1922_v53 }
 0x551   : > { %2052 = vrot.lane.b32.xlu2 %v4597_v57, %s4020_s12  ;;  %v2067_v26 = vperm.slane %v4597_v57, %v4398_v37 }
 0x553   : > { %v2075_v34 = vrot.slane %v2067_v26, 4 }
 0x554   : > { %v1923_v21 = vpop.f32.mrf.mxu3 }
 0x555   : > { %v1924_v60 = vadd.f32 %v3476_v51, %v1923_v21 }
 0x557   : > { %v4605_v61 = vpack.c.bf16 %v1924_v60, %v1924_v60 }
 0x559   : > { %2058 = vrot.lane.b32.xlu2 %v4605_v61, %s4022_s27 }
 0x562   : > { %2056 = vrot.lane.b32.xlu0 %v4597_v57, %s4022_s27 }
 0x5ab   : > { %v2053_v24 = vpop.permute.xlu2 %2052 }
 0x5ac   : > { %v2093_v20 = vperm.slane %v2053_v24, %v4398_v37 }
 0x5ae   : > { %v2101_v31 = vrot.slane %v2093_v20, 4 }
 0x5c1   : > { %v1806_v4 = vpop.xlane.xlu0 %1805 }
 0x5c2   : > { %v1807_v45 = vmul.f32 %v1806_v4, %v4345_v12 }
 0x5c4   : > { %v1808_v46 = vsub.f32 %v4584_v36, %v1807_v45 }
 0x5c6   : > { %v1809_v48 = vmul.f32 %v1808_v46, %v1808_v46  ;;  %v1815_v17 = vmul.f32 %v3475_v11, %v1808_v46 }
 0x5c8   : > { %v1810_v49 = vsel %vm971_vm0, %v1809_v48, 0.0  ;;  %v4641_v48 = vpop.permute.xlu2 %2058 }
 0x5c9   : > { %1811 = vadd.xlane.f32.xlu1 %v1810_v49  ;;  %v2116_v52 = vrot.slane %v4641_v48, 4 }
 0x5d4   : > { %v4626_v27 = vpop.permute.xlu0 %2056 }
 0x5d5   : > { %v2072_v30 = vperm.slane %v4626_v27, %v4398_v37 }
 0x5d7   : > { %v2073_v39 = vrot.slane %v2072_v30, 4  ;;  %v2076_v40 = vsel %vm1167_vm14, %v2072_v30, %v2075_v34 }
 0x5d8   : > { %v2084_v4 = vperm.slane %v2076_v40, %v4410_v54 }
 0x5d9   : > { %v2074_v45 = vsel %vm1167_vm14, %v2073_v39, %v2067_v26 }
 0x5da   : > { %v2080_v50 = vperm.slane %v2074_v45, %v4410_v54  ;;  %v2087_v51 = vrot.slane %v2084_v4, 4 }
 0x5dc   : > { %v2085_v56 = vrot.slane %v2080_v50, 4 }
 0x5e2   : > { %2060 = vrot.lane.b32.xlu1 %v4597_v57, %s4019_s22 }
 0x5ea   : > { %2062 = vrot.lane.b32.xlu1 %v4605_v61, %s4019_s22 }
 0x5f2   : > { %2054 = vrot.lane.b32.xlu1 %v4605_v61, %s4020_s12 }
 0x5fa   : > { %2250 = vrot.lane.b32.xlu1 %v2053_v24, %s4021_s13 }
 0x63c   : > { %v1812_v58 = vpop.xlane.xlu1 %1811 }
 0x63d   : > { %v1813_v59 = vmul.f32 0.032258064, %v1812_v58  ;;  %v2088_v58 = vsel %vm1167_vm14, 0, %v2087_v51 }
 0x63f   : > { %3510 = vrsqrt.f32 %v1813_v59  ;;  %vm1823_vm3 = vcmp.eq.f32.partialorder %v1813_v59, inf  ;;  %v1826_v3 = vand.u32 2147483648, %v1813_v59  ;;  %vm1825_vm4 = vcmp.eq.f32.partialorder %v1813_v59, 0.0 }
 0x645   : > { %v3511_v32 = vpop.eup %3510 }
 0x646   : > { %v1817_v62 = vmul.f32 %v3511_v32, %v1813_v59 }
 0x648   : > { %v1818_v29 = vmul.f32 %v3511_v32, %v1817_v62  ;;  %v2150_v62 = vshrl.u32 %v2084_v4, 16 }
 0x64a   : > { %v1819_v63 = vmul.f32 0.5, %v1818_v29  ;;  %v2117_v29 = vsel %vm1167_vm14, %v2116_v52, %v4605_v61 }
 0x64c   : > { %v1820_v42 = vsub.f32 1.5, %v1819_v63  ;;  %v2158_v63 = vshrl.u32 %v2088_v58, 16 }
 0x64e   : > { %v1821_v0 = vmul.f32 %v3511_v32, %v1820_v42 }
 0x650   : > { %v1822_v2 = vmul.f32 %v1821_v0, %v1813_v59 }
 0x652   : > { %v1824_v5 = vsel %vm1823_vm3, %v1813_v59, %v1822_v2  ;;  %v2086_v2 = vsel %vm1167_vm14, 0, %v2085_v56  ;;  %vm2887_vm3 = vcmask 523264  }
 0x653   : > { %v1827_v1 = vsel %vm1825_vm4, %v1826_v3, %v1824_v5  ;;  %v2142_v11 = vshrl.u32 %v2086_v2, 16 }
 0x654   : > { %v1828_v6 = vadd.f32 1e-06, %v1827_v1  ;;  %v4621_v25 = vpop.permute.xlu1 %2060  ;;  %v2121_v1 = vperm.slane %v2117_v29, %v4410_v54 }
 0x655   : > { %v2098_v28 = vperm.slane %v4621_v25, %v4398_v37 }
 0x656   : > { %3512 = vrcp.f32 %v1828_v6  ;;  %v1840_v10 = vand.u32 2147483648, %v1828_v6  ;;  %v1838_v14 = vand.u32 2147483647, %v1828_v6  ;;  %vm1834_vm6 = vweird.f32 %v1828_v6 }
 0x657   : > { %v2099_v35 = vrot.slane %v2098_v28, 4  ;;  %v2102_v38 = vsel %vm1167_vm14, %v2098_v28, %v2101_v31 }
 0x658   : > { %v1841_v16 = vor.u32 1.1754944e-38, %v1840_v10  ;;  %vm1839_vm8 = vcmp.eq.f32.partialorder %v1838_v14, 8.507059e+37  ;;  %v2110_v44 = vperm.slane %v2102_v38, %v4410_v54 }
 0x659   : > { %v2100_v43 = vsel %vm1167_vm14, %v2099_v35, %v2093_v20 }
 0x65a   : > { %v2106_v46 = vperm.slane %v2100_v43, %v4410_v54  ;;  %v2113_v49 = vrot.slane %v2110_v44, 4  ;;  %v2151_v32 = vshrl.u32 %v2110_v44, 16  ;;  %v2148_v5 = vpack.i.b16 %v2110_v44, %v2084_v4 }
 0x65c   : > { %v3513_v7 = vpop.eup %3512  ;;  %v4634_v41 = vpop.permute.xlu1 %2062  ;;  %v2111_v53 = vrot.slane %v2106_v46, 4  ;;  %v2114_v59 = vsel %vm1167_vm14, 0, %v2113_v49 }
 0x65d   : > { %v1830_v8 = vmul.f32 %v3513_v7, %v1828_v6  ;;  %vm1835_vm5 = vweird.f32 %v3513_v7  ;;  %v2124_v21 = vrot.slane %v4634_v41, 4  ;;  %v2159_v42 = vshrl.u32 %v2114_v59, 16 }
 0x65e   : > { %vm1836_vm7 = vmor %vm1834_vm6, %vm1835_vm5  ;;  %v2112_v0 = vsel %vm1167_vm14, 0, %v2111_v53  ;;  %v2135_v6 = vshrl.u32 %v2106_v46, 16 }
 0x65f   : > { %v1831_v9 = vsub.f32 1.0, %v1830_v8  ;;  %v2152_v8 = vpack.i.b16 %v2151_v32, %v2150_v62  ;;  %v2143_v10 = vshrl.u32 %v2112_v0, 16 }
 0x661   : > { %v1832_v13 = vmul.f32 %v3513_v7, %v1831_v9  ;;  %v2156_v9 = vpack.i.b16 %v2114_v59, %v2088_v58 }
 0x663   : > { %v1833_v15 = vadd.f32 %v3513_v7, %v1832_v13  ;;  %v2160_v13 = vpack.i.b16 %v2159_v42, %v2158_v63 }
 0x664   : > { %v4648_v60 = vpop.permute.xlu1 %2054 }
 0x665   : > { %v1837_v18 = vsel %vm1836_vm7, %v3513_v7, %v1833_v15  ;;  %v2125_v3 = vsel %vm1167_vm14, %v2124_v21, %v4648_v60  ;;  %v2134_v7 = vshrl.u32 %v2080_v50, 16  ;;  %v2132_v15 = vpack.i.b16 %v2106_v46, %v2080_v50 }
 0x666   : > { %v1842_v47 = vsel %vm1839_vm8, %v1841_v16, %v1837_v18  ;;  %v2129_v14 = vperm.slane %v2125_v3, %v4410_v54  ;;  %v2168_v16 = vrot.slane %v2148_v5, 4  ;;  %v2140_v18 = vpack.i.b16 %v2112_v0, %v2086_v2 }
 0x667   : > { %v1843_v33 = vmul.f32 %v1842_v47, %v1815_v17  ;;  %v2136_v17 = vpack.i.b16 %v2135_v6, %v2134_v7  ;;  %v2165_v47 = vshrl.u32 %v2121_v1, 16 }
 0x668   : > { %v2166_v24 = vshrl.u32 %v2129_v14, 16  ;;  %v2169_v20 = vsel %vm1167_vm14, %v2168_v16, %v2132_v15  ;;  %v2164_v28 = vpack.i.b16 %v2129_v14, %v2121_v1 }
 0x669   : > { %v1845_v22 = vadd.f32 %v3477_v19, %v1843_v33  ;;  %v2188_v19 = vrot.slane %v2152_v8, 4  ;;  %v2144_v33 = vpack.i.b16 %v2143_v10, %v2142_v11  ;;  %v2173_v35 = vperm.slane %v2169_v20, %v4398_v37 }
 0x66a   : > { %v2167_v31 = vpack.i.b16 %v2166_v24, %v2165_v47  ;;  %v2212_v4 = vperm.slane %v2164_v28, %v4410_v54 }
 0x66b   : > { %v1846_v23 = vpack.c.bf16 %v1845_v22, %v1845_v22  ;;  %v2174_v22 = vrot.slane %v2156_v9, 4  ;;  %v2189_v26 = vsel %vm1167_vm14, %v2188_v19, %v2136_v17 }
 0x66c   : > { %v2193_v43 = vperm.slane %v2189_v26, %v4398_v37  ;;  %v2219_v45 = vperm.slane %v2167_v31, %v4410_v54  ;;  %v2237_v59 = vshrl.u32 %v2212_v4, 16  ;;  %v2213_v0 = vrot.slane %v2212_v4, 4 }
 0x66d   : > { %3220 = vmatmul.msk.bf16.vlgmr.msrb.gmra.mxu2 %vm971_vm0, %v1846_v23  ;;  %v2194_v23 = vrot.slane %v2160_v13, 4  ;;  %v2175_v30 = vsel %vm1167_vm14, %v2174_v22, %v2140_v18 }
 0x66e   : > { %v2179_v38 = vperm.slane %v2175_v30, %v4398_v37  ;;  %v2236_v53 = vpack.i.b16 %v2219_v45, %v2212_v4  ;;  %v2238_v21 = vshrl.u32 %v2219_v45, 16  ;;  %v2220_v1 = vrot.slane %v2219_v45, 4 }
 0x66f   : > { %v2195_v34 = vsel %vm1167_vm14, %v2194_v23, %v2144_v33  ;;  %v2214_v8 = vsel %vm1167_vm14, 0, %v2213_v0 }
 0x670   : > { %v2199_v39 = vperm.slane %v2195_v34, %v4398_v37  ;;  %v2180_v40 = vrot.slane %v2179_v38, 4  ;;  %v2450_v63 = vunpack.c.l.b16 %v2236_v53  ;;  %v2239_v2 = vpack.i.b16 %v2238_v21, %v2237_v59 }
 0x671   : > { %v2221_v11 = vsel %vm1167_vm14, 0, %v2220_v1  ;;  %v2243_v18 = vshrl.u32 %v2214_v8, 16 }
 0x672   : > { %v2200_v44 = vrot.slane %v2199_v39, 4  ;;  %v2181_v46 = vsel %vm1167_vm14, %v2180_v40, %v2173_v35  ;;  %v2472_v10 = vunpack.c.l.b16 %v2239_v2  ;;  %v2242_v16 = vpack.i.b16 %v2221_v11, %v2214_v8  ;;  %v3478_v35 = vld [vmem:[#allocation13] ss:$0 sm:$0xff] }
 0x673   : > { %v2185_v50 = vperm.slane %v2181_v46, %v4410_v54  ;;  %v2244_v33 = vshrl.u32 %v2221_v11, 16 }
 0x674   : > { %v2201_v49 = vsel %vm1167_vm14, %v2200_v44, %v2193_v43  ;;  %v2494_v22 = vunpack.c.l.b16 %v2242_v16 }
 0x675   : > { %v2205_v51 = vperm.slane %v2201_v49, %v4410_v54  ;;  %v2225_v56 = vshrl.u32 %v2185_v50, 16  ;;  %v2186_v32 = vrot.slane %v2185_v50, 4  ;;  %v2245_v24 = vpack.i.b16 %v2244_v33, %v2243_v18 }
 0x677   : > { %v2224_v52 = vpack.i.b16 %v2205_v51, %v2185_v50  ;;  %v2226_v58 = vshrl.u32 %v2205_v51, 16  ;;  %v2206_v62 = vrot.slane %v2205_v51, 4  ;;  %v2187_v3 = vsel %vm1167_vm14, 0, %v2186_v32 }
 0x678   : > { %v2231_v13 = vshrl.u32 %v2187_v3, 16  ;;  %v2516_v28 = vunpack.c.l.b16 %v2245_v24 }
 0x679   : > { %v2449_v29 = vunpack.c.l.b16 %v2224_v52  ;;  %v2227_v42 = vpack.i.b16 %v2226_v58, %v2225_v56  ;;  %v2207_v5 = vsel %vm1167_vm14, 0, %v2206_v62 }
 0x67a   : > { %v2230_v9 = vpack.i.b16 %v2207_v5, %v2187_v3  ;;  %v2232_v14 = vshrl.u32 %v2207_v5, 16 }
 0x67b   : > { %v2451_v6 = vpack.c.b16 %v2450_v63, %v2449_v29  ;;  %v2471_v7 = vunpack.c.l.b16 %v2227_v42 }
 0x67c   : > { %v2493_v17 = vunpack.c.l.b16 %v2230_v9  ;;  %v2233_v47 = vpack.i.b16 %v2232_v14, %v2231_v13 }
 0x67d   : > { %v2456_v15 = vsel %vm1503_vm15, %v2451_v6, 0  ;;  %v2473_v19 = vpack.c.b16 %v2472_v10, %v2471_v7 }
 0x67e   : > { %2465 = vmatpush.bf16.xpose.msra.mxu0 %v2456_v15  ;;  %v2515_v20 = vunpack.c.l.b16 %v2233_v47  ;;  %v2495_v26 = vpack.c.b16 %v2494_v22, %v2493_v17 }
 0x67f   : > { %v2478_v23 = vsel %vm1503_vm15, %v2473_v19, 0 }
 0x680   : > { %2487 = vmatpush.bf16.xpose.msra.mxu1 %v2478_v23  ;;  %v2500_v31 = vsel %vm1503_vm15, %v2495_v26, 0  ;;  %v2517_v30 = vpack.c.b16 %v2516_v28, %v2515_v20 }
 0x681   : > { %2509 = vmatpush.bf16.xpose.msra.mxu2 %v2500_v31 }
 0x682   : > { %v2522_v34 = vsel %vm1503_vm15, %v2517_v30, 0 }
 0x683   : > { %2531 = vmatpush.bf16.xpose.msra.mxu3 %v2522_v34 }
 0x6f0   : > { %v1879_v38 = vpop.f32.mrf.mxu2 }
 0x6f1   : > { %v1880_v39 = vadd.f32 %v3478_v35, %v1879_v38 }
 0x6f3   : > { %v1883_v40 = vmul.f32 0.35355338, %v1880_v39 }
 0x6f5   : > { %v1926_v43 = vpack.c.bf16 %v1883_v40, %v1883_v40 }
 0x6f7   : > { %1928 = vrot.lane.b32.xlu0 %v1926_v43, %s4020_s12  ;;  %1932 = vrot.lane.b32.xlu2 %v1926_v43, %s4019_s22  ;;  %v1937_v46 = vshrl.u32 %v1926_v43, 16  ;;  %s4986_s12 = sld [smem:[#allocation53_spill]] }
 0x6f8   : > { %v1881_v44 = vpop.f32.mrf.mxu2 }
 0x6ff   : > { %1930 = vrot.lane.b32.xlu0 %v1926_v43, %s4022_s27  ;;  %2246 = vrot.lane.b32.xlu2 %v4597_v57, %s4021_s13  ;;  %s4988_s27 = sld [smem:[#allocation56_spill]] }
 0x705   : > { %s3914_s17 = scalar_lea.hbm %s4988_s27, 16 }
 0x707   : > { %2254 = vrot.lane.b32.xlu0 %v4626_v27, %s4021_s13  ;;  %2258 = vrot.lane.b32.xlu2 %v4621_v25, %s4021_s13 }
 0x70f   : > { %2256 = vrot.lane.b32.xlu0 %v4641_v48, %s4021_s13 }
 0x751   : > { %v1933_v51 = vpop.permute.xlu2 %1932 }
 0x752   : > { %v1944_v56 = vshrl.u32 %v1933_v51, 16 }
 0x769   : > { %v1929_v4 = vpop.permute.xlu0 %1928 }
 0x76a   : > { %v1938_v45 = vshrl.u32 %v1929_v4, 16  ;;  %v1936_v49 = vpack.i.b16 %v1929_v4, %v1926_v43 }
 0x76c   : > { %v1939_v50 = vpack.i.b16 %v1938_v45, %v1937_v46  ;;  %v1950_v52 = vperm.slane %v1936_v49, %v4398_v37 }
 0x76e   : > { %v1976_v57 = vperm.slane %v1939_v50, %v4398_v37  ;;  %v1958_v59 = vrot.slane %v1950_v52, 4 }
 0x770   : > { %v1984_v32 = vrot.slane %v1976_v57, 4 }
 0x771   : > { %v1931_v53 = vpop.permute.xlu0 %1930 }
 0x772   : > { %v1942_v58 = vpack.i.b16 %v1933_v51, %v1931_v53  ;;  %v1943_v27 = vshrl.u32 %v1931_v53, 16  ;;  %v966_v53 = vld [vmem:[%s811_s15] sm:$0x1]  ;;  %s3273_s15 = sshll.u32 %s4982_s11, 3  ;;  %s2912_s11 = scalar_lea.sflag [#allocation4], %s4302_s10 }
 0x773   : > { %vm967_vm9 = vcmp.eq.f32.partialorder %v966_v53, 0.0  ;;  %s2923_s1 = scalar_lea.hbm %s4988_s27, %s3273_s15 }
 0x774   : > { %v1945_v21 = vpack.i.b16 %v1944_v56, %v1943_v27  ;;  %v1955_v25 = vperm.slane %v1942_v58, %v4398_v37  ;;  %v968_v56 = vsel %vm967_vm9, -1e+09, %v4025_v55  ;;  %s2927_s18 = sshll.u32 %s2923_s1, 4  ;;  %s2928_s18 = int_to_ptr.hbm [resolvable:$true] %s2927_s18 }
 0x775   : > { %s3908_s30 = sshra.s32 %s2928_s18, 4  ;;  %s3909_s30 = int_to_ptr.hbm [resolvable:$true] %s3908_s30 }
 0x776   : > { %v1956_v48 = vrot.slane %v1955_v25, 4  ;;  %v1959_v62 = vsel %vm1167_vm14, %v1955_v25, %v1958_v59  ;;  %v1981_v29 = vperm.slane %v1945_v21, %v4398_v37  ;;  %s3910_s14 = scalar_lea.hbm %s3909_s30, 8  ;;  %p3915_p11 = scmp.lt.s32.totalorder %s3909_s30, %s4988_s27 }
 0x777   : > { %v1967_v63 = vperm.slane %v1959_v62, %v4410_v54  ;;  %p3911_p3 = scmp.ne.s32.totalorder %s3909_s30, %s3910_s14  ;;  %p3916_p12 = scmp.lt.s32.totalorder %s3914_s17, %s3910_s14 }
 0x778   : > { %v1957_v42 = vsel %vm1167_vm14, %v1956_v48, %v1950_v52  ;;  %v1982_v0 = vrot.slane %v1981_v29, 4  ;;  %v1985_v2 = vsel %vm1167_vm14, %v1981_v29, %v1984_v32 }
 0x779   : > { %v1963_v3 = vperm.slane %v1957_v42, %v4410_v54  ;;  %v1970_v5 = vrot.slane %v1967_v63, 4  ;;  %v1993_v1 = vperm.slane %v1985_v2, %v4410_v54  ;;  %p3912_p9 = pnand %p3911_p3, %p4275_p2  ;;  %p3917_p13 = por %p3916_p12, %p3915_p11 }
 0x77a   : > { %v1983_v6 = vsel %vm1167_vm14, %v1982_v0, %v1976_v57  ;;  %v2447_v57 = vperm.slane %v968_v56, 0 }
 0x77b   : > { %v1968_v7 = vrot.slane %v1963_v3, 4  ;;  %v1971_v8 = vsel %vm1167_vm14, 0, %v1970_v5  ;;  %v1989_v9 = vperm.slane %v1983_v6, %v4410_v54  ;;  %v1996_v10 = vrot.slane %v1993_v1, 4  ;;  %v2247_v1 = vpop.permute.xlu2 %2246  ;;  %v2251_v6 = vpop.permute.xlu1 %2250  ;;  %p3913_p10 = pneg %p3912_p9 }
 0x77c   : > { %v2003_v11 = vrot.slane %v1971_v8, 4  ;;  %v1998_v16 = vsel %vm1167_vm14, %v1970_v5, %v1963_v3  ;;  %v2255_v8 = vpop.permute.xlu0 %2254 }
 0x77d   : > { %v1969_v13 = vsel %vm1167_vm14, 0, %v1968_v7  ;;  %v1994_v14 = vrot.slane %v1989_v9, 4  ;;  %v1997_v15 = vsel %vm1167_vm14, 0, %v1996_v10  ;;  %v2002_v22 = vperm.slane %v1998_v16, %v4398_v37  ;;  %p3918_p0 = pnand %p3917_p13, %p3913_p10 }
 0x77e   : > { %v2004_v17 = vsel %vm1167_vm14, %v2003_v11, %v1969_v13  ;;  %v2022_v18 = vrot.slane %v1997_v15, 4  ;;  %v2017_v24 = vsel %vm1167_vm14, %v1996_v10, %v1989_v9  ;;  %v2292_v7 = vperm.slane %v2251_v6, %v4398_v37 }
 0x77f   : > { %v1995_v19 = vsel %vm1167_vm14, 0, %v1994_v14  ;;  %v2008_v47 = vperm.slane %v2004_v17, %v4398_v37  ;;  %v2021_v31 = vperm.slane %v2017_v24, %v4398_v37  ;;  %v2266_v10 = vperm.slane %v2247_v1, %v4398_v37 }
 0x780   : > { %v2023_v33 = vsel %vm1167_vm14, %v2022_v18, %v1995_v19  ;;  %v2300_v11 = vrot.slane %v2292_v7, 4  ;;  %v2271_v13 = vperm.slane %v2255_v8, %v4398_v37 }
 0x781   : > { %v2009_v23 = vrot.slane %v2008_v47, 4  ;;  %v2027_v20 = vperm.slane %v2023_v33, %v4398_v37 }
 0x782   : > { %v2272_v15 = vrot.slane %v2271_v13, 4 }
 0x783   : > { %v2028_v26 = vrot.slane %v2027_v20, 4  ;;  %v2010_v28 = vsel %vm1167_vm14, %v2009_v23, %v2002_v22  ;;  %v2259_v9 = vpop.permute.xlu2 %2258 }
 0x784   : > { %v2014_v30 = vperm.slane %v2010_v28, %v4410_v54  ;;  %v2297_v14 = vperm.slane %v2259_v9, %v4398_v37  ;;  %v2273_v19 = vsel %vm1167_vm14, %v2272_v15, %v2266_v10  ;;  %v4759_v20 = vpop.permute.xlu0 %2256 }
 0x785   : > { %v2029_v34 = vsel %vm1167_vm14, %v2028_v26, %v2021_v31  ;;  %v2279_v33 = vperm.slane %v2273_v19, %v4410_v54 }
 0x786   : > { %v2033_v35 = vperm.slane %v2029_v34, %v4410_v54  ;;  %v2015_v38 = vrot.slane %v2014_v30, 4  ;;  %v2039_v40 = vshrl.u32 %v2014_v30, 16  ;;  %v2298_v16 = vrot.slane %v2297_v14, 4 }
 0x787   : > { %v2284_v26 = vrot.slane %v2279_v33, 4 }
 0x788   : > { %v2038_v39 = vpack.i.b16 %v2033_v35, %v2014_v30  ;;  %v2040_v43 = vshrl.u32 %v2033_v35, 16  ;;  %v2016_v44 = vsel %vm1167_vm14, 0, %v2015_v38  ;;  %v2034_v4 = vrot.slane %v2033_v35, 4 }
 0x789   : > { %v2045_v50 = vshrl.u32 %v2016_v44, 16  ;;  %v2299_v47 = vsel %vm1167_vm14, %v2298_v16, %v2292_v7 }
 0x78a   : > { %3234 = vmatmul.msk.bf16.vlgmr.msra.gmra.mxu0 %vm1503_vm15, %v2038_v39  ;;  %v2041_v45 = vpack.i.b16 %v2040_v43, %v2039_v40  ;;  %v2035_v46 = vsel %vm1167_vm14, 0, %v2034_v4  ;;  %v2305_v23 = vperm.slane %v2299_v47, %v4410_v54  ;;  %v2285_v39 = vsel %vm1167_vm14, 0, %v2284_v26 }
 0x78b   : > { %v2044_v49 = vpack.i.b16 %v2035_v46, %v2016_v44  ;;  %v2046_v51 = vshrl.u32 %v2035_v46, 16 }
 0x78c   : > { %3235 = vmatmul.msk.bf16.vlgmr.msra.gmra.mxu1 %vm1503_vm15, %v2041_v45  ;;  %v2310_v31 = vrot.slane %v2305_v23, 4  ;;  %v2342_v45 = vshrl.u32 %v2285_v39, 16  ;;  %v2332_v7 = vpack.i.b16 %v2305_v23, %v2279_v33 }
 0x78d   : > { %3236 = vmatmul.msk.bf16.vlgmr.msra.gmra.mxu2 %vm1503_vm15, %v2044_v49  ;;  %v2047_v52 = vpack.i.b16 %v2046_v51, %v2045_v50 }
 0x78e   : > { %v2311_v40 = vsel %vm1167_vm14, 0, %v2310_v31 }
 0x78f   : > { %3237 = vmatmul.msk.bf16.vlgmr.msra.gmra.mxu3 %vm1503_vm15, %v2047_v52  ;;  %v2343_v46 = vshrl.u32 %v2311_v40, 16 }
 0x791   : > { %v2344_v53 = vpack.i.b16 %v2343_v46, %v2342_v45 }
 0x807   : > { %v2467_v58 = vpop.f32.mrf.mxu0 }
 0x808   : > { %v2468_v27 = vadd.f32 %v2467_v58, %v2447_v57 }
 0x809   : > { %v2489_v59 = vpop.f32.mrf.mxu1 }
 0x80a   : > { %v4728_v21 = vadd.f32 %v2489_v59, %v2447_v57  ;;  %v2538_v25 = vsel %vm2537_vm10, %v2468_v27, -inf  ;;  %v2334_v59 = vshrl.u32 %v2279_v33, 16  ;;  %v2316_v33 = vrot.slane %v4759_v20, 4 }
 0x80b   : > { %2539 = vmax.xlane.f32.xlu1 %v2538_v25  ;;  %v2335_v25 = vshrl.u32 %v2305_v23, 16 }
 0x80c   : > { %v2541_v32 = vsel %vm2537_vm10, %v4728_v21, -inf }
 0x80d   : > { %2542 = vmax.xlane.f32.xlu0 %v2541_v32  ;;  %v2336_v8 = vpack.i.b16 %v2335_v25, %v2334_v59 }
 0x80f   : > { %v2469_v48 = vpop.f32.mrf.mxu0 }
 0x810   : > { %v2511_v62 = vpop.f32.mrf.mxu2 }
 0x811   : > { %v2491_v29 = vpop.f32.mrf.mxu1  ;;  %v4733_v63 = vadd.f32 %v2511_v62, %v2447_v57 }
 0x812   : > { %v2533_v55 = vpop.f32.mrf.mxu3 }
 0x813   : > { %v4735_v42 = vadd.f32 %v2533_v55, %v2447_v57  ;;  %v2544_v0 = vsel %vm2537_vm10, %v4733_v63, -inf  ;;  %v2340_v57 = vpack.i.b16 %v2311_v40, %v2285_v39 }
 0x815   : > { %2545 = vmax.xlane.f32.xlu0 %v2544_v0  ;;  %v2547_v2 = vsel %vm2537_vm10, %v4735_v42, -inf }
 0x816   : > { %2548 = vmax.xlane.f32.xlu2 %v2547_v2 }
 0x818   : > { %v2513_v3 = vpop.f32.mrf.mxu2 }
 0x81a   : > { %v2535_v5 = vpop.f32.mrf.mxu3 }
 0x824   : > { %2260 = vrot.lane.b32.xlu1 %v4634_v41, %s4021_s13  ;;  %v2274_v41 = vrot.slane %v2266_v10, 4 }
 0x829   : > { %2252 = vrot.lane.b32.xlu0 %v4648_v60, %s4021_s13  ;;  %v2275_v60 = vsel %vm1167_vm14, %v2271_v13, %v2274_v41 }
 0x82a   : > { %v2283_v17 = vperm.slane %v2275_v60, %v4410_v54 }
 0x82c   : > { %v2286_v22 = vrot.slane %v2283_v17, 4  ;;  %v2350_v51 = vshrl.u32 %v2283_v17, 16 }
 0x82e   : > { %2248 = vrot.lane.b32.xlu2 %v4605_v61, %s4021_s13  ;;  %v2301_v61 = vsel %vm1167_vm14, %v2297_v14, %v2300_v11  ;;  %v2287_v28 = vsel %vm1167_vm14, 0, %v2286_v22 }
 0x82f   : > { %v2309_v18 = vperm.slane %v2301_v61, %v4410_v54  ;;  %v2358_v34 = vshrl.u32 %v2287_v28, 16 }
 0x831   : > { %v2312_v24 = vrot.slane %v2309_v18, 4  ;;  %v2351_v52 = vshrl.u32 %v2309_v18, 16 }
 0x833   : > { %v2313_v30 = vsel %vm1167_vm14, 0, %v2312_v24  ;;  %v2352_v32 = vpack.i.b16 %v2351_v52, %v2350_v51 }
 0x834   : > { %v2359_v35 = vshrl.u32 %v2313_v30, 16  ;;  %v2356_v50 = vpack.i.b16 %v2313_v30, %v2287_v28 }
 0x835   : > { %v2388_v9 = vrot.slane %v2352_v32, 4 }
 0x836   : > { %v2360_v49 = vpack.i.b16 %v2359_v35, %v2358_v34  ;;  %v2374_v58 = vrot.slane %v2356_v50, 4 }
 0x837   : > { %v2389_v41 = vsel %vm1167_vm14, %v2388_v9, %v2336_v8 }
 0x838   : > { %v2394_v56 = vrot.slane %v2360_v49, 4  ;;  %v2375_v3 = vsel %vm1167_vm14, %v2374_v58, %v2340_v57  ;;  %v2393_v16 = vperm.slane %v2389_v41, %v4398_v37 }
 0x839   : > { %v2379_v13 = vperm.slane %v2375_v3, %v4398_v37 }
 0x83a   : > { %v2395_v2 = vsel %vm1167_vm14, %v2394_v56, %v2344_v53 }
 0x83b   : > { %v2399_v11 = vperm.slane %v2395_v2, %v4398_v37  ;;  %v2380_v60 = vrot.slane %v2379_v13, 4 }
 0x83d   : > { %v2400_v15 = vrot.slane %v2399_v11, 4 }
 0x83f   : > { %v2401_v47 = vsel %vm1167_vm14, %v2400_v15, %v2393_v16 }
 0x840   : > { %v2405_v26 = vperm.slane %v2401_v47, %v4410_v54 }
 0x842   : > { %v2406_v39 = vrot.slane %v2405_v26, 4  ;;  %v2426_v46 = vshrl.u32 %v2405_v26, 16 }
 0x844   : > { %v2407_v49 = vsel %vm1167_vm14, 0, %v2406_v39 }
 0x845   : > { %v2432_v59 = vshrl.u32 %v2407_v49, 16 }
 0x87e   : > { %v2540_v38 = vpop.xlane.xlu1 %2539 }
 0x87f   : > { %v2550_v43 = vsub.f32 %v2468_v27, %v2540_v38  ;;  %v2348_v27 = vpack.i.b16 %v2309_v18, %v2283_v17 }
 0x880   : > { %v2543_v44 = vpop.xlane.xlu0 %2542 }
 0x881   : > { %v2554_v4 = vmul.f32 1.442695, %v2550_v43  ;;  %v2551_v5 = vsub.f32 %v4728_v21, %v2543_v44  ;;  %v2368_v10 = vrot.slane %v2348_v27, 4 }
 0x883   : > { %3514 = vpow2.f32 %v2554_v4  ;;  %v2556_v14 = vmul.f32 1.442695, %v2551_v5  ;;  %v2369_v21 = vsel %vm1167_vm14, %v2368_v10, %v2332_v7 }
 0x884   : > { %v2373_v61 = vperm.slane %v2369_v21, %v4398_v37 }
 0x886   : > { %v2381_v23 = vsel %vm1167_vm14, %v2380_v60, %v2373_v61 }
 0x887   : > { %v2385_v31 = vperm.slane %v2381_v23, %v4410_v54 }
 0x888   : > { %v2546_v48 = vpop.xlane.xlu0 %2545 }
 0x889   : > { %v4765_v62 = vpop.eup %3514  ;;  %v2552_v29 = vsub.f32 %v4733_v63, %v2546_v48  ;;  %v2549_v55 = vpop.xlane.xlu2 %2548  ;;  %v2386_v43 = vrot.slane %v2385_v31, 4  ;;  %v2424_v53 = vpack.i.b16 %v2405_v26, %v2385_v31  ;;  %v2425_v56 = vshrl.u32 %v2385_v31, 16 }
 0x88a   : > { %v2562_v0 = vsel %vm2537_vm10, %v4765_v62, 0.0  ;;  %v2553_v6 = vsub.f32 %v4735_v42, %v2549_v55 }
 0x88b   : > { %v2558_v1 = vmul.f32 1.442695, %v2552_v29  ;;  %2563 = vadd.xlane.f32.xlu0 %v2562_v0  ;;  %v2387_v52 = vsel %vm1167_vm14, 0, %v2386_v43  ;;  %v2427_v25 = vpack.i.b16 %v2426_v46, %v2425_v56  ;;  %v2586_v2 = vunpack.c.l.b16 %v2424_v53  ;;  %v2682_v46 = vld [vmem:[#allocation17 + $0xc] sm:$0xf] }
 0x88c   : > { %v2560_v63 = vmul.f32 1.442695, %v2553_v6  ;;  %v2431_v48 = vshrl.u32 %v2387_v52, 16  ;;  %v2430_v3 = vpack.i.b16 %v2407_v49, %v2387_v52  ;;  %v2680_v49 = vld [vmem:[#allocation17 + $0x4] sm:$0xf] }
 0x88d   : > { %3516 = vpow2.f32 %v2558_v1 }
 0x88e   : > { %3518 = vpow2.f32 %v2560_v63  ;;  %v2433_v7 = vpack.i.b16 %v2432_v59, %v2431_v48  ;;  %v2609_v63 = vunpack.c.l.b16 %v2427_v25  ;;  %v2631_v13 = vunpack.c.l.b16 %v2430_v3 }
 0x88f   : > { %3520 = vpow2.f32 %v2556_v14 }
 0x890   : > { %v2653_v16 = vunpack.c.l.b16 %v2433_v7 }
 0x891   : > { %v2249_v19 = vpop.permute.xlu2 %2248 }
 0x892   : > { %v2317_v37 = vsel %vm1167_vm14, %v2316_v33, %v2249_v19 }
 0x893   : > { %v4778_v42 = vpop.eup %3516  ;;  %v2321_v34 = vperm.slane %v2317_v37, %v4410_v54 }
 0x894   : > { %v2568_v17 = vsel %vm2537_vm10, %v4778_v42, 0.0  ;;  %v4784_v18 = vpop.eup %3518 }
 0x895   : > { %2569 = vadd.xlane.f32.xlu1 %v2568_v17  ;;  %v2571_v22 = vsel %vm2537_vm10, %v4784_v18, 0.0  ;;  %v4793_v28 = vpop.eup %3520  ;;  %v2365_v44 = vshrl.u32 %v2321_v34, 16 }
 0x896   : > { %v2261_v24 = vpop.permute.xlu1 %2260  ;;  %2572 = vadd.xlane.f32.xlu2 %v2571_v22  ;;  %v2565_v38 = vsel %vm2537_vm10, %v4793_v28, 0.0 }
 0x897   : > { %v2324_v30 = vrot.slane %v2261_v24, 4 }
 0x89b   : > { %v2253_v35 = vpop.permute.xlu0 %2252 }
 0x89c   : > { %v2325_v20 = vsel %vm1167_vm14, %v2324_v30, %v2253_v35 }
 0x89d   : > { %v2329_v40 = vperm.slane %v2325_v20, %v4410_v54  ;;  %2566 = vadd.xlane.f32.xlu1 %v2565_v38 }
 0x89f   : > { %v2364_v4 = vpack.i.b16 %v2329_v40, %v2321_v34  ;;  %v2366_v45 = vshrl.u32 %v2329_v40, 16 }
 0x8a1   : > { %v2367_v50 = vpack.i.b16 %v2366_v45, %v2365_v44  ;;  %v2412_v51 = vperm.slane %v2364_v4, %v4410_v54  ;;  %v2679_v4 = vld [vmem:[#allocation17] sm:$0xf]  ;;  %v2681_v45 = vld [vmem:[#allocation17 + $0x8] sm:$0xf] }
 0x8a3   : > { %v2419_v57 = vperm.slane %v2367_v50, %v4410_v54  ;;  %v2413_v58 = vrot.slane %v2412_v51, 4  ;;  %v2437_v32 = vshrl.u32 %v2412_v51, 16  ;;  %v2744_v50 = vsel %vm1631_vm2, %v2682_v46, 0 }
 0x8a5   : > { %v2436_v27 = vpack.i.b16 %v2419_v57, %v2412_v51  ;;  %v2438_v29 = vshrl.u32 %v2419_v57, 16  ;;  %v2414_v55 = vsel %vm1167_vm14, 0, %v2413_v58  ;;  %v2420_v0 = vrot.slane %v2419_v57, 4 }
 0x8a6   : > { %v2443_v54 = vshrl.u32 %v2414_v55, 16  ;;  %v2706_v51 = vsel %vm1631_vm2, %v2680_v49, 0 }
 0x8a7   : > { %v2587_v5 = vunpack.c.l.b16 %v2436_v27  ;;  %v2439_v1 = vpack.i.b16 %v2438_v29, %v2437_v32  ;;  %v2421_v6 = vsel %vm1167_vm14, 0, %v2420_v0 }
 0x8a8   : > { %v2442_v8 = vpack.i.b16 %v2421_v6, %v2414_v55  ;;  %v2444_v9 = vshrl.u32 %v2421_v6, 16 }
 0x8a9   : > { %v2588_v10 = vpack.c.b16 %v2587_v5, %v2586_v2  ;;  %v2610_v11 = vunpack.c.l.b16 %v2439_v1 }
 0x8aa   : > { %v2632_v14 = vunpack.c.l.b16 %v2442_v8  ;;  %v2445_v41 = vpack.i.b16 %v2444_v9, %v2443_v54  ;;  %v3479_v9 = vld [vmem:[#allocation19] ss:$0 sm:$0xff] }
 0x8ab   : > { %v2594_v21 = vsel %vm2592_vm11, %v2588_v10, 0  ;;  %v2611_v15 = vpack.c.b16 %v2610_v11, %v2609_v63 }
 0x8ac   : > { %2603 = vmatpush.bf16.msrb.mxu0 %v2594_v21  ;;  %v2633_v60 = vpack.c.b16 %v2632_v14, %v2631_v13  ;;  %v2654_v61 = vunpack.c.l.b16 %v2445_v41 }
 0x8ad   : > { %v2616_v17 = vsel %vm2592_vm11, %v2611_v15, 0 }
 0x8ae   : > { %2625 = vmatpush.bf16.msrb.mxu1 %v2616_v17  ;;  %v2638_v19 = vsel %vm2592_vm11, %v2633_v60, 0  ;;  %v2655_v47 = vpack.c.b16 %v2654_v61, %v2653_v16 }
 0x8af   : > { %2647 = vmatpush.bf16.msrb.mxu2 %v2638_v19 }
 0x8b0   : > { %v2660_v33 = vsel %vm2592_vm11, %v2655_v47, 0  ;;  %v3287_v47 = vld [vmem:[#allocation20 + $0x8] sm:$0xff] }
 0x8b1   : > { %2669 = vmatpush.bf16.msrb.mxu3 %v2660_v33  ;;  %v3286_v33 = vld [vmem:[#allocation20] sm:$0xff] }
 0x8b2   : > { %2715 = vmatpush.bf16.msra.mxu1 %v2706_v51 }
 0x8b5   : > { %2753 = vmatpush.bf16.msra.mxu3 %v2744_v50 }
 0x8fe   : > { %v2564_v22 = vpop.xlane.xlu0 %2563 }
 0x8ff   : > { %3522 = vrcp.f32 %v2564_v22 }
 0x905   : > { %v3523_v23 = vpop.eup %3522 }
 0x906   : > { %v2578_v24 = vmul.f32 %v3523_v23, %v4765_v62 }
 0x908   : > { %v2582_v37 = vpack.c.bf16 %v2578_v24, %v2578_v24  ;;  %v2570_v26 = vpop.xlane.xlu1 %2569 }
 0x909   : > { %3524 = vrcp.f32 %v2570_v26  ;;  %v2573_v31 = vpop.xlane.xlu2 %2572 }
 0x90a   : > { %3238 = vmatmul.msk.bf16.vlgmr.msrb.gmra.mxu0 %vm2537_vm10, %v2582_v37  ;;  %3526 = vrcp.f32 %v2573_v31 }
 0x90f   : > { %v3525_v30 = vpop.eup %3524 }
 0x910   : > { %v2580_v34 = vmul.f32 %v3525_v30, %v4778_v42  ;;  %v2567_v35 = vpop.xlane.xlu1 %2566  ;;  %v3527_v20 = vpop.eup %3526  ;;  %v2687_v42 = vsel %vm1631_vm2, %v2679_v4, 0 }
 0x911   : > { %3528 = vrcp.f32 %v2567_v35  ;;  %v2581_v39 = vmul.f32 %v3527_v20, %v4784_v18  ;;  %2696 = vmatpush.bf16.msra.mxu0 %v2687_v42  ;;  %v2725_v18 = vsel %vm1631_vm2, %v2681_v45, 0  ;;  %v3480_v42 = vld [vmem:[%s4925_s20 + $0x2] ss:$0 sm:$0xff] }
 0x912   : > { %v2584_v38 = vpack.c.bf16 %v2580_v34, %v2580_v34  ;;  %2734 = vmatpush.bf16.msra.mxu2 %v2725_v18  ;;  %v3290_v34 = vld [vmem:[%s4986_s12 + $0x10] sm:$0xff] }
 0x913   : > { %v2585_v40 = vpack.c.bf16 %v2581_v39, %v2581_v39 }
 0x914   : > { %3240 = vmatmul.msk.bf16.vlgmr.msrb.gmra.mxu2 %vm2537_vm10, %v2584_v38 }
 0x915   : > { %3241 = vmatmul.msk.bf16.vlgmr.msrb.gmra.mxu3 %vm2537_vm10, %v2585_v40  ;;  %2846 = vmatpush.bf16.msrb.mxu0 %v3287_v47 }
 0x917   : > { %v3529_v62 = vpop.eup %3528 }
 0x918   : > { %v2579_v43 = vmul.f32 %v3529_v62, %v4793_v28 }
 0x919   : > { %2847 = vmatpush.bf16.msrb.mxu0 %v3286_v33 }
 0x91a   : > { %v2583_v44 = vpack.c.bf16 %v2579_v43, %v2579_v43 }
 0x91c   : > { %3239 = vmatmul.msk.bf16.vlgmr.msrb.gmra.mxu1 %vm2537_vm10, %v2583_v44 }
 0x987   : > { %v2605_v28 = vpop.f32.mrf.mxu0 }
 0x988   : > { %v2675_v52 = vpack.c.bf16 %v2605_v28, %v2605_v28  ;;  %v3481_v28 = vld [vmem:[%s4981_s19 + $0x2] ss:$0 sm:$0xff] }
 0x98a   : > { %3242 = vmatmul.msk.bf16.vlgmr.msra.gmra.mxu0 %vm1503_vm15, %v2675_v52 }
 0x98f   : > { %v2607_v53 = vpop.f32.mrf.mxu0 }
 0x997   : > { %v2649_v56 = vpop.f32.mrf.mxu2 }
 0x998   : > { %v2677_v57 = vpack.c.bf16 %v2649_v56, %v2649_v56  ;;  %v2671_v58 = vpop.f32.mrf.mxu3 }
 0x999   : > { %v2627_v59 = vpop.f32.mrf.mxu1  ;;  %v2678_v25 = vpack.c.bf16 %v2671_v58, %v2671_v58  ;;  %v3289_v58 = vld [vmem:[%s4986_s12 + $0x8] sm:$0xff] }
 0x99a   : > { %v2676_v32 = vpack.c.bf16 %v2627_v59, %v2627_v59  ;;  %3244 = vmatmul.msk.bf16.vlgmr.msra.gmra.mxu2 %vm1503_vm15, %v2677_v57  ;;  %v3288_v59 = vld [vmem:[%s4986_s12] sm:$0xff] }
 0x99b   : > { %3245 = vmatmul.msk.bf16.vlgmr.msra.gmra.mxu3 %vm1503_vm15, %v2678_v25  ;;  %v3482_v25 = vld [vmem:[%s4987_s7] ss:$0 sm:$0xff] }
 0x99c   : > { %3243 = vmatmul.msk.bf16.vlgmr.msra.gmra.mxu1 %vm1503_vm15, %v2676_v32 }
 0x99f   : > { %v2651_v48 = vpop.f32.mrf.mxu2 }
 0x9a0   : > { %v2673_v27 = vpop.f32.mrf.mxu3 }
 0x9a1   : > { %v2629_v29 = vpop.f32.mrf.mxu1 }
 0xa07   : > { %v2698_v55 = vpop.f32.mrf.mxu0 }
 0xa08   : > { %v2759_v5 = vsel %vm971_vm0, %v2698_v55, 0.0 }
 0xa0f   : > { %v2700_v0 = vpop.f32.mrf.mxu0 }
 0xa10   : > { %v3483_v0 = vld [vmem:[%s4989_s24] ss:$0 sm:$0xff] }
 0xa19   : > { %v2717_v2 = vpop.f32.mrf.mxu1 }
 0xa1a   : > { %v2760_v3 = vsel %vm971_vm0, %v2717_v2, 0.0 }
 0xa1b   : > { %v2761_v1 = vadd.f32 %v2760_v3, %v2759_v5 }
 0xa1d   : > { %v2736_v6 = vpop.f32.mrf.mxu2 }
 0xa1e   : > { %v2762_v7 = vsel %vm971_vm0, %v2736_v6, 0.0  ;;  %v2755_v54 = vpop.f32.mrf.mxu3 }
 0xa1f   : > { %v2763_v8 = vadd.f32 %v2762_v7, %v2761_v1  ;;  %v2764_v10 = vsel %vm971_vm0, %v2755_v54, 0.0 }
 0xa21   : > { %v2765_v63 = vadd.f32 %v2764_v10, %v2763_v8  ;;  %v2719_v11 = vpop.f32.mrf.mxu1 }
 0xa23   : > { %v2770_v13 = vadd.f32 %v3479_v9, %v2765_v63 }
 0xa25   : > { %v2738_v14 = vpop.f32.mrf.mxu2  ;;  %v4832_v41 = vadd.f32 %v2770_v13, %v4584_v36 }
 0xa26   : > { %v2757_v21 = vpop.f32.mrf.mxu3 }
 0xa27   : > { %v2774_v15 = vsel %vm971_vm0, %v4832_v41, 0.0 }
 0xa28   : > { %2775 = vadd.xlane.f32.xlu2 %v2774_v15 }
 0xa9b   : > { %v2776_v60 = vpop.xlane.xlu2 %2775 }
 0xa9c   : > { %v2777_v16 = vmul.f32 %v2776_v60, %v4345_v12  ;;  %v3291_v12 = vld [vmem:[%s4986_s12 + $0x18] sm:$0xff] }
 0xa9d   : > { %2895 = vmatpush.bf16.msrb.mxu1 %v3291_v12 }
 0xa9e   : > { %v2778_v61 = vsub.f32 %v4832_v41, %v2777_v16 }
 0xaa0   : > { %v2779_v17 = vmul.f32 %v2778_v61, %v2778_v61  ;;  %v2785_v50 = vmul.f32 %v3480_v42, %v2778_v61 }
 0xaa1   : > { %2896 = vmatpush.bf16.msrb.mxu1 %v3290_v34 }
 0xaa2   : > { %v2780_v19 = vsel %vm971_vm0, %v2779_v17, 0.0 }
 0xaa3   : > { %2781 = vadd.xlane.f32.xlu0 %v2780_v19 }
 0xaa5   : > { %2897 = vmatpush.bf16.msrb.mxu1 %v3289_v58 }
 0xaa9   : > { %2898 = vmatpush.bf16.msrb.mxu1 %v3288_v59 }
 0xb16   : > { %v2782_v22 = vpop.xlane.xlu0 %2781 }
 0xb17   : > { %v2783_v36 = vmul.f32 0.032258064, %v2782_v22 }
 0xb19   : > { %3530 = vrsqrt.f32 %v2783_v36  ;;  %vm2793_vm12 = vcmp.eq.f32.partialorder %v2783_v36, inf  ;;  %v2796_v20 = vand.u32 2147483648, %v2783_v36  ;;  %vm2795_vm13 = vcmp.eq.f32.partialorder %v2783_v36, 0.0 }
 0xb1f   : > { %v3531_v23 = vpop.eup %3530 }
 0xb20   : > { %v2787_v24 = vmul.f32 %v3531_v23, %v2783_v36 }
 0xb22   : > { %v2788_v37 = vmul.f32 %v3531_v23, %v2787_v24 }
 0xb24   : > { %v2789_v26 = vmul.f32 0.5, %v2788_v37 }
 0xb26   : > { %v2790_v31 = vsub.f32 1.5, %v2789_v26 }
 0xb28   : > { %v2791_v30 = vmul.f32 %v3531_v23, %v2790_v31 }
 0xb2a   : > { %v2792_v35 = vmul.f32 %v2791_v30, %v2783_v36 }
 0xb2c   : > { %v2794_v38 = vsel %vm2793_vm12, %v2783_v36, %v2792_v35 }
 0xb2d   : > { %v2797_v39 = vsel %vm2795_vm13, %v2796_v20, %v2794_v38 }
 0xb2e   : > { %v2798_v40 = vadd.f32 1e-06, %v2797_v39 }
 0xb30   : > { %3532 = vrcp.f32 %v2798_v40  ;;  %v2810_v4 = vand.u32 2147483648, %v2798_v40  ;;  %v2808_v46 = vand.u32 2147483647, %v2798_v40  ;;  %vm2804_vm15 = vweird.f32 %v2798_v40 }
 0xb32   : > { %v2811_v18 = vor.u32 1.1754944e-38, %v2810_v4  ;;  %vm2809_vm2 = vcmp.eq.f32.partialorder %v2808_v46, 8.507059e+37 }
 0xb36   : > { %v3533_v62 = vpop.eup %3532 }
 0xb37   : > { %v2800_v43 = vmul.f32 %v3533_v62, %v2798_v40  ;;  %vm2805_vm14 = vweird.f32 %v3533_v62 }
 0xb38   : > { %vm2806_vm1 = vmor %vm2804_vm15, %vm2805_vm14 }
 0xb39   : > { %v2801_v44 = vsub.f32 1.0, %v2800_v43 }
 0xb3b   : > { %v2802_v45 = vmul.f32 %v3533_v62, %v2801_v44 }
 0xb3d   : > { %v2803_v49 = vadd.f32 %v3533_v62, %v2802_v45 }
 0xb3f   : > { %v2807_v51 = vsel %vm2806_vm1, %v3533_v62, %v2803_v49 }
 0xb40   : > { %v2812_v52 = vsel %vm2809_vm2, %v2811_v18, %v2807_v51 }
 0xb41   : > { %v2813_v53 = vmul.f32 %v2812_v52, %v2785_v50 }
 0xb43   : > { %v2815_v56 = vadd.f32 %v3481_v28, %v2813_v53 }
 0xb45   : > { %v2816_v57 = vpack.c.bf16 %v2815_v56, %v2815_v56 }
 0xb47   : > { %3254 = vmatmul.msk.bf16.vlgmr.msrb.gmra.mxu0 %vm971_vm0, %v2816_v57 }
 0xbc4   : > { %v2849_v32 = vpop.f32.mrf.mxu0 }
 0xbc5   : > { %v2850_v48 = vadd.f32 %v3482_v25, %v2849_v32 }
 0xbc7   : > { %v2853_v27 = vmax.f32 %v2850_v48, 0.0 }
 0xbc9   : > { %v2854_v29 = vpack.c.bf16 %v2853_v27, %v2853_v27 }
 0xbcb   : > { %3271 = vmatmul.msk.bf16.vlgmr.msrb.gmra.mxu1 %vm2887_vm3, %v2854_v29 }
 0xbcc   : > { %v2851_v55 = vpop.f32.mrf.mxu0 }
 0xc48   : > { %v2900_v2 = vpop.f32.mrf.mxu1 }
 0xc49   : > { %v2904_v3 = vadd.f32 %v2900_v2, %v4832_v41 }
 0xc4b   : > { %v2909_v5 = vadd.f32 %v3483_v0, %v2904_v3 }
 0xc4d   : > { %2910 = vst.msk [vmem:[%s938_s21] sm:$0xff] %vm971_vm0, %v2909_v5 }
 0xc4e   : > { %3921 = shalt.err (!%p3918_p0)
}
 0xc4f   : > { %3336 = dma.vmem_to_hbm [thread:$0]  (%p4275_p2), %s2926_s2, 128, %s2928_s18, %s2912_s11  }
 0xc50   : > { %v2902_v1 = vpop.f32.mrf.mxu1 }
 0xc51 PF: > { %s2939_s10 = sand.u32 1, %s3984_s3   ;;  %p3377_p5 = pnand %p3163_p4, %p4282_p6 }
 0xc52   : > { %s2940_s13 = scalar_lea.sflag [#allocation4], %s2939_s10 }
 0xc53   : > { %p3378_p7 = pneg %p3377_p5 }
 0xc55   : > { %3979 = dma.done.wait (%p3378_p7), %s2940_s13, 128  }
 0xc56   : > { %3981 = vsyncadd (%p3378_p7), %s2940_s13, 4294967168  ;;  %s46_s0 = sadd.s32 1, %s4004_s0   ;;  %s4990_s5 = sld [smem:[#allocation34_spill]] }
 0xc57   : > { %p43_p8 = scmp.ge.s32.totalorder %s46_s0, 4   ;;  %s4991_s1 = sld [smem:[#allocation33_spill]] }
 0xc58   : > { %s4992_s3 = smov %s3988_s28  ;;  %s4993_s28 = smov %s3992_s29 }
 0xc59   : > { %s4995_s30 = smov %s4000_s4  ;;  %45 = sbr.rel (!%p43_p8) target bundleno = 36 (0x24), region = 213 }
 0xc5c   : > { %s4994_s29 = smov %s4990_s5 }
 0xc5d   : > { %s4996_s4 = smov %s4991_s1 }
 0xc5e   :  { %2946 = vsyncpa [#allocation3], 1 }
 0xc5f   :  { %2948 = vsyncpa [#allocation3 + $0x1], 1 }
 0xc60   :  { %2949 = vsyncpa [#allocation6], 1 }
 0xc61   :  { %2951 = vsyncpa [#allocation6 + $0x1], 1 }
 0xc62   :  { %2952 = vsyncpa [#allocation9], 1 }
 0xc63   :  { %2953 = vsyncpa [#allocation12], 1 }
 0xc64   :  { %2954 = vsyncpa [#allocation15], 1 }
 0xc65   :  { %2955 = vsyncpa [#allocation18], 1 }
 0xc66   :  { %2956 = vsyncpa [#allocation21], 1 }
 0xc67   :  { %2957 = vsyncpa [#allocation4], 1 }
 0xc68   :  { %2959 = vsyncpa [#allocation4 + $0x1], 1 }

</bundles_post_ra>
